<compile_context>
chip_gen: v7x
topology: tpu7x:2x2x1
jax: 0.10.0
libtpu: 0.0.40
codegen_flags: <defaults>
</compile_context>

<pallas_src>
import functools

import jax
import jax.numpy as jnp
from jax import lax
from jax.experimental import pallas as pl
from jax.experimental.pallas import tpu as pltpu


# ---------------------------------------------------------------------------
# Kernel
# ---------------------------------------------------------------------------
def _downsample_kernel(top_ref, body_ref, bot_ref, w_ref, o_ref, even_ref, odd_ref,
                       *, th, W, C, Co):
    """One (batch, row-strip) grid step of Conv2d(3x3, pad=1, no bias) + PixelUnshuffle(2).

    top_ref : (1, 1,  W, C)  input row i*th - 1 (clamped; zeroed in-kernel when i == 0)
    body_ref: (1, th, W, C)  input rows [i*th, i*th + th)
    bot_ref : (1, 1,  W, C)  input row i*th + th (clamped; zeroed in-kernel when i == last)
    w_ref   : (16*C, 4*Co)   bf16 fused stride-2 4x4 weight (see _unshuffle_weight)
    o_ref   : (1, th//2 * W//2, 4*Co)  fused conv+unshuffle output pixels, row-major
    even_ref/odd_ref: (th//2 + 1, W + 2, C) f32 scratch: zero-padded strip rows split by parity
    """
    f32 = jnp.float32
    th2 = th // 2
    W2 = W // 2
    i = pl.program_id(1)
    nstrips = pl.num_programs(1)

    # ---- assemble the zero-padded (th+2, W+2, C) strip, rows split by parity --------------
    # even_ref[r] == padded strip row 2r, odd_ref[r] == padded strip row 2r + 1.
    zero_col = jnp.zeros((th2 + 1, 1, C), f32)
    even_ref[:, 0:1, :] = zero_col                       # left zero-pad column
    even_ref[:, W + 1:W + 2, :] = zero_col               # right zero-pad column
    odd_ref[:, 0:1, :] = zero_col
    odd_ref[:, W + 1:W + 2, :] = zero_col

    body = body_ref[0].astype(f32)                       # (th, W, C)
    body_p = body.reshape(th2, 2, W, C)                  # free: splits a leading (untiled) dim
    odd_ref[0:th2, 1:W + 1, :] = body_p[:, 0, :, :]      # body rows 0,2,.. -> padded rows 1,3,..
    even_ref[1:th2 + 1, 1:W + 1, :] = body_p[:, 1, :, :] # body rows 1,3,.. -> padded rows 2,4,..

    @pl.when(i == 0)                                     # padded row 0: top halo
    def _():
        even_ref[0:1, 1:W + 1, :] = jnp.zeros((1, W, C), f32)

    @pl.when(i > 0)
    def _():
        even_ref[0:1, 1:W + 1, :] = top_ref[0].astype(f32)

    @pl.when(i == nstrips - 1)                           # padded row th+1: bottom halo
    def _():
        odd_ref[th2:th2 + 1, 1:W + 1, :] = jnp.zeros((1, W, C), f32)

    @pl.when(i < nstrips - 1)
    def _():
        odd_ref[th2:th2 + 1, 1:W + 1, :] = bot_ref[0].astype(f32)

    # ---- deinterleave columns once (strided sublane loads), then gather the 16 taps -------
    # deint[rp*2 + cp][r, q, :] == padded_strip[2r + rp, 2q + cp, :]
    deint = []
    for plane in (even_ref, odd_ref):
        for cp in range(2):
            deint.append(plane[:, pl.ds(cp, W2 + 1, 2), :].astype(jnp.bfloat16))

    taps = []
    for dy in range(4):
        for dx in range(4):
            d = deint[(dy % 2) * 2 + (dx % 2)]
            taps.append(d[dy // 2:dy // 2 + th2, dx // 2:dx // 2 + W2, :])  # (th2, W2, C)

    # Single MXU matmul: K = 16*C (the 4x4 input patch), N = 4*Co (PixelUnshuffle'd channels),
    # f32 accumulation.  Output is already in the final (unshuffled) channel order.
    lhs = jnp.concatenate(taps, axis=-1).reshape(th2 * W2, 16 * C)          # bf16
    out = jnp.dot(lhs, w_ref[...], preferred_element_type=jnp.float32)      # (th2*W2, 4*Co)
    o_ref[0] = out.astype(o_ref.dtype)


# ---------------------------------------------------------------------------
# Weight transform: 3x3 conv + PixelUnshuffle(2)  ==  stride-2 4x4 conv with 4*Co outputs
# ---------------------------------------------------------------------------
def _unshuffle_weight(w):
    """(3, 3, C, Co) HWIO kernel -> (16*C, 4*Co) matrix.
    Row index = (dy*4 + dx)*C + cin (4x4 patch tap), col index = cout*4 + i*2 + j
    (PyTorch NCHW PixelUnshuffle(2) channel order)."""
    C, Co = w.shape[2], w.shape[3]
    rhs = jnp.zeros((4, 4, C, Co, 2, 2), w.dtype)
    for i in range(2):
        for j in range(2):
            rhs = rhs.at[i:i + 3, j:j + 3, :, :, i, j].set(w)
    return rhs.reshape(16 * C, 4 * Co)


# ---------------------------------------------------------------------------
# Strip sizing (generation-aware, lane-padding & double-buffer aware)
# ---------------------------------------------------------------------------
def _round_up(v, m):
    return -(-v // m) * m


def _vmem_capacity_bytes():
    try:
        cap = int(pltpu.get_tpu_info().vmem_capacity_bytes)
        if cap > 0:
            return cap
    except Exception:
        pass
    return 64 * 1024 * 1024        # conservative default (v7x per-core VMEM)


def _step_vmem_bytes(th, W, C, Co, in_bytes, out_bytes):
    """Per-grid-step VMEM footprint estimate incl. lane padding and double buffering."""
    th2, W2 = th // 2, W // 2
    cp = _round_up(C, 128)
    k16 = _round_up(16 * C, 128)
    nco = _round_up(4 * Co, 128)
    body = 2 * th * _round_up(W, 8) * cp * in_bytes               # double-buffered body block
    halos = 2 * 2 * _round_up(W, 8) * cp * in_bytes               # top + bottom halo rows
    weight = 2 * _round_up(16 * C, 16) * nco * 2                  # bf16 RHS
    outblk = 2 * _round_up(th2 * W2, 8) * nco * out_bytes         # double-buffered out block
    scratch = 2 * (th2 + 1) * _round_up(W + 2, 8) * cp * 4        # even/odd f32 planes
    deint = 4 * (th2 + 1) * _round_up(W2 + 1, 16) * cp * 2        # bf16 deinterleaved planes
    lhs = _round_up(th2 * W2, 16) * k16 * 2                       # bf16 LHS (taps + concat)
    acc = _round_up(th2 * W2, 8) * nco * 4                        # f32 matmul result
    bodyval = th * _round_up(W, 8) * cp * 4                       # body value copy
    return body + halos + weight + outblk + scratch + deint + 2 * lhs + acc + bodyval


def _valid_strip(th, H, W):
    th2 = th // 2
    return (H % th == 0 and th % 2 == 0
            and (th == H or (th2 * (W // 2)) % 8 == 0))           # (8,128) rule on the out block


def _pick_strip_rows(B, H, W, C, Co, in_bytes, out_bytes):
    cap = _vmem_capacity_bytes()
    # ~1/8 of VMEM per step, clamped to [4, 16] MiB: large enough to amortize per-step
    # overhead, small enough for v7x's 64 MiB per-core VMEM.
    budget = min(max(cap // 8, 4 << 20), 16 << 20)
    cands = [d for d in range(2, H + 1, 2) if _valid_strip(d, H, W)] or [H]
    # prefer >= 4 parallel grid steps so both v7x TensorCores get work
    pref = [d for d in cands if B * (H // d) >= 4] or cands
    fitting = [d for d in pref if _step_vmem_bytes(d, W, C, Co, in_bytes, out_bytes) <= budget]
    return max(fitting) if fitting else min(pref)


# ---------------------------------------------------------------------------
# Wrapper
# ---------------------------------------------------------------------------
def downsample(x, w, *, strip_rows=None, out_dtype=None):
    """PyTorch Downsample(n_feat): Conv2d(n_feat -> n_feat//2, 3x3, stride 1, pad 1, bias=False)
    + PixelUnshuffle(2), fused into a single Pallas kernel.

    x: (B, H, W, n_feat) NHWC activations.  w: (3, 3, n_feat, n_feat//2) HWIO conv weight.
    Returns (B, H//2, W//2, 2*n_feat); channel order matches PyTorch's NCHW PixelUnshuffle.
    """
    B, H, W, C = x.shape
    kh, kw, Ci, Co = w.shape
    assert (kh, kw) == (3, 3) and Ci == C
    assert H % 2 == 0 and W % 2 == 0, "PixelUnshuffle(2) needs even spatial dims"
    H2, W2 = H // 2, W // 2
    out_dtype = jnp.dtype(out_dtype) if out_dtype is not None else jnp.dtype(x.dtype)

    in_bytes = jnp.dtype(x.dtype).itemsize
    out_bytes = out_dtype.itemsize
    th = (strip_rows if strip_rows is not None
          else _pick_strip_rows(B, H, W, C, Co, in_bytes, out_bytes))
    assert _valid_strip(th, H, W), f"invalid strip_rows={th} for H={H}, W={W}"
    n = H // th
    th2 = th // 2

    rhs = _unshuffle_weight(w).astype(jnp.bfloat16)               # (16*C, 4*Co)

    kernel = functools.partial(_downsample_kernel, th=th, W=W, C=C, Co=Co)

    cost = pl.CostEstimate(
        flops=2 * B * H * W * 9 * C * Co,
        transcendentals=0,
        bytes_accessed=int(x.size * in_bytes + B * H2 * W2 * 4 * Co * out_bytes + rhs.size * 2),
    )
    footprint = _step_vmem_bytes(th, W, C, Co, in_bytes, out_bytes)
    vmem_limit = int(min(_vmem_capacity_bytes() * 3 // 4, max(32 << 20, 2 * footprint)))

    out = pl.pallas_call(
        kernel,
        out_shape=jax.ShapeDtypeStruct((B, H2 * W2, 4 * Co), out_dtype),
        grid=(B, n),
        in_specs=[
            # one halo row above the strip (clamped at the image top; zeroed in-kernel)
            pl.BlockSpec((1, 1, W, C), lambda b, i: (b, jnp.maximum(i * th - 1, 0), 0, 0)),
            # body rows [i*th, i*th + th)
            pl.BlockSpec((1, th, W, C), lambda b, i: (b, i, 0, 0)),
            # one halo row below the strip (clamped at the image bottom; zeroed in-kernel)
            pl.BlockSpec((1, 1, W, C), lambda b, i: (b, jnp.minimum(i * th + th, H - 1), 0, 0)),
            # fused weight matrix, VMEM-resident across the whole grid
            pl.BlockSpec((16 * C, 4 * Co), lambda b, i: (0, 0)),
        ],
        out_specs=pl.BlockSpec((1, th2 * W2, 4 * Co), lambda b, i: (b, i, 0)),
        scratch_shapes=[
            pltpu.VMEM((th2 + 1, W + 2, C), jnp.float32),         # padded strip, even rows
            pltpu.VMEM((th2 + 1, W + 2, C), jnp.float32),         # padded strip, odd rows
        ],
        compiler_params=pltpu.CompilerParams(
            dimension_semantics=("parallel", "parallel"),
            vmem_limit_bytes=vmem_limit),
        cost_estimate=cost,
    )(x, x, x, rhs)

    # Row-major split only; the PixelUnshuffle channel interleave already happened in-kernel.
    return out.reshape(B, H2, W2, 4 * Co)


# ---------------------------------------------------------------------------
# Reference + self-test
# ---------------------------------------------------------------------------
def pixel_unshuffle_nhwc(x, r=2):
    """NHWC equivalent of torch.nn.PixelUnshuffle (out channel = c*r*r + i*r + j)."""
    B, H, W, C = x.shape
    x = x.reshape(B, H // r, r, W // r, r, C)
    x = jnp.transpose(x, (0, 1, 3, 5, 2, 4))
    return x.reshape(B, H // r, W // r, C * r * r)


if __name__ == "__main__":
    key = jax.random.PRNGKey(0)
    k_x, k_w = jax.random.split(key)

    # NHWC input; PyTorch NCHW equivalent: (2, 8, 32, 32), n_feat = 8
    B, H, W, n_feat = 2, 32, 32, 8
    x = jax.random.normal(k_x, (B, H, W, n_feat), jnp.float32)
    w = 0.1 * jax.random.normal(k_w, (3, 3, n_feat, n_feat // 2), jnp.float32)

    # Pure-XLA reference (f32 conv; the kernel uses bf16 MXU operands with f32 accumulation).
    ref_conv = lax.conv_general_dilated(
        x, w, window_strides=(1, 1), padding=((1, 1), (1, 1)),
        dimension_numbers=("NHWC", "HWIO", "NHWC"))
    ref = pixel_unshuffle_nhwc(ref_conv, 2)

    # single strip (both halos zero), two strips (inter-strip halo path), auto-picked size
    for sr in (32, 16, None):
        fwd = jax.jit(functools.partial(downsample, strip_rows=sr))
        out = jax.block_until_ready(fwd(x, w))
        assert out.shape == (B, H // 2, W // 2, 2 * n_feat), out.shape
        assert bool(jnp.all(jnp.isfinite(out)))
        err = float(jnp.max(jnp.abs(out - ref)))
        assert err < 5e-2, f"max abs err {err} (strip_rows={sr})"

    print("KERNEL_OK")
</pallas_src>

<mosaic_0001>
module attributes {stable_mosaic.version = 11 : i64} {
  func.func @_downsample_kernel(%arg0: i32, %arg1: i32, %arg2: memref<1x1x32x8xf32, #tpu.memory_space<vmem>>, %arg3: memref<1x32x32x8xf32, #tpu.memory_space<vmem>>, %arg4: memref<1x1x32x8xf32, #tpu.memory_space<vmem>>, %arg5: memref<128x16xbf16, #tpu.memory_space<vmem>>, %arg6: memref<1x256x16xf32, #tpu.memory_space<vmem>>, %arg7: memref<17x34x8xf32, #tpu.memory_space<vmem>>, %arg8: memref<17x34x8xf32, #tpu.memory_space<vmem>>) attributes {dimension_semantics = [#tpu.dimension_semantics<parallel>, #tpu.dimension_semantics<parallel>], iteration_bounds = array<i64: 2, 1>, scalar_prefetch = 0 : i64, scratch_operands = 2 : i64, tpu.core_type = #tpu.core_type<tc>, window_params = [{transform_indices = @transform_0, window_bounds = array<i64: 1, 1, 32, 8>}, {transform_indices = @transform_1, window_bounds = array<i64: 1, 32, 32, 8>}, {transform_indices = @transform_2, window_bounds = array<i64: 1, 1, 32, 8>}, {pipeline_mode = #tpu.pipeline_mode<synchronous>, transform_indices = @transform_3, window_bounds = array<i64: 128, 16>}, {transform_indices = @transform_4, window_bounds = array<i64: 1, 256, 16>}]} {
    %cst = arith.constant 0.000000e+00 : f32
    %0 = vector.broadcast %cst : f32 to vector<17x1x8xf32>
    %c0 = arith.constant 0 : index
    %c0_0 = arith.constant 0 : index
    %c0_1 = arith.constant 0 : index
    %1 = vector.load %arg7[%c0, %c0_0, %c0_1] : memref<17x34x8xf32, #tpu.memory_space<vmem>>, vector<17x1x8xf32>
    tpu.vector_store %arg7[%c0, %c0_0, %c0_1], %0 {strides = array<i32>} : memref<17x34x8xf32, #tpu.memory_space<vmem>>, vector<17x1x8xf32>,
    %c0_2 = arith.constant 0 : index
    %c33 = arith.constant 33 : index
    %c0_3 = arith.constant 0 : index
    %2 = vector.load %arg7[%c0_2, %c33, %c0_3] : memref<17x34x8xf32, #tpu.memory_space<vmem>>, vector<17x1x8xf32>
    tpu.vector_store %arg7[%c0_2, %c33, %c0_3], %0 {strides = array<i32>} : memref<17x34x8xf32, #tpu.memory_space<vmem>>, vector<17x1x8xf32>,
    %c0_4 = arith.constant 0 : index
    %c0_5 = arith.constant 0 : index
    %c0_6 = arith.constant 0 : index
    %3 = vector.load %arg8[%c0_4, %c0_5, %c0_6] : memref<17x34x8xf32, #tpu.memory_space<vmem>>, vector<17x1x8xf32>
    tpu.vector_store %arg8[%c0_4, %c0_5, %c0_6], %0 {strides = array<i32>} : memref<17x34x8xf32, #tpu.memory_space<vmem>>, vector<17x1x8xf32>,
    %c0_7 = arith.constant 0 : index
    %c33_8 = arith.constant 33 : index
    %c0_9 = arith.constant 0 : index
    %4 = vector.load %arg8[%c0_7, %c33_8, %c0_9] : memref<17x34x8xf32, #tpu.memory_space<vmem>>, vector<17x1x8xf32>
    tpu.vector_store %arg8[%c0_7, %c33_8, %c0_9], %0 {strides = array<i32>} : memref<17x34x8xf32, #tpu.memory_space<vmem>>, vector<17x1x8xf32>,
    %c0_10 = arith.constant 0 : index
    %c0_11 = arith.constant 0 : index
    %c0_12 = arith.constant 0 : index
    %c0_13 = arith.constant 0 : index
    %5 = vector.load %arg3[%c0_10, %c0_11, %c0_12, %c0_13] : memref<1x32x32x8xf32, #tpu.memory_space<vmem>>, vector<1x32x32x8xf32>
    %6 = vector.shape_cast %5 : vector<1x32x32x8xf32> to vector<32x32x8xf32>
    %7 = vector.shape_cast %6 : vector<32x32x8xf32> to vector<16x2x32x8xf32>
    %8 = vector.extract_strided_slice %7 {offsets = [0, 0, 0, 0], sizes = [16, 1, 32, 8], strides = [1, 1, 1, 1]} : vector<16x2x32x8xf32> to vector<16x1x32x8xf32>
    %9 = vector.shape_cast %8 : vector<16x1x32x8xf32> to vector<16x32x8xf32>
    %c0_14 = arith.constant 0 : index
    %c1 = arith.constant 1 : index
    %c0_15 = arith.constant 0 : index
    %10 = vector.load %arg8[%c0_14, %c1, %c0_15] : memref<17x34x8xf32, #tpu.memory_space<vmem>>, vector<16x32x8xf32>
    tpu.vector_store %arg8[%c0_14, %c1, %c0_15], %9 {strides = array<i32>} : memref<17x34x8xf32, #tpu.memory_space<vmem>>, vector<16x32x8xf32>,
    %11 = vector.extract_strided_slice %7 {offsets = [0, 1, 0, 0], sizes = [16, 1, 32, 8], strides = [1, 1, 1, 1]} : vector<16x2x32x8xf32> to vector<16x1x32x8xf32>
    %12 = vector.shape_cast %11 : vector<16x1x32x8xf32> to vector<16x32x8xf32>
    %c1_16 = arith.constant 1 : index
    %c1_17 = arith.constant 1 : index
    %c0_18 = arith.constant 0 : index
    %13 = vector.load %arg7[%c1_16, %c1_17, %c0_18] : memref<17x34x8xf32, #tpu.memory_space<vmem>>, vector<16x32x8xf32>
    tpu.vector_store %arg7[%c1_16, %c1_17, %c0_18], %12 {strides = array<i32>} : memref<17x34x8xf32, #tpu.memory_space<vmem>>, vector<16x32x8xf32>,
    %c0_i32 = arith.constant 0 : i32
    %14 = arith.cmpi eq, %arg1, %c0_i32 : i32
    %15 = arith.extui %14 : i1 to i32
    %c0_i32_19 = arith.constant 0 : i32
    %16 = arith.cmpi ne, %15, %c0_i32_19 : i32
    scf.if %16 {
      %cst_44 = arith.constant 0.000000e+00 : f32
      %57 = vector.broadcast %cst_44 : f32 to vector<1x32x8xf32>
      %c0_45 = arith.constant 0 : index
      %c1_46 = arith.constant 1 : index
      %c0_47 = arith.constant 0 : index
      %58 = vector.load %arg7[%c0_45, %c1_46, %c0_47] : memref<17x34x8xf32, #tpu.memory_space<vmem>>, vector<1x32x8xf32>
      tpu.vector_store %arg7[%c0_45, %c1_46, %c0_47], %57 {strides = array<i32>} : memref<17x34x8xf32, #tpu.memory_space<vmem>>, vector<1x32x8xf32>,
    } else {
    }
    %c0_i32_20 = arith.constant 0 : i32
    %17 = arith.cmpi sgt, %arg1, %c0_i32_20 : i32
    %18 = arith.extui %17 : i1 to i32
    %c0_i32_21 = arith.constant 0 : i32
    %19 = arith.cmpi ne, %18, %c0_i32_21 : i32
    scf.if %19 {
      %c0_44 = arith.constant 0 : index
      %c0_45 = arith.constant 0 : index
      %c0_46 = arith.constant 0 : index
      %c0_47 = arith.constant 0 : index
      %57 = vector.load %arg2[%c0_44, %c0_45, %c0_46, %c0_47] : memref<1x1x32x8xf32, #tpu.memory_space<vmem>>, vector<1x1x32x8xf32>
      %58 = vector.shape_cast %57 : vector<1x1x32x8xf32> to vector<1x32x8xf32>
      %c0_48 = arith.constant 0 : index
      %c1_49 = arith.constant 1 : index
      %c0_50 = arith.constant 0 : index
      %59 = vector.load %arg7[%c0_48, %c1_49, %c0_50] : memref<17x34x8xf32, #tpu.memory_space<vmem>>, vector<1x32x8xf32>
      tpu.vector_store %arg7[%c0_48, %c1_49, %c0_50], %58 {strides = array<i32>} : memref<17x34x8xf32, #tpu.memory_space<vmem>>, vector<1x32x8xf32>,
    } else {
    }
    %c0_i32_22 = arith.constant 0 : i32
    %20 = arith.cmpi eq, %arg1, %c0_i32_22 : i32
    %21 = arith.extui %20 : i1 to i32
    %c0_i32_23 = arith.constant 0 : i32
    %22 = arith.cmpi ne, %21, %c0_i32_23 : i32
    scf.if %22 {
      %cst_44 = arith.constant 0.000000e+00 : f32
      %57 = vector.broadcast %cst_44 : f32 to vector<1x32x8xf32>
      %c16 = arith.constant 16 : index
      %c1_45 = arith.constant 1 : index
      %c0_46 = arith.constant 0 : index
      %58 = vector.load %arg8[%c16, %c1_45, %c0_46] : memref<17x34x8xf32, #tpu.memory_space<vmem>>, vector<1x32x8xf32>
      tpu.vector_store %arg8[%c16, %c1_45, %c0_46], %57 {strides = array<i32>} : memref<17x34x8xf32, #tpu.memory_space<vmem>>, vector<1x32x8xf32>,
    } else {
    }
    %c0_i32_24 = arith.constant 0 : i32
    %23 = arith.cmpi slt, %arg1, %c0_i32_24 : i32
    %24 = arith.extui %23 : i1 to i32
    %c0_i32_25 = arith.constant 0 : i32
    %25 = arith.cmpi ne, %24, %c0_i32_25 : i32
    scf.if %25 {
      %c0_44 = arith.constant 0 : index
      %c0_45 = arith.constant 0 : index
      %c0_46 = arith.constant 0 : index
      %c0_47 = arith.constant 0 : index
      %57 = vector.load %arg4[%c0_44, %c0_45, %c0_46, %c0_47] : memref<1x1x32x8xf32, #tpu.memory_space<vmem>>, vector<1x1x32x8xf32>
      %58 = vector.shape_cast %57 : vector<1x1x32x8xf32> to vector<1x32x8xf32>
      %c16 = arith.constant 16 : index
      %c1_48 = arith.constant 1 : index
      %c0_49 = arith.constant 0 : index
      %59 = vector.load %arg8[%c16, %c1_48, %c0_49] : memref<17x34x8xf32, #tpu.memory_space<vmem>>, vector<1x32x8xf32>
      tpu.vector_store %arg8[%c16, %c1_48, %c0_49], %58 {strides = array<i32>} : memref<17x34x8xf32, #tpu.memory_space<vmem>>, vector<1x32x8xf32>,
    } else {
    }
    %c0_26 = arith.constant 0 : index
    %c0_27 = arith.constant 0 : index
    %c0_28 = arith.constant 0 : index
    %26 = tpu.strided_load %arg7[%c0_26, %c0_27, %c0_28] {strides = array<i32: 1, 2, 1>} : memref<17x34x8xf32, #tpu.memory_space<vmem>>, vector<17x17x8xf32>
    %27 = arith.truncf %26 : vector<17x17x8xf32> to vector<17x17x8xbf16>
    %c0_29 = arith.constant 0 : index
    %c1_30 = arith.constant 1 : index
    %c0_31 = arith.constant 0 : index
    %28 = tpu.strided_load %arg7[%c0_29, %c1_30, %c0_31] {strides = array<i32: 1, 2, 1>} : memref<17x34x8xf32, #tpu.memory_space<vmem>>, vector<17x17x8xf32>
    %29 = arith.truncf %28 : vector<17x17x8xf32> to vector<17x17x8xbf16>
    %c0_32 = arith.constant 0 : index
    %c0_33 = arith.constant 0 : index
    %c0_34 = arith.constant 0 : index
    %30 = tpu.strided_load %arg8[%c0_32, %c0_33, %c0_34] {strides = array<i32: 1, 2, 1>} : memref<17x34x8xf32, #tpu.memory_space<vmem>>, vector<17x17x8xf32>
    %31 = arith.truncf %30 : vector<17x17x8xf32> to vector<17x17x8xbf16>
    %c0_35 = arith.constant 0 : index
    %c1_36 = arith.constant 1 : index
    %c0_37 = arith.constant 0 : index
    %32 = tpu.strided_load %arg8[%c0_35, %c1_36, %c0_37] {strides = array<i32: 1, 2, 1>} : memref<17x34x8xf32, #tpu.memory_space<vmem>>, vector<17x17x8xf32>
    %33 = arith.truncf %32 : vector<17x17x8xf32> to vector<17x17x8xbf16>
    %34 = vector.extract_strided_slice %27 {offsets = [0, 0, 0], sizes = [16, 16, 8], strides = [1, 1, 1]} : vector<17x17x8xbf16> to vector<16x16x8xbf16>
    %35 = vector.extract_strided_slice %29 {offsets = [0, 0, 0], sizes = [16, 16, 8], strides = [1, 1, 1]} : vector<17x17x8xbf16> to vector<16x16x8xbf16>
    %36 = vector.extract_strided_slice %27 {offsets = [0, 1, 0], sizes = [16, 16, 8], strides = [1, 1, 1]} : vector<17x17x8xbf16> to vector<16x16x8xbf16>
    %37 = vector.extract_strided_slice %29 {offsets = [0, 1, 0], sizes = [16, 16, 8], strides = [1, 1, 1]} : vector<17x17x8xbf16> to vector<16x16x8xbf16>
    %38 = vector.extract_strided_slice %31 {offsets = [0, 0, 0], sizes = [16, 16, 8], strides = [1, 1, 1]} : vector<17x17x8xbf16> to vector<16x16x8xbf16>
    %39 = vector.extract_strided_slice %33 {offsets = [0, 0, 0], sizes = [16, 16, 8], strides = [1, 1, 1]} : vector<17x17x8xbf16> to vector<16x16x8xbf16>
    %40 = vector.extract_strided_slice %31 {offsets = [0, 1, 0], sizes = [16, 16, 8], strides = [1, 1, 1]} : vector<17x17x8xbf16> to vector<16x16x8xbf16>
    %41 = vector.extract_strided_slice %33 {offsets = [0, 1, 0], sizes = [16, 16, 8], strides = [1, 1, 1]} : vector<17x17x8xbf16> to vector<16x16x8xbf16>
    %42 = vector.extract_strided_slice %27 {offsets = [1, 0, 0], sizes = [16, 16, 8], strides = [1, 1, 1]} : vector<17x17x8xbf16> to vector<16x16x8xbf16>
    %43 = vector.extract_strided_slice %29 {offsets = [1, 0, 0], sizes = [16, 16, 8], strides = [1, 1, 1]} : vector<17x17x8xbf16> to vector<16x16x8xbf16>
    %44 = vector.extract_strided_slice %27 {offsets = [1, 1, 0], sizes = [16, 16, 8], strides = [1, 1, 1]} : vector<17x17x8xbf16> to vector<16x16x8xbf16>
    %45 = vector.extract_strided_slice %29 {offsets = [1, 1, 0], sizes = [16, 16, 8], strides = [1, 1, 1]} : vector<17x17x8xbf16> to vector<16x16x8xbf16>
    %46 = vector.extract_strided_slice %31 {offsets = [1, 0, 0], sizes = [16, 16, 8], strides = [1, 1, 1]} : vector<17x17x8xbf16> to vector<16x16x8xbf16>
    %47 = vector.extract_strided_slice %33 {offsets = [1, 0, 0], sizes = [16, 16, 8], strides = [1, 1, 1]} : vector<17x17x8xbf16> to vector<16x16x8xbf16>
    %48 = vector.extract_strided_slice %31 {offsets = [1, 1, 0], sizes = [16, 16, 8], strides = [1, 1, 1]} : vector<17x17x8xbf16> to vector<16x16x8xbf16>
    %49 = vector.extract_strided_slice %33 {offsets = [1, 1, 0], sizes = [16, 16, 8], strides = [1, 1, 1]} : vector<17x17x8xbf16> to vector<16x16x8xbf16>
    %50 = tpu.concatenate %34, %35, %36, %37, %38, %39, %40, %41, %42, %43, %44, %45, %46, %47, %48, %49 in 2 : vector<16x16x8xbf16>, vector<16x16x8xbf16>, vector<16x16x8xbf16>, vector<16x16x8xbf16>, vector<16x16x8xbf16>, vector<16x16x8xbf16>, vector<16x16x8xbf16>, vector<16x16x8xbf16>, vector<16x16x8xbf16>, vector<16x16x8xbf16>, vector<16x16x8xbf16>, vector<16x16x8xbf16>, vector<16x16x8xbf16>, vector<16x16x8xbf16>, vector<16x16x8xbf16>, vector<16x16x8xbf16> -> vector<16x16x128xbf16>
    %51 = vector.shape_cast %50 : vector<16x16x128xbf16> to vector<256x128xbf16>
    %c0_38 = arith.constant 0 : index
    %c0_39 = arith.constant 0 : index
    %52 = vector.load %arg5[%c0_38, %c0_39] : memref<128x16xbf16, #tpu.memory_space<vmem>>, vector<128x16xbf16>
    %cst_40 = arith.constant dense<0.000000e+00> : vector<256x16xf32>
    %53 = tpu.matmul %51, %52, %cst_40 {dimension_numbers = #tpu.dot_dimension_numbers<[1], [0], [0], [1], [0, 0, 1, 1], [], []>} : vector<256x128xbf16>, vector<128x16xbf16>, vector<256x16xf32> -> vector<256x16xf32>
    %c0_41 = arith.constant 0 : index
    %c0_42 = arith.constant 0 : index
    %c0_43 = arith.constant 0 : index
    %54 = vector.load %arg6[%c0_41, %c0_42, %c0_43] : memref<1x256x16xf32, #tpu.memory_space<vmem>>, vector<1x256x16xf32>
    %55 = vector.shape_cast %54 : vector<1x256x16xf32> to vector<256x16xf32>
    %56 = vector.shape_cast %53 : vector<256x16xf32> to vector<1x256x16xf32>
    tpu.vector_store %arg6[%c0_41, %c0_42, %c0_43], %56 {strides = array<i32>} : memref<1x256x16xf32, #tpu.memory_space<vmem>>, vector<1x256x16xf32>,
    return
  }
  func.func @transform_0(%arg0: i32, %arg1: i32) -> (i32, i32, i32, i32) {
    %c32_i32 = arith.constant 32 : i32
    %0 = arith.muli %arg1, %c32_i32 : i32
    %c1_i32 = arith.constant 1 : i32
    %1 = arith.subi %0, %c1_i32 : i32
    %c0_i32 = arith.constant 0 : i32
    %2 = arith.maxsi %1, %c0_i32 : i32
    %c0_i32_0 = arith.constant 0 : i32
    %c0_i32_1 = arith.constant 0 : i32
    %c0_i32_2 = arith.constant 0 : i32
    return %arg0, %2, %c0_i32_0, %c0_i32_1 : i32, i32, i32, i32
  }
  func.func @transform_1(%arg0: i32, %arg1: i32) -> (i32, i32, i32, i32) {
    %c0_i32 = arith.constant 0 : i32
    %c0_i32_0 = arith.constant 0 : i32
    %c0_i32_1 = arith.constant 0 : i32
    return %arg0, %arg1, %c0_i32, %c0_i32_0 : i32, i32, i32, i32
  }
  func.func @transform_2(%arg0: i32, %arg1: i32) -> (i32, i32, i32, i32) {
    %c32_i32 = arith.constant 32 : i32
    %0 = arith.muli %arg1, %c32_i32 : i32
    %c32_i32_0 = arith.constant 32 : i32
    %1 = arith.addi %0, %c32_i32_0 : i32
    %c31_i32 = arith.constant 31 : i32
    %2 = arith.minsi %1, %c31_i32 : i32
    %c0_i32 = arith.constant 0 : i32
    %c0_i32_1 = arith.constant 0 : i32
    %c0_i32_2 = arith.constant 0 : i32
    return %arg0, %2, %c0_i32, %c0_i32_1 : i32, i32, i32, i32
  }
  func.func @transform_3(%arg0: i32, %arg1: i32) -> (i32, i32) {
    %c0_i32 = arith.constant 0 : i32
    %c0_i32_0 = arith.constant 0 : i32
    %c0_i32_1 = arith.constant 0 : i32
    return %c0_i32, %c0_i32_0 : i32, i32
  }
  func.func @transform_4(%arg0: i32, %arg1: i32) -> (i32, i32, i32) {
    %c0_i32 = arith.constant 0 : i32
    %c0_i32_0 = arith.constant 0 : i32
    return %arg0, %arg1, %c0_i32 : i32, i32, i32
  }
}

</mosaic_0001>

<bundles_post_ra>
// kernel: downsample.1
= control target key start
LH: loop header
LB: loop body
LE: loop exit
PB: predicated region body
PF: predicated region fallthrough
CT: control target
= control target key end

     0   :  { %9 = vsyncpa [#allocation5], 0  ;;  %s6152_s0 = inlined_call_operand.vmem [shape: f32[2,32,32,8], index: 0, kind: input, shape index: {}, may-alias: {0,1,2}]   ;;  %s6153_s1 = inlined_call_operand.vmem [shape: f32[2,32,32,8], index: 1, kind: input, shape index: {}, may-alias: {0,1,2}]   ;;  %s6154_s2 = inlined_call_operand.vmem [shape: f32[2,32,32,8], index: 2, kind: input, shape index: {}, may-alias: {0,1,2}]   ;;  %s6155_s3 = inlined_call_operand.vmem [shape: bf16[128,16], index: 3, kind: input, shape index: {}]   ;;  %s6156_s4 = inlined_call_operand.hbm [shape: f32[2,256,16], index: 4, kind: output, shape index: {}]  }
   0x1   :  { %11 = vsyncpa [#allocation5 + $0x1], 0  ;;  %s3857_s15 = smov 0   ;;  %s3859_s16 = smov 0  }
   0x2   :  { %s3861_s17 = smov 0   ;;  %s3863_s0 = smov 0  }
   0x3   :  { %s3865_s18 = smov 0   ;;  %s3867_s19 = smov 0  }
   0x4 LB: > { %s3536_s2 = sadd.s32 4294967295, %s3812_s19   ;;  %s3537_s20 = sadd.s32 4294967294, %s3812_s19   ;;  %s3812_s19 = sphi %s3867_s19, %s17_s19   ;;  %s3808_s18 = sphi %s3865_s18, %s6486_s18   ;;  %s3804_s0 = sphi %s3863_s0, %s6485_s0   ;;  %s3800_s17 = sphi %s3861_s17, %s6484_s17   ;;  %s3796_s16 = sphi %s3859_s16, %s6483_s16   ;;  %s3792_s15 = sphi %s3857_s15, %s6482_s15  }
   0x5   : > { %s29_s21 = sadd.s32 1, %s3808_s18  ;;  %s159_s22 = sadd.s32 1, %s3800_s17 }
   0x6   : > { %p31_p0 = scmp.ge.s32.totalorder %s29_s21, 2  ;;  %p169_p1 = scmp.ne.s32.totalorder %s3800_s17, %s3796_s16 }
   0x7   : > { %p170_p2 = scmp.eq.s32.totalorder %s3536_s2, 1  ;;  %p175_p3 = scmp.ne.s32.totalorder %s3796_s16, %s3792_s15 }
   0x8   : > { %s6488_s21 = smov (%p31_p0, %s29_s21), 0  ;;  %p176_p5 = scmp.eq.s32.totalorder %s3537_s20, 1 }
   0x9   : > { %p3897_p4 = por %p170_p2, %p169_p1  ;;  %s154_s24 = ssub.s32 %s3808_s18, %s6488_s21 }
   0xa   : > { %p3540_p6 = scmp.ge.s32.totalorder %s3812_s19, 1  ;;  %p157_p7 = scmp.eq.s32.totalorder %s154_s24, 0 }
   0xb   : > { %p3904_p8 = por %p176_p5, %p175_p3  ;;  %p251_p9 = scmp.lt.s32.totalorder %s3812_s19, 3 }
   0xc   : > { %s3910_s26 = scalar_select %p157_p7, %s3800_s17, %s159_s22  }
   0xd   : > { %p252_p10 = pnand %p3540_p6, %p251_p9 }
   0xf   : > { %255 = sbr.rel (%p252_p10) target bundleno = 903 (0x387), region = 36 }
  0x16   : > { %vm552_vm0 = vcmask 64512   ;;  %p326_p11 = scmp.lt.s32.totalorder %s3804_s0, 1  ;;  %vm355_vm1 = vcmask 57344   ;;  %v3814_v0 = vmov 0.0   ;;  %s3815_s6 = smov 8   ;;  %vm2661_vm3 = vcmask 130048  }
  0x17   : > { %686 = vst.msk [vmem:[#allocation2 + $0x1] sm:$0xff] %vm552_vm0, %v3814_v0  ;;  %687 = vst.msk [vmem:[#allocation2 + $0x9] sm:$0xff] %vm552_vm0, %v3814_v0  ;;  %vm1313_vm2 = vsmask.f32 7424  ;;  %s3816_s7 = smov 16   ;;  %s3817_s8 = smov 24  }
  0x18   : > { %688 = vst.msk [vmem:[#allocation2 + $0x11] sm:$0xff] %vm552_vm0, %v3814_v0  ;;  %689 = vst.msk [vmem:[#allocation2 + $0x19] sm:$0xff] %vm552_vm0, %v3814_v0  ;;  %s327_s27 = scalar_select %p326_p11, %s3804_s0, 1  ;;  %vm2694_vm4 = vcmask 195584   ;;  %vm2727_vm5 = vcmask 261120   ;;  %vm2760_vm6 = vcmask 326656  }
  0x19   : > { %706 = vst.msk [vmem:[#allocation3 + $0x281] sm:$0xff] %vm552_vm0, %v3814_v0  ;;  %707 = vst.msk [vmem:[#allocation3 + $0x289] sm:$0xff] %vm552_vm0, %v3814_v0  ;;  %s3818_s9 = smov 32   ;;  %s3819_s10 = smov 40   ;;  %vm2793_vm7 = vcmask 392192   ;;  %vm2826_vm8 = vcmask 457728  }
  0x1a   : > { %708 = vst.msk [vmem:[#allocation3 + $0x291] sm:$0xff] %vm552_vm0, %v3814_v0  ;;  %709 = vst.msk [vmem:[#allocation3 + $0x299] sm:$0xff] %vm552_vm0, %v3814_v0  ;;  %s3562_s28 = sshll.u32 %s327_s27, 10  ;;  %s3820_s11 = smov 48   ;;  %vm2859_vm9 = vcmask 523264   ;;  %vm2892_vm10 = vcmask 588800  }
  0x1b   : > { %356 = vst.msk [vmem:[#allocation2] sm:$0x1] %vm355_vm1, %v3814_v0  ;;  %357 = vst.msk [vmem:[#allocation2 + $0x28] sm:$0x1] %vm355_vm1, %v3814_v0  ;;  %s4071_s5 = scalar_lea.vmem %s6153_s1, %s3562_s28  ;;  %s3821_s12 = smov 56   ;;  %vm2925_vm11 = vcmask 654336  }
  0x1c   : > { %358 = vst.msk [vmem:[#allocation2 + $0x50] sm:$0x1] %vm355_vm1, %v3814_v0  ;;  %359 = vst.msk [vmem:[#allocation2 + $0x78] sm:$0x1] %vm355_vm1, %v3814_v0  ;;  %v436_v1 = vld [vmem:[%s4071_s5 + $0x60] sm:$0xff]  ;;  %v437_v2 = vld [vmem:[%s4071_s5 + $0x68] sm:$0xff] }
  0x1d   : > { %360 = vst.msk [vmem:[#allocation2 + $0xa0] sm:$0x1] %vm355_vm1, %v3814_v0  ;;  %361 = vst.msk [vmem:[#allocation2 + $0xc8] sm:$0x1] %vm355_vm1, %v3814_v0  ;;  %v438_v3 = vld [vmem:[%s4071_s5 + $0x70] sm:$0xff]  ;;  %v439_v4 = vld [vmem:[%s4071_s5 + $0x78] sm:$0xff] }
  0x1e   : > { %362 = vst.msk [vmem:[#allocation2 + $0xf0] sm:$0x1] %vm355_vm1, %v3814_v0  ;;  %363 = vst.msk [vmem:[#allocation2 + $0x118] sm:$0x1] %vm355_vm1, %v3814_v0  ;;  %v428_v5 = vld [vmem:[%s4071_s5 + $0x20] sm:$0xff]  ;;  %v429_v6 = vld [vmem:[%s4071_s5 + $0x28] sm:$0xff] }
  0x1f   : > { %364 = vst.msk [vmem:[#allocation2 + $0x140] sm:$0x1] %vm355_vm1, %v3814_v0  ;;  %365 = vst.msk [vmem:[#allocation2 + $0x168] sm:$0x1] %vm355_vm1, %v3814_v0  ;;  %v859_v7 = vld [vmem:[#allocation2 + $0x1] ss:$2 sm:$0xff] }
  0x20   : > { %366 = vst.msk [vmem:[#allocation2 + $0x190] sm:$0x1] %vm355_vm1, %v3814_v0  ;;  %367 = vst.msk [vmem:[#allocation2 + $0x1b8] sm:$0x1] %vm355_vm1, %v3814_v0  ;;  %v861_v8 = vld [vmem:[#allocation2 + $0x11] ss:$2 sm:$0xff] }
  0x21   : > { %368 = vst.msk [vmem:[#allocation2 + $0x1e0] sm:$0x1] %vm355_vm1, %v3814_v0  ;;  %369 = vst.msk [vmem:[#allocation2 + $0x208] sm:$0x1] %vm355_vm1, %v3814_v0  ;;  %v430_v9 = vld [vmem:[%s4071_s5 + $0x30] sm:$0xff]  ;;  %v4086_v10 = vpack.c.bf16 %v861_v8, %v859_v7  ;;  %v431_v11 = vld [vmem:[%s4071_s5 + $0x38] sm:$0xff] }
  0x22   : > { %370 = vst.msk [vmem:[#allocation2 + $0x230] sm:$0x1] %vm355_vm1, %v3814_v0  ;;  %371 = vst.msk [vmem:[#allocation2 + $0x258] sm:$0x1] %vm355_vm1, %v3814_v0  ;;  %v444_v12 = vld [vmem:[%s4071_s5 + $0xa0] sm:$0xff]  ;;  %v445_v13 = vld [vmem:[%s4071_s5 + $0xa8] sm:$0xff] }
  0x23   : > { %372 = vst.msk [vmem:[#allocation2 + $0x280] sm:$0x1] %vm355_vm1, %v3814_v0  ;;  %373 = vst.msk [vmem:[#allocation2 + $0x21] sm:$0x1] %vm355_vm1, %v3814_v0  ;;  %v446_v14 = vld [vmem:[%s4071_s5 + $0xb0] sm:$0xff]  ;;  %v447_v15 = vld [vmem:[%s4071_s5 + $0xb8] sm:$0xff]  ;;  %1281 = vrot.lane.b32.xlu0 %v4086_v10, %s3815_s6 }
  0x24   : > { %374 = vst.msk [vmem:[#allocation2 + $0x49] sm:$0x1] %vm355_vm1, %v3814_v0  ;;  %375 = vst.msk [vmem:[#allocation2 + $0x71] sm:$0x1] %vm355_vm1, %v3814_v0  ;;  %v452_v16 = vld [vmem:[%s4071_s5 + $0xe0] sm:$0xff]  ;;  %v453_v17 = vld [vmem:[%s4071_s5 + $0xe8] sm:$0xff] }
  0x25   : > { %376 = vst.msk [vmem:[#allocation2 + $0x99] sm:$0x1] %vm355_vm1, %v3814_v0  ;;  %377 = vst.msk [vmem:[#allocation2 + $0xc1] sm:$0x1] %vm355_vm1, %v3814_v0  ;;  %v454_v18 = vld [vmem:[%s4071_s5 + $0xf0] sm:$0xff]  ;;  %v455_v19 = vld [vmem:[%s4071_s5 + $0xf8] sm:$0xff] }
  0x26   : > { %378 = vst.msk [vmem:[#allocation2 + $0xe9] sm:$0x1] %vm355_vm1, %v3814_v0  ;;  %379 = vst.msk [vmem:[#allocation2 + $0x111] sm:$0x1] %vm355_vm1, %v3814_v0  ;;  %v460_v20 = vld [vmem:[%s4071_s5 + $0x120] sm:$0xff]  ;;  %v461_v21 = vld [vmem:[%s4071_s5 + $0x128] sm:$0xff] }
  0x27   : > { %380 = vst.msk [vmem:[#allocation2 + $0x139] sm:$0x1] %vm355_vm1, %v3814_v0  ;;  %381 = vst.msk [vmem:[#allocation2 + $0x161] sm:$0x1] %vm355_vm1, %v3814_v0  ;;  %v462_v22 = vld [vmem:[%s4071_s5 + $0x130] sm:$0xff]  ;;  %v463_v23 = vld [vmem:[%s4071_s5 + $0x138] sm:$0xff] }
  0x28   : > { %382 = vst.msk [vmem:[#allocation2 + $0x189] sm:$0x1] %vm355_vm1, %v3814_v0  ;;  %383 = vst.msk [vmem:[#allocation2 + $0x1b1] sm:$0x1] %vm355_vm1, %v3814_v0  ;;  %v468_v24 = vld [vmem:[%s4071_s5 + $0x160] sm:$0xff]  ;;  %v469_v25 = vld [vmem:[%s4071_s5 + $0x168] sm:$0xff] }
  0x29   : > { %384 = vst.msk [vmem:[#allocation2 + $0x1d9] sm:$0x1] %vm355_vm1, %v3814_v0  ;;  %385 = vst.msk [vmem:[#allocation2 + $0x201] sm:$0x1] %vm355_vm1, %v3814_v0  ;;  %v470_v27 = vld [vmem:[%s4071_s5 + $0x170] sm:$0xff]  ;;  %v471_v28 = vld [vmem:[%s4071_s5 + $0x178] sm:$0xff] }
  0x2a   : > { %386 = vst.msk [vmem:[#allocation2 + $0x229] sm:$0x1] %vm355_vm1, %v3814_v0  ;;  %387 = vst.msk [vmem:[#allocation2 + $0x251] sm:$0x1] %vm355_vm1, %v3814_v0  ;;  %v476_v31 = vld [vmem:[%s4071_s5 + $0x1a0] sm:$0xff]  ;;  %v477_v33 = vld [vmem:[%s4071_s5 + $0x1a8] sm:$0xff] }
  0x2b   : > { %388 = vst.msk [vmem:[#allocation2 + $0x279] sm:$0x1] %vm355_vm1, %v3814_v0  ;;  %389 = vst.msk [vmem:[#allocation2 + $0x2a1] sm:$0x1] %vm355_vm1, %v3814_v0  ;;  %v478_v34 = vld [vmem:[%s4071_s5 + $0x1b0] sm:$0xff]  ;;  %v479_v35 = vld [vmem:[%s4071_s5 + $0x1b8] sm:$0xff] }
  0x2c   : > { %390 = vst.msk [vmem:[#allocation3] sm:$0x1] %vm355_vm1, %v3814_v0  ;;  %391 = vst.msk [vmem:[#allocation3 + $0x28] sm:$0x1] %vm355_vm1, %v3814_v0  ;;  %v484_v38 = vld [vmem:[%s4071_s5 + $0x1e0] sm:$0xff]  ;;  %v485_v41 = vld [vmem:[%s4071_s5 + $0x1e8] sm:$0xff] }
  0x2d   : > { %392 = vst.msk [vmem:[#allocation3 + $0x50] sm:$0x1] %vm355_vm1, %v3814_v0  ;;  %393 = vst.msk [vmem:[#allocation3 + $0x78] sm:$0x1] %vm355_vm1, %v3814_v0  ;;  %v486_v42 = vld [vmem:[%s4071_s5 + $0x1f0] sm:$0xff]  ;;  %v487_v46 = vld [vmem:[%s4071_s5 + $0x1f8] sm:$0xff] }
  0x2e   : > { %394 = vst.msk [vmem:[#allocation3 + $0xa0] sm:$0x1] %vm355_vm1, %v3814_v0  ;;  %395 = vst.msk [vmem:[#allocation3 + $0xc8] sm:$0x1] %vm355_vm1, %v3814_v0  ;;  %v492_v49 = vld [vmem:[%s4071_s5 + $0x220] sm:$0xff]  ;;  %v493_v50 = vld [vmem:[%s4071_s5 + $0x228] sm:$0xff] }
  0x2f   : > { %396 = vst.msk [vmem:[#allocation3 + $0xf0] sm:$0x1] %vm355_vm1, %v3814_v0  ;;  %397 = vst.msk [vmem:[#allocation3 + $0x118] sm:$0x1] %vm355_vm1, %v3814_v0  ;;  %v494_v53 = vld [vmem:[%s4071_s5 + $0x230] sm:$0xff]  ;;  %v495_v56 = vld [vmem:[%s4071_s5 + $0x238] sm:$0xff] }
  0x30   : > { %398 = vst.msk [vmem:[#allocation3 + $0x140] sm:$0x1] %vm355_vm1, %v3814_v0  ;;  %399 = vst.msk [vmem:[#allocation3 + $0x168] sm:$0x1] %vm355_vm1, %v3814_v0  ;;  %v500_v57 = vld [vmem:[%s4071_s5 + $0x260] sm:$0xff]  ;;  %v1541_v58 = vshll.u32 %v4086_v10, 16 }
  0x31   : > { %400 = vst.msk [vmem:[#allocation3 + $0x190] sm:$0x1] %vm355_vm1, %v3814_v0  ;;  %401 = vst.msk [vmem:[#allocation3 + $0x1b8] sm:$0x1] %vm355_vm1, %v3814_v0  ;;  %v501_v59 = vld [vmem:[%s4071_s5 + $0x268] sm:$0xff]  ;;  %v502_v60 = vld [vmem:[%s4071_s5 + $0x270] sm:$0xff] }
  0x32   : > { %402 = vst.msk [vmem:[#allocation3 + $0x1e0] sm:$0x1] %vm355_vm1, %v3814_v0  ;;  %403 = vst.msk [vmem:[#allocation3 + $0x208] sm:$0x1] %vm355_vm1, %v3814_v0  ;;  %v503_v61 = vld [vmem:[%s4071_s5 + $0x278] sm:$0xff]  ;;  %v516_v8 = vld [vmem:[%s4071_s5 + $0x2e0] sm:$0xff] }
  0x33   : > { %404 = vst.msk [vmem:[#allocation3 + $0x230] sm:$0x1] %vm355_vm1, %v3814_v0  ;;  %405 = vst.msk [vmem:[#allocation3 + $0x258] sm:$0x1] %vm355_vm1, %v3814_v0  ;;  %s3822_s13 = smov 64   ;;  %s3823_s14 = smov 72  }
  0x34   : > { %406 = vst.msk [vmem:[#allocation3 + $0x280] sm:$0x1] %vm355_vm1, %v3814_v0  ;;  %407 = vst.msk [vmem:[#allocation3 + $0x21] sm:$0x1] %vm355_vm1, %v3814_v0  ;;  %s3824_s2 = smov 80   ;;  %s3825_s20 = smov 88  }
  0x35   : > { %408 = vst.msk [vmem:[#allocation3 + $0x49] sm:$0x1] %vm355_vm1, %v3814_v0  ;;  %409 = vst.msk [vmem:[#allocation3 + $0x71] sm:$0x1] %vm355_vm1, %v3814_v0  ;;  %s3826_s27 = smov 96   ;;  %s3828_s30 = smov 112  }
  0x36   : > { %410 = vst.msk [vmem:[#allocation3 + $0x99] sm:$0x1] %vm355_vm1, %v3814_v0  ;;  %411 = vst.msk [vmem:[#allocation3 + $0xc1] sm:$0x1] %vm355_vm1, %v3814_v0  ;;  %s3829_s24 = smov 120   ;;  %vm2958_vm12 = vcmask 719872  }
  0x37   : > { %412 = vst.msk [vmem:[#allocation3 + $0xe9] sm:$0x1] %vm355_vm1, %v3814_v0  ;;  %413 = vst.msk [vmem:[#allocation3 + $0x111] sm:$0x1] %vm355_vm1, %v3814_v0  ;;  %vm2991_vm13 = vcmask 785408   ;;  %vm3024_vm14 = vcmask 850944  }
  0x38   : > { %414 = vst.msk [vmem:[#allocation3 + $0x139] sm:$0x1] %vm355_vm1, %v3814_v0  ;;  %415 = vst.msk [vmem:[#allocation3 + $0x161] sm:$0x1] %vm355_vm1, %v3814_v0  ;;  %vm3057_vm15 = vcmask 916480   ;;  %s3830_s28 = smov [#allocation4]  }
  0x39   : > { %416 = vst.msk [vmem:[#allocation3 + $0x189] sm:$0x1] %vm355_vm1, %v3814_v0  ;;  %417 = vst.msk [vmem:[#allocation3 + $0x1b1] sm:$0x1] %vm355_vm1, %v3814_v0  ;;  %s3738_s29 = sshll.u32 %s3830_s28, 4  ;;  %s3739_s29 = int_to_ptr.vmem [resolvable:$false] %s3738_s29 }
  0x3a   : > { %418 = vst.msk [vmem:[#allocation3 + $0x1d9] sm:$0x1] %vm355_vm1, %v3814_v0  ;;  %419 = vst.msk [vmem:[#allocation3 + $0x201] sm:$0x1] %vm355_vm1, %v3814_v0 }
  0x3b   : > { %420 = vst.msk [vmem:[#allocation3 + $0x229] sm:$0x1] %vm355_vm1, %v3814_v0  ;;  %421 = vst.msk [vmem:[#allocation3 + $0x251] sm:$0x1] %vm355_vm1, %v3814_v0 }
  0x3c   : > { %422 = vst.msk [vmem:[#allocation3 + $0x279] sm:$0x1] %vm355_vm1, %v3814_v0  ;;  %423 = vst.msk [vmem:[#allocation3 + $0x2a1] sm:$0x1] %vm355_vm1, %v3814_v0  ;;  %vm3090_vm1 = vcmask 982016  }
  0x3d   : > { %622 = vst.msk [vmem:[#allocation2 + $0x51] sm:$0xff] %vm552_vm0, %v436_v1  ;;  %623 = vst.msk [vmem:[#allocation2 + $0x59] sm:$0xff] %vm552_vm0, %v437_v2  ;;  %v508_v1 = vld [vmem:[%s4071_s5 + $0x2a0] sm:$0xff]  ;;  %v509_v2 = vld [vmem:[%s4071_s5 + $0x2a8] sm:$0xff] }
  0x3e   : > { %624 = vst.msk [vmem:[#allocation2 + $0x61] sm:$0xff] %vm552_vm0, %v438_v3  ;;  %625 = vst.msk [vmem:[#allocation2 + $0x69] sm:$0xff] %vm552_vm0, %v439_v4  ;;  %v510_v3 = vld [vmem:[%s4071_s5 + $0x2b0] sm:$0xff]  ;;  %v511_v4 = vld [vmem:[%s4071_s5 + $0x2b8] sm:$0xff] }
  0x3f   : > { %618 = vst.msk [vmem:[#allocation2 + $0x29] sm:$0xff] %vm552_vm0, %v428_v5  ;;  %619 = vst.msk [vmem:[#allocation2 + $0x31] sm:$0xff] %vm552_vm0, %v429_v6 }
  0x40   : > { %620 = vst.msk [vmem:[#allocation2 + $0x39] sm:$0xff] %vm552_vm0, %v430_v9  ;;  %621 = vst.msk [vmem:[#allocation2 + $0x41] sm:$0xff] %vm552_vm0, %v431_v11  ;;  %v517_v9 = vld [vmem:[%s4071_s5 + $0x2e8] sm:$0xff] }
  0x41   : > { %626 = vst.msk [vmem:[#allocation2 + $0x79] sm:$0xff] %vm552_vm0, %v444_v12  ;;  %627 = vst.msk [vmem:[#allocation2 + $0x81] sm:$0xff] %vm552_vm0, %v445_v13  ;;  %v518_v13 = vld [vmem:[%s4071_s5 + $0x2f0] sm:$0xff] }
  0x42   : > { %628 = vst.msk [vmem:[#allocation2 + $0x89] sm:$0xff] %vm552_vm0, %v446_v14  ;;  %629 = vst.msk [vmem:[#allocation2 + $0x91] sm:$0xff] %vm552_vm0, %v447_v15  ;;  %v519_v14 = vld [vmem:[%s4071_s5 + $0x2f8] sm:$0xff]  ;;  %v1539_v15 = vshrl.u32 %v4086_v10, 16 }
  0x43   : > { %630 = vst.msk [vmem:[#allocation2 + $0xa1] sm:$0xff] %vm552_vm0, %v452_v16  ;;  %631 = vst.msk [vmem:[#allocation2 + $0xa9] sm:$0xff] %vm552_vm0, %v453_v17  ;;  %v4199_v16 = vrot.slane %v1541_v58, 1  ;;  %v725_v58 = vld [vmem:[#allocation2 + $0x10] ss:$2 sm:$0xff] }
  0x44   : > { %632 = vst.msk [vmem:[#allocation2 + $0xb1] sm:$0xff] %vm552_vm0, %v454_v18  ;;  %633 = vst.msk [vmem:[#allocation2 + $0xb9] sm:$0xff] %vm552_vm0, %v455_v19  ;;  %v871_v26 = vld [vmem:[#allocation2 + $0x51] ss:$2 sm:$0xff]  ;;  %v524_v19 = vld [vmem:[%s4071_s5 + $0x320] sm:$0xff] }
  0x45   : > { %634 = vst.msk [vmem:[#allocation2 + $0xc9] sm:$0xff] %vm552_vm0, %v460_v20  ;;  %635 = vst.msk [vmem:[#allocation2 + $0xd1] sm:$0xff] %vm552_vm0, %v461_v21  ;;  %v873_v29 = vld [vmem:[#allocation2 + $0x61] ss:$2 sm:$0xff] }
  0x46   : > { %636 = vst.msk [vmem:[#allocation2 + $0xd9] sm:$0xff] %vm552_vm0, %v462_v22  ;;  %637 = vst.msk [vmem:[#allocation2 + $0xe1] sm:$0xff] %vm552_vm0, %v463_v23  ;;  %v865_v30 = vld [vmem:[#allocation2 + $0x29] ss:$2 sm:$0xff]  ;;  %v4126_v32 = vpack.c.bf16 %v873_v29, %v871_v26 }
  0x47   : > { %638 = vst.msk [vmem:[#allocation2 + $0xf1] sm:$0xff] %vm552_vm0, %v468_v24  ;;  %639 = vst.msk [vmem:[#allocation2 + $0xf9] sm:$0xff] %vm552_vm0, %v469_v25  ;;  %v867_v36 = vld [vmem:[#allocation2 + $0x39] ss:$2 sm:$0xff]  ;;  %v525_v20 = vld [vmem:[%s4071_s5 + $0x328] sm:$0xff] }
  0x48   : > { %640 = vst.msk [vmem:[#allocation2 + $0x101] sm:$0xff] %vm552_vm0, %v470_v27  ;;  %641 = vst.msk [vmem:[#allocation2 + $0x109] sm:$0xff] %vm552_vm0, %v471_v28  ;;  %v877_v37 = vld [vmem:[#allocation2 + $0x79] ss:$2 sm:$0xff]  ;;  %1285 = vrot.lane.b32.xlu1 %v4126_v32, %s3815_s6  ;;  %v4138_v39 = vpack.c.bf16 %v867_v36, %v865_v30  ;;  %v1565_v5 = vshll.u32 %v4126_v32, 16  ;;  %v526_v23 = vld [vmem:[%s4071_s5 + $0x330] sm:$0xff] }
  0x49   : > { %642 = vst.msk [vmem:[#allocation2 + $0x119] sm:$0xff] %vm552_vm0, %v476_v31  ;;  %643 = vst.msk [vmem:[#allocation2 + $0x121] sm:$0xff] %vm552_vm0, %v477_v33  ;;  %v879_v40 = vld [vmem:[#allocation2 + $0x89] ss:$2 sm:$0xff]  ;;  %v527_v24 = vld [vmem:[%s4071_s5 + $0x338] sm:$0xff]  ;;  %v1563_v26 = vshrl.u32 %v4126_v32, 16 }
  0x4a   : > { %644 = vst.msk [vmem:[#allocation2 + $0x129] sm:$0xff] %vm552_vm0, %v478_v34  ;;  %645 = vst.msk [vmem:[#allocation2 + $0x131] sm:$0xff] %vm552_vm0, %v479_v35  ;;  %v4143_v43 = vpack.c.bf16 %v879_v40, %v877_v37  ;;  %v883_v44 = vld [vmem:[#allocation2 + $0xa1] ss:$2 sm:$0xff]  ;;  %1283 = vrot.lane.b32.xlu0 %v4138_v39, %s3815_s6  ;;  %v1553_v11 = vshll.u32 %v4138_v39, 16  ;;  %v4217_v27 = vrot.slane %v1565_v5, 1 }
  0x4b   : > { %646 = vst.msk [vmem:[#allocation2 + $0x141] sm:$0xff] %vm552_vm0, %v484_v38  ;;  %v885_v45 = vld [vmem:[#allocation2 + $0xb1] ss:$2 sm:$0xff]  ;;  %647 = vst.msk [vmem:[#allocation2 + $0x149] sm:$0xff] %vm552_vm0, %v485_v41  ;;  %v532_v25 = vld [vmem:[%s4071_s5 + $0x360] sm:$0xff]  ;;  %v1551_v28 = vshrl.u32 %v4138_v39, 16 }
  0x4c   : > { %6259 = vst [vmem:[#allocation7_spill] sm:$0xff] %v4143_v43  ;;  %648 = vst.msk [vmem:[#allocation2 + $0x151] sm:$0xff] %vm552_vm0, %v486_v42  ;;  %v4150_v47 = vpack.c.bf16 %v885_v45, %v883_v44  ;;  %v889_v48 = vld [vmem:[#allocation2 + $0xc9] ss:$2 sm:$0xff]  ;;  %1287 = vrot.lane.b32.xlu1 %v4143_v43, %s3815_s6  ;;  %v1577_v22 = vshll.u32 %v4143_v43, 16  ;;  %v4227_v33 = vrot.slane %v1553_v11, 1 }
  0x4d   : > { %649 = vst.msk [vmem:[#allocation2 + $0x159] sm:$0xff] %vm552_vm0, %v487_v46  ;;  %v891_v51 = vld [vmem:[#allocation2 + $0xd9] ss:$2 sm:$0xff]  ;;  %650 = vst.msk [vmem:[#allocation2 + $0x169] sm:$0xff] %vm552_vm0, %v492_v49  ;;  %v533_v30 = vld [vmem:[%s4071_s5 + $0x368] sm:$0xff] }
  0x4e   : > { %6260 = vst [vmem:[#allocation8_spill] sm:$0xff] %v4150_v47  ;;  %v895_v52 = vld [vmem:[#allocation2 + $0xf1] ss:$2 sm:$0xff]  ;;  %651 = vst.msk [vmem:[#allocation2 + $0x171] sm:$0xff] %vm552_vm0, %v493_v50  ;;  %v4160_v54 = vpack.c.bf16 %v891_v51, %v889_v48  ;;  %1289 = vrot.lane.b32.xlu0 %v4150_v47, %s3815_s6  ;;  %v1589_v21 = vshll.u32 %v4150_v47, 16  ;;  %v540_v42 = vld [vmem:[%s4071_s5 + $0x3a0] sm:$0xff] }
  0x4f   : > { %v897_v55 = vld [vmem:[#allocation2 + $0x101] ss:$2 sm:$0xff]  ;;  %652 = vst.msk [vmem:[#allocation2 + $0x179] sm:$0xff] %vm552_vm0, %v494_v53  ;;  %653 = vst.msk [vmem:[#allocation2 + $0x181] sm:$0xff] %vm552_vm0, %v495_v56  ;;  %v534_v31 = vld [vmem:[%s4071_s5 + $0x370] sm:$0xff]  ;;  %v4246_v48 = vrot.slane %v1577_v22, 1 }
  0x50   : > { %6261 = vst [vmem:[#allocation9_spill] sm:$0xff] %v4160_v54  ;;  %654 = vst.msk [vmem:[#allocation2 + $0x191] sm:$0xff] %vm552_vm0, %v500_v57  ;;  %v4173_v62 = vpack.c.bf16 %v897_v55, %v895_v52  ;;  %v901_v63 = vld [vmem:[#allocation2 + $0x119] ss:$2 sm:$0xff]  ;;  %1291 = vrot.lane.b32.xlu1 %v4160_v54, %s3815_s6  ;;  %v541_v44 = vld [vmem:[%s4071_s5 + $0x3a8] sm:$0xff]  ;;  %v4244_v46 = vrot.slane %v1589_v21, 1 }
  0x51   : > { %v903_v0 = vld [vmem:[#allocation2 + $0x129] ss:$2 sm:$0xff]  ;;  %655 = vst.msk [vmem:[#allocation2 + $0x199] sm:$0xff] %vm552_vm0, %v501_v59  ;;  %656 = vst.msk [vmem:[#allocation2 + $0x1a1] sm:$0xff] %vm552_vm0, %v502_v60  ;;  %v535_v38 = vld [vmem:[%s4071_s5 + $0x378] sm:$0xff] }
  0x52   : > { %6262 = vst [vmem:[#allocation10_spill] sm:$0xff] %v4173_v62  ;;  %657 = vst.msk [vmem:[#allocation2 + $0x1a9] sm:$0xff] %vm552_vm0, %v503_v61  ;;  %v4186_v6 = vpack.c.bf16 %v903_v0, %v901_v63  ;;  %v907_v7 = vld [vmem:[#allocation2 + $0x141] ss:$2 sm:$0xff]  ;;  %1293 = vrot.lane.b32.xlu0 %v4173_v62, %s3815_s6  ;;  %v542_v45 = vld [vmem:[%s4071_s5 + $0x3b0] sm:$0xff] }
  0x53   : > { %658 = vst.msk [vmem:[#allocation2 + $0x1b9] sm:$0xff] %vm552_vm0, %v508_v1  ;;  %659 = vst.msk [vmem:[#allocation2 + $0x1c1] sm:$0xff] %vm552_vm0, %v509_v2  ;;  %v543_v52 = vld [vmem:[%s4071_s5 + $0x3b8] sm:$0xff]  ;;  %v723_v57 = vld [vmem:[#allocation2] ss:$2 sm:$0xff] }
  0x54   : > { %6263 = vst [vmem:[#allocation11_spill] sm:$0xff] %v4186_v6  ;;  %660 = vst.msk [vmem:[#allocation2 + $0x1c9] sm:$0xff] %vm552_vm0, %v510_v3  ;;  %v909_v12 = vld [vmem:[#allocation2 + $0x151] ss:$2 sm:$0xff]  ;;  %1295 = vrot.lane.b32.xlu1 %v4186_v6, %s3815_s6  ;;  %v4259_v61 = vpack.c.bf16 %v725_v58, %v723_v57  ;;  %v735_v3 = vld [vmem:[#allocation2 + $0x50] ss:$2 sm:$0xff]  ;;  %v4292_v57 = vor.u32 %v4199_v16, %v1539_v15  ;;  %v4297_v58 = vor.u32 %v4217_v27, %v1563_v26 }
  0x55   : > { %661 = vst.msk [vmem:[#allocation2 + $0x1d1] sm:$0xff] %vm552_vm0, %v511_v4  ;;  %662 = vst.msk [vmem:[#allocation2 + $0x1e1] sm:$0xff] %vm552_vm0, %v516_v8  ;;  %v4203_v17 = vpack.c.bf16 %v909_v12, %v907_v7  ;;  %v913_v18 = vld [vmem:[#allocation2 + $0x169] ss:$2 sm:$0xff]  ;;  %v737_v4 = vld [vmem:[#allocation2 + $0x60] ss:$2 sm:$0xff] }
  0x56   : > { %663 = vst.msk [vmem:[#allocation2 + $0x1e9] sm:$0xff] %vm552_vm0, %v517_v9  ;;  %664 = vst.msk [vmem:[#allocation2 + $0x1f1] sm:$0xff] %vm552_vm0, %v518_v13  ;;  %v915_v29 = vld [vmem:[#allocation2 + $0x179] ss:$2 sm:$0xff]  ;;  %v1315_v7 = vshrl.u32 %v4259_v61, 16  ;;  %v1317_v8 = vshll.u32 %v4259_v61, 16  ;;  %v4268_v9 = vpack.c.bf16 %v737_v4, %v735_v3 }
  0x57   : > { %6264 = vst [vmem:[#allocation12_spill] sm:$0xff] %v4203_v17  ;;  %665 = vst.msk [vmem:[#allocation2 + $0x1f9] sm:$0xff] %vm552_vm0, %v519_v14  ;;  %v4230_v35 = vpack.c.bf16 %v915_v29, %v913_v18  ;;  %1297 = vrot.lane.b32.xlu0 %v4203_v17, %s3815_s6  ;;  %v727_v60 = vld [vmem:[#allocation2 + $0x20] ss:$2 sm:$0x1] }
  0x58   : > { %666 = vst.msk [vmem:[#allocation2 + $0x209] sm:$0xff] %vm552_vm0, %v524_v19  ;;  %667 = vst.msk [vmem:[#allocation2 + $0x211] sm:$0xff] %vm552_vm0, %v525_v20  ;;  %v919_v36 = vld [vmem:[#allocation2 + $0x191] ss:$2 sm:$0xff]  ;;  %v825_v2 = vpack.c.bf16 %v727_v60, %v727_v60  ;;  %v729_v11 = vld [vmem:[#allocation2 + $0x28] ss:$2 sm:$0xff] }
  0x59   : > { %668 = vst.msk [vmem:[#allocation2 + $0x219] sm:$0xff] %vm552_vm0, %v526_v23  ;;  %669 = vst.msk [vmem:[#allocation2 + $0x221] sm:$0xff] %vm552_vm0, %v527_v24  ;;  %v921_v37 = vld [vmem:[#allocation2 + $0x1a1] ss:$2 sm:$0xff]  ;;  %1299 = vrot.lane.b32.xlu1 %v4230_v35, %s3815_s6  ;;  %v1319_v20 = vrot.slane %v1317_v8, 1  ;;  %v1339_v22 = vshrl.u32 %v4268_v9, 16 }
  0x5a   : > { %670 = vst.msk [vmem:[#allocation2 + $0x231] sm:$0xff] %vm552_vm0, %v532_v25  ;;  %671 = vst.msk [vmem:[#allocation2 + $0x239] sm:$0xff] %vm552_vm0, %v533_v30  ;;  %v4238_v41 = vpack.c.bf16 %v921_v37, %v919_v36  ;;  %v925_v50 = vld [vmem:[#allocation2 + $0x1b9] ss:$2 sm:$0xff]  ;;  %v1322_v14 = vshll.u32 %v825_v2, 16  ;;  %v1341_v23 = vshll.u32 %v4268_v9, 16 }
  0x5b   : > { %672 = vst.msk [vmem:[#allocation2 + $0x241] sm:$0xff] %vm552_vm0, %v534_v31  ;;  %673 = vst.msk [vmem:[#allocation2 + $0x249] sm:$0xff] %vm552_vm0, %v535_v38  ;;  %v739_v18 = vld [vmem:[#allocation2 + $0x70] ss:$2 sm:$0x1]  ;;  %v424_v24 = vld [vmem:[%s4071_s5] sm:$0xff]  ;;  %v1320_v38 = vor.u32 %v1319_v20, %v1315_v7 }
  0x5c   : > { %v927_v51 = vld [vmem:[#allocation2 + $0x1c9] ss:$2 sm:$0xff]  ;;  %674 = vst.msk [vmem:[#allocation2 + $0x259] sm:$0xff] %vm552_vm0, %v540_v42  ;;  %675 = vst.msk [vmem:[#allocation2 + $0x261] sm:$0xff] %vm552_vm0, %v541_v44  ;;  %1301 = vrot.lane.b32.xlu0 %v4238_v41, %s3815_s6  ;;  %v829_v21 = vpack.c.bf16 %v739_v18, %v739_v18  ;;  %v1324_v30 = vrot.slane %v1322_v14, 1  ;;  %v1343_v42 = vrot.slane %v1341_v23, 1 }
  0x5d   : > { %676 = vst.msk [vmem:[#allocation2 + $0x269] sm:$0xff] %vm552_vm0, %v542_v45  ;;  %v4256_v55 = vpack.c.bf16 %v927_v51, %v925_v50  ;;  %v931_v56 = vld [vmem:[#allocation2 + $0x1e1] ss:$2 sm:$0xff]  ;;  %677 = vst.msk [vmem:[#allocation2 + $0x271] sm:$0xff] %vm552_vm0, %v543_v52  ;;  %v731_v31 = vld [vmem:[#allocation2 + $0x38] ss:$2 sm:$0xff] }
  0x5e   : > { %v933_v59 = vld [vmem:[#allocation2 + $0x1f1] ss:$2 sm:$0xff]  ;;  %6266 = vst [vmem:[#allocation14_spill] sm:$0xff] %v4259_v61  ;;  %553 = vst.msk [vmem:[#allocation3 + $0x1] sm:$0xff] %vm552_vm0, %v424_v24  ;;  %v1346_v44 = vshll.u32 %v829_v21, 16  ;;  %v4283_v45 = vpack.c.bf16 %v731_v31, %v729_v11  ;;  %v1344_v60 = vor.u32 %v1343_v42, %v1339_v22  ;;  %v1325_v8 = vsel %vm1313_vm2, %v1320_v38, %v1324_v30  ;;  %v440_v34 = vld [vmem:[%s4071_s5 + $0x80] sm:$0xff] }
  0x5f   : > { %6265 = vst [vmem:[#allocation13_spill] sm:$0xff] %v4256_v55  ;;  %v4264_v0 = vpack.c.bf16 %v933_v59, %v931_v56  ;;  %v937_v1 = vld [vmem:[#allocation2 + $0x209] ss:$2 sm:$0xff]  ;;  %1303 = vrot.lane.b32.xlu1 %v4256_v55, %s3815_s6  ;;  %v747_v50 = vld [vmem:[#allocation2 + $0xa0] ss:$2 sm:$0xff]  ;;  %561 = vst.msk [vmem:[#allocation3 + $0x51] sm:$0xff] %vm552_vm0, %v440_v34 }
  0x60   : > { %v939_v5 = vld [vmem:[#allocation2 + $0x219] ss:$2 sm:$0xff]  ;;  %v733_v52 = vld [vmem:[#allocation2 + $0x48] ss:$2 sm:$0x1]  ;;  %v1327_v10 = vshrl.u32 %v4283_v45, 16 }
  0x61   : > { %6267 = vst [vmem:[#allocation15_spill] sm:$0xff] %v4264_v0  ;;  %v4272_v12 = vpack.c.bf16 %v939_v5, %v937_v1  ;;  %v943_v13 = vld [vmem:[#allocation2 + $0x231] ss:$2 sm:$0xff]  ;;  %1305 = vrot.lane.b32.xlu0 %v4264_v0, %s3815_s6  ;;  %v749_v56 = vld [vmem:[#allocation2 + $0xb0] ss:$2 sm:$0xff]  ;;  %v1348_v1 = vrot.slane %v1346_v44, 1  ;;  %v827_v2 = vpack.c.bf16 %v733_v52, %v733_v52  ;;  %v4303_v5 = vor.u32 %v4227_v33, %v1551_v28 }
  0x62   : > { %v945_v19 = vld [vmem:[#allocation2 + $0x241] ss:$2 sm:$0xff]  ;;  %v751_v3 = vld [vmem:[#allocation2 + $0xc0] ss:$2 sm:$0x1]  ;;  %v1329_v15 = vshll.u32 %v4283_v45, 16  ;;  %v4309_v16 = vpack.c.bf16 %v749_v56, %v747_v50 }
  0x63   : > { %6268 = vst [vmem:[#allocation16_spill] sm:$0xff] %v4272_v12  ;;  %v4279_v25 = vpack.c.bf16 %v945_v19, %v943_v13  ;;  %v949_v29 = vld [vmem:[#allocation2 + $0x259] ss:$2 sm:$0xff]  ;;  %1307 = vrot.lane.b32.xlu1 %v4272_v12, %s3815_s6  ;;  %v741_v4 = vld [vmem:[#allocation2 + $0x78] ss:$2 sm:$0xff]  ;;  %v833_v26 = vpack.c.bf16 %v751_v3, %v751_v3  ;;  %v4313_v11 = vsel %vm1313_vm2, %v1344_v60, %v1348_v1  ;;  %v1334_v13 = vshll.u32 %v827_v2, 16 }
  0x64   : > { %v951_v37 = vld [vmem:[#allocation2 + $0x269] ss:$2 sm:$0xff]  ;;  %v743_v27 = vld [vmem:[#allocation2 + $0x88] ss:$2 sm:$0xff]  ;;  %v1331_v18 = vrot.slane %v1329_v15, 1  ;;  %v1363_v19 = vshrl.u32 %v4309_v16, 16 }
  0x65   : > { %6269 = vst [vmem:[#allocation17_spill] sm:$0xff] %v4279_v25  ;;  %v4287_v51 = vpack.c.bf16 %v951_v37, %v949_v29  ;;  %1309 = vrot.lane.b32.xlu0 %v4279_v25, %s3815_s6  ;;  %v759_v7 = vld [vmem:[#allocation2 + $0xf0] ss:$2 sm:$0xff]  ;;  %v4315_v33 = vpack.c.bf16 %v743_v27, %v741_v4  ;;  %v761_v14 = vld [vmem:[#allocation2 + $0x100] ss:$2 sm:$0xff]  ;;  %v1365_v20 = vshll.u32 %v4309_v16, 16 }
  0x66   : > { %v745_v28 = vld [vmem:[#allocation2 + $0x98] ss:$2 sm:$0x1]  ;;  %v1370_v21 = vshll.u32 %v833_v26, 16  ;;  %v753_v22 = vld [vmem:[#allocation2 + $0xc8] ss:$2 sm:$0xff]  ;;  %v1332_v37 = vor.u32 %v1331_v18, %v1327_v10  ;;  %v4324_v44 = vpack.c.bf16 %v761_v14, %v759_v7 }
  0x67   : > { %6270 = vst [vmem:[#allocation18_spill] sm:$0xff] %v4287_v51  ;;  %1311 = vrot.lane.b32.xlu1 %v4287_v51, %s3815_s6  ;;  %v1336_v23 = vrot.slane %v1334_v13, 1  ;;  %v831_v24 = vpack.c.bf16 %v745_v28, %v745_v28  ;;  %v1351_v29 = vshrl.u32 %v4315_v33, 16  ;;  %v1353_v30 = vshll.u32 %v4315_v33, 16  ;;  %v755_v50 = vld [vmem:[#allocation2 + $0xd8] ss:$2 sm:$0xff] }
  0x68   : > { %v763_v31 = vld [vmem:[#allocation2 + $0x110] ss:$2 sm:$0x1]  ;;  %v1367_v38 = vrot.slane %v1365_v20, 1  ;;  %v1372_v42 = vrot.slane %v1370_v21, 1  ;;  %6271 = vst [vmem:[#allocation19_spill] sm:$0xff] %v4324_v44  ;;  %v4326_v3 = vpack.c.bf16 %v755_v50, %v753_v22 }
  0x69   : > { %1506 = vrot.lane.b32.xlu0 %v1325_v8, %s3816_s7  ;;  %v771_v52 = vld [vmem:[#allocation2 + $0x140] ss:$2 sm:$0xff]  ;;  %v1355_v56 = vrot.slane %v1353_v30, 1  ;;  %v1358_v60 = vshll.u32 %v831_v24, 16  ;;  %v837_v1 = vpack.c.bf16 %v763_v31, %v763_v31  ;;  %v4330_v15 = vsel %vm1313_vm2, %v1332_v37, %v1336_v23  ;;  %v773_v7 = vld [vmem:[#allocation2 + $0x150] ss:$2 sm:$0xff] }
  0x6a   : > { %v757_v2 = vld [vmem:[#allocation2 + $0xe8] ss:$2 sm:$0x1]  ;;  %6272 = vst [vmem:[#allocation20_spill] sm:$0xff] %v4326_v3  ;;  %v1368_v26 = vor.u32 %v1367_v38, %v1363_v19  ;;  %v1387_v10 = vshrl.u32 %v4324_v44, 16  ;;  %v1389_v27 = vshll.u32 %v4324_v44, 16  ;;  %v4350_v50 = vpack.c.bf16 %v773_v7, %v771_v52 }
  0x6b   : > { %v425_v4 = vld [vmem:[%s4071_s5 + $0x8] sm:$0xff]  ;;  %v765_v8 = vld [vmem:[#allocation2 + $0x118] ss:$2 sm:$0xff]  ;;  %1508 = vrot.lane.b32.xlu1 %v4330_v15, %s3816_s7  ;;  %v1356_v13 = vor.u32 %v1355_v56, %v1351_v29  ;;  %v1360_v28 = vrot.slane %v1358_v60, 1  ;;  %v1394_v14 = vshll.u32 %v837_v1, 16  ;;  %v835_v18 = vpack.c.bf16 %v757_v2, %v757_v2  ;;  %v426_v21 = vld [vmem:[%s4071_s5 + $0x10] sm:$0xff] }
  0x6c   : > { %554 = vst.msk [vmem:[#allocation3 + $0x9] sm:$0xff] %vm552_vm0, %v425_v4  ;;  %v775_v20 = vld [vmem:[#allocation2 + $0x160] ss:$2 sm:$0x1]  ;;  %v4341_v19 = vsel %vm1313_vm2, %v1368_v26, %v1372_v42  ;;  %v1391_v22 = vrot.slane %v1389_v27, 1  ;;  %v1375_v23 = vshrl.u32 %v4326_v3, 16 }
  0x6d   : > { %1510 = vrot.lane.b32.xlu0 %v4313_v11, %s3816_s7  ;;  %6273 = vst [vmem:[#allocation21_spill] sm:$0xff] %v4341_v19  ;;  %v1377_v24 = vshll.u32 %v4326_v3, 16  ;;  %v767_v30 = vld [vmem:[#allocation2 + $0x128] ss:$2 sm:$0xff]  ;;  %v427_v29 = vld [vmem:[%s4071_s5 + $0x18] sm:$0xff]  ;;  %555 = vst.msk [vmem:[#allocation3 + $0x11] sm:$0xff] %vm552_vm0, %v426_v21  ;;  %v4348_v31 = vsel %vm1313_vm2, %v1356_v13, %v1360_v28  ;;  %v841_v2 = vpack.c.bf16 %v775_v20, %v775_v20 }
  0x6e   : > { %6274 = vst [vmem:[#allocation22_spill] sm:$0xff] %v4348_v31  ;;  %v1396_v37 = vrot.slane %v1394_v14, 1  ;;  %v1382_v38 = vshll.u32 %v835_v18, 16  ;;  %6275 = vst [vmem:[#allocation23_spill] sm:$0xff] %v4350_v50  ;;  %v432_v42 = vld [vmem:[%s4071_s5 + $0x40] sm:$0xff]  ;;  %v1392_v60 = vor.u32 %v1391_v22, %v1387_v10  ;;  %v4354_v4 = vpack.c.bf16 %v767_v30, %v765_v8  ;;  %v433_v59 = vld [vmem:[%s4071_s5 + $0x48] sm:$0xff] }
  0x6f   : > { %v769_v56 = vld [vmem:[#allocation2 + $0x138] ss:$2 sm:$0x1]  ;;  %556 = vst.msk [vmem:[#allocation3 + $0x19] sm:$0xff] %vm552_vm0, %v427_v29  ;;  %v1379_v1 = vrot.slane %v1377_v24, 1  ;;  %557 = vst.msk [vmem:[#allocation3 + $0x29] sm:$0xff] %vm552_vm0, %v432_v42  ;;  %1512 = vrot.lane.b32.xlu1 %v4348_v31, %s3816_s7 }
  0x70   : > { %6276 = vst [vmem:[#allocation24_spill] sm:$0xff] %v4354_v4  ;;  %v783_v26 = vld [vmem:[#allocation2 + $0x190] ss:$2 sm:$0xff]  ;;  %v785_v27 = vld [vmem:[#allocation2 + $0x1a0] ss:$2 sm:$0xff]  ;;  %v1384_v13 = vrot.slane %v1382_v38, 1  ;;  %v839_v28 = vpack.c.bf16 %v769_v56, %v769_v56  ;;  %v4366_v10 = vsel %vm1313_vm2, %v1392_v60, %v1396_v37 }
  0x71   : > { %v1411_v52 = vshrl.u32 %v4350_v50, 16  ;;  %v1413_v7 = vshll.u32 %v4350_v50, 16  ;;  %v787_v14 = vld [vmem:[#allocation2 + $0x1b0] ss:$2 sm:$0x1]  ;;  %558 = vst.msk [vmem:[#allocation3 + $0x31] sm:$0xff] %vm552_vm0, %v433_v59  ;;  %1514 = vrot.lane.b32.xlu0 %v4341_v19, %s3816_s7  ;;  %v1380_v8 = vor.u32 %v1379_v1, %v1375_v23  ;;  %v4370_v38 = vpack.c.bf16 %v785_v27, %v783_v26 }
  0x72   : > { %6277 = vst [vmem:[#allocation25_spill] sm:$0xff] %v4366_v10  ;;  %v1418_v18 = vshll.u32 %v841_v2, 16  ;;  %v1399_v20 = vshrl.u32 %v4354_v4, 16  ;;  %v777_v21 = vld [vmem:[#allocation2 + $0x168] ss:$2 sm:$0xff]  ;;  %v1401_v30 = vshll.u32 %v4354_v4, 16  ;;  %v845_v37 = vpack.c.bf16 %v787_v14, %v787_v14 }
  0x73   : > { %v779_v22 = vld [vmem:[#allocation2 + $0x178] ss:$2 sm:$0xff]  ;;  %v1415_v24 = vrot.slane %v1413_v7, 1  ;;  %v1406_v29 = vshll.u32 %v839_v28, 16  ;;  %v4373_v56 = vsel %vm1313_vm2, %v1380_v8, %v1384_v13  ;;  %v434_v2 = vld [vmem:[%s4071_s5 + $0x50] sm:$0xff]  ;;  %v1435_v26 = vshrl.u32 %v4370_v38, 16 }
  0x74   : > { %v781_v59 = vld [vmem:[#allocation2 + $0x188] ss:$2 sm:$0x1]  ;;  %6278 = vst [vmem:[#allocation26_spill] sm:$0xff] %v4373_v56  ;;  %v1420_v42 = vrot.slane %v1418_v18, 1  ;;  %v4375_v60 = vpack.c.bf16 %v779_v22, %v777_v21  ;;  %1516 = vrot.lane.b32.xlu1 %v4373_v56, %s3816_s7  ;;  %v1403_v63 = vrot.slane %v1401_v30, 1 }
  0x75   : > { %v795_v23 = vld [vmem:[#allocation2 + $0x1e0] ss:$2 sm:$0xff]  ;;  %v797_v1 = vld [vmem:[#allocation2 + $0x1f0] ss:$2 sm:$0xff]  ;;  %v1416_v7 = vor.u32 %v1415_v24, %v1411_v52  ;;  %v1408_v28 = vrot.slane %v1406_v29, 1  ;;  %559 = vst.msk [vmem:[#allocation3 + $0x39] sm:$0xff] %vm552_vm0, %v434_v2  ;;  %1518 = vrot.lane.b32.xlu0 %v4366_v10, %s3816_s7  ;;  %v843_v8 = vpack.c.bf16 %v781_v59, %v781_v59 }
  0x76   : > { %v799_v27 = vld [vmem:[#allocation2 + $0x200] ss:$2 sm:$0x1]  ;;  %v1437_v13 = vshll.u32 %v4370_v38, 16  ;;  %v1442_v14 = vshll.u32 %v845_v37, 16  ;;  %v1423_v18 = vshrl.u32 %v4375_v60, 16  ;;  %v1404_v24 = vor.u32 %v1403_v63, %v1399_v20 }
  0x77   : > { %v789_v21 = vld [vmem:[#allocation2 + $0x1b8] ss:$2 sm:$0xff]  ;;  %v4388_v52 = vsel %vm1313_vm2, %v1416_v7, %v1420_v42  ;;  %v1425_v30 = vshll.u32 %v4375_v60, 16  ;;  %v4391_v29 = vpack.c.bf16 %v797_v1, %v795_v23  ;;  %v791_v2 = vld [vmem:[#allocation2 + $0x1c8] ss:$2 sm:$0xff]  ;;  %v1430_v36 = vshll.u32 %v843_v8, 16 }
  0x78   : > { %v435_v22 = vld [vmem:[%s4071_s5 + $0x58] sm:$0xff]  ;;  %6279 = vst [vmem:[#allocation27_spill] sm:$0xff] %v4388_v52  ;;  %v1439_v37 = vrot.slane %v1437_v13, 1  ;;  %v1444_v59 = vrot.slane %v1442_v14, 1  ;;  %v849_v40 = vpack.c.bf16 %v799_v27, %v799_v27  ;;  %v4396_v42 = vsel %vm1313_vm2, %v1404_v24, %v1408_v28  ;;  %v809_v1 = vld [vmem:[#allocation2 + $0x240] ss:$2 sm:$0xff] }
  0x79   : > { %6280 = vst [vmem:[#allocation28_spill] sm:$0xff] %v4391_v29  ;;  %v793_v49 = vld [vmem:[#allocation2 + $0x1d8] ss:$2 sm:$0x1]  ;;  %560 = vst.msk [vmem:[#allocation3 + $0x41] sm:$0xff] %vm552_vm0, %v435_v22  ;;  %v1427_v63 = vrot.slane %v1425_v30, 1  ;;  %1522 = vrot.lane.b32.xlu0 %v4388_v52, %s3816_s7  ;;  %1520 = vrot.lane.b32.xlu1 %v4396_v42, %s3816_s7  ;;  %v4406_v14 = vpack.c.bf16 %v791_v2, %v789_v21 }
  0x7a   : > { %v807_v53 = vld [vmem:[#allocation2 + $0x230] ss:$2 sm:$0xff]  ;;  %6281 = vst [vmem:[#allocation29_spill] sm:$0xff] %v4396_v42  ;;  %v1459_v20 = vshrl.u32 %v4391_v29, 16  ;;  %v1461_v23 = vshll.u32 %v4391_v29, 16  ;;  %v441_v7 = vld [vmem:[%s4071_s5 + $0x88] sm:$0xff]  ;;  %v1440_v27 = vor.u32 %v1439_v37, %v1435_v26  ;;  %v847_v10 = vpack.c.bf16 %v793_v49, %v793_v49 }
  0x7b   : > { %v1432_v13 = vrot.slane %v1430_v36, 1  ;;  %v1466_v28 = vshll.u32 %v849_v40, 16  ;;  %6282 = vst [vmem:[#allocation30_spill] sm:$0xff] %v4406_v14  ;;  %v811_v8 = vld [vmem:[#allocation2 + $0x250] ss:$2 sm:$0x1]  ;;  %v1428_v24 = vor.u32 %v1427_v63, %v1423_v18  ;;  %v4410_v34 = vpack.c.bf16 %v809_v1, %v807_v53 }
  0x7c   : > { %v442_v22 = vld [vmem:[%s4071_s5 + $0x90] sm:$0xff]  ;;  %562 = vst.msk [vmem:[#allocation3 + $0x59] sm:$0xff] %vm552_vm0, %v441_v7  ;;  %v1463_v30 = vrot.slane %v1461_v23, 1  ;;  %v803_v56 = vld [vmem:[#allocation2 + $0x218] ss:$2 sm:$0xff]  ;;  %v4415_v26 = vsel %vm1313_vm2, %v1440_v27, %v1444_v59  ;;  %v1447_v36 = vshrl.u32 %v4406_v14, 16  ;;  %v853_v37 = vpack.c.bf16 %v811_v8, %v811_v8 }
  0x7d   : > { %6283 = vst [vmem:[#allocation31_spill] sm:$0xff] %v4410_v34  ;;  %v801_v50 = vld [vmem:[#allocation2 + $0x208] ss:$2 sm:$0xff]  ;;  %v443_v52 = vld [vmem:[%s4071_s5 + $0x98] sm:$0xff]  ;;  %563 = vst.msk [vmem:[#allocation3 + $0x61] sm:$0xff] %vm552_vm0, %v442_v22  ;;  %v1468_v40 = vrot.slane %v1466_v28, 1  ;;  %v4421_v49 = vsel %vm1313_vm2, %v1428_v24, %v1432_v13  ;;  %1526 = vrot.lane.b32.xlu0 %v4415_v26, %s3816_s7 }
  0x7e   : > { %v1449_v21 = vshll.u32 %v4406_v14, 16  ;;  %v805_v2 = vld [vmem:[#allocation2 + $0x228] ss:$2 sm:$0x1]  ;;  %564 = vst.msk [vmem:[#allocation3 + $0x69] sm:$0xff] %vm552_vm0, %v443_v52  ;;  %v1464_v53 = vor.u32 %v1463_v30, %v1459_v20  ;;  %v1454_v18 = vshll.u32 %v847_v10, 16  ;;  %1524 = vrot.lane.b32.xlu1 %v4421_v49, %s3816_s7  ;;  %v4429_v7 = vpack.c.bf16 %v803_v56, %v801_v50 }
  0x7f   : > { %v863_v63 = vld [vmem:[#allocation2 + $0x21] ss:$2 sm:$0x1]  ;;  %v813_v23 = vld [vmem:[#allocation2 + $0x258] ss:$2 sm:$0xff]  ;;  %v1483_v1 = vshrl.u32 %v4410_v34, 16  ;;  %v851_v8 = vpack.c.bf16 %v805_v2, %v805_v2 }
  0x80   : > { %v1451_v59 = vrot.slane %v1449_v21, 1  ;;  %v1485_v52 = vshll.u32 %v4410_v34, 16  ;;  %6284 = vst [vmem:[#allocation32_spill] sm:$0xff] %v4429_v7  ;;  %v815_v27 = vld [vmem:[#allocation2 + $0x268] ss:$2 sm:$0xff]  ;;  %v448_v20 = vld [vmem:[%s4071_s5 + $0xc0] sm:$0xff]  ;;  %v4433_v10 = vsel %vm1313_vm2, %v1464_v53, %v1468_v40  ;;  %v961_v53 = vpack.c.bf16 %v863_v63, %v863_v63 }
  0x81   : > { %6285 = vst [vmem:[#allocation33_spill] sm:$0xff] %v4433_v10  ;;  %v1456_v13 = vrot.slane %v1454_v18, 1  ;;  %v1490_v28 = vshll.u32 %v853_v37, 16  ;;  %v817_v22 = vld [vmem:[#allocation2 + $0x278] ss:$2 sm:$0x1]  ;;  %v4440_v18 = vpack.c.bf16 %v815_v27, %v813_v23  ;;  %1530 = vrot.lane.b32.xlu0 %v4433_v10, %s3816_s7 }
  0x82   : > { %v449_v24 = vld [vmem:[%s4071_s5 + $0xc8] sm:$0xff]  ;;  %565 = vst.msk [vmem:[#allocation3 + $0x79] sm:$0xff] %vm552_vm0, %v448_v20  ;;  %v1452_v30 = vor.u32 %v1451_v59, %v1447_v36  ;;  %v1487_v21 = vrot.slane %v1485_v52, 1  ;;  %v1471_v42 = vshrl.u32 %v4429_v7, 16  ;;  %v1473_v50 = vshll.u32 %v4429_v7, 16  ;;  %v450_v2 = vld [vmem:[%s4071_s5 + $0xd0] sm:$0xff] }
  0x83   : > { %v875_v56 = vld [vmem:[#allocation2 + $0x71] ss:$2 sm:$0x1]  ;;  %566 = vst.msk [vmem:[#allocation3 + $0x81] sm:$0xff] %vm552_vm0, %v449_v24  ;;  %v1492_v61 = vrot.slane %v1490_v28, 1  ;;  %v1478_v40 = vshll.u32 %v851_v8, 16  ;;  %v855_v20 = vpack.c.bf16 %v817_v22, %v817_v22 }
  0x84   : > { %6286 = vst [vmem:[#allocation34_spill] sm:$0xff] %v4440_v18  ;;  %v869_v37 = vld [vmem:[#allocation2 + $0x49] ss:$2 sm:$0x1]  ;;  %v4446_v36 = vsel %vm1313_vm2, %v1452_v30, %v1456_v13  ;;  %v1488_v59 = vor.u32 %v1487_v21, %v1483_v1  ;;  %v1475_v52 = vrot.slane %v1473_v50, 1  ;;  %567 = vst.msk [vmem:[#allocation3 + $0x89] sm:$0xff] %vm552_vm0, %v450_v2  ;;  %v965_v22 = vpack.c.bf16 %v875_v56, %v875_v56 }
  0x85   : > { %6287 = vst [vmem:[#allocation35_spill] sm:$0xff] %v4446_v36  ;;  %v887_v19 = vld [vmem:[#allocation2 + $0xc1] ss:$2 sm:$0x1]  ;;  %1528 = vrot.lane.b32.xlu1 %v4446_v36, %s3816_s7  ;;  %v1480_v63 = vrot.slane %v1478_v40, 1  ;;  %v1546_v23 = vshll.u32 %v961_v53, 16  ;;  %v963_v50 = vpack.c.bf16 %v869_v37, %v869_v37 }
  0x86   : > { %v1495_v27 = vshrl.u32 %v4440_v18, 16  ;;  %v1497_v28 = vshll.u32 %v4440_v18, 16  ;;  %v4454_v8 = vsel %vm1313_vm2, %v1488_v59, %v1492_v61  ;;  %v1476_v13 = vor.u32 %v1475_v52, %v1471_v42  ;;  %v881_v24 = vld [vmem:[#allocation2 + $0x99] ss:$2 sm:$0x1]  ;;  %v456_v56 = vld [vmem:[%s4071_s5 + $0x100] sm:$0xff] }
  0x87   : > { %6288 = vst [vmem:[#allocation36_spill] sm:$0xff] %v4454_v8  ;;  %v1502_v1 = vshll.u32 %v855_v20, 16  ;;  %v1548_v30 = vrot.slane %v1546_v23, 1  ;;  %v969_v2 = vpack.c.bf16 %v887_v19, %v887_v19  ;;  %v899_v10 = vld [vmem:[#allocation2 + $0x111] ss:$2 sm:$0x1]  ;;  %1534 = vrot.lane.b32.xlu0 %v4454_v8, %s3816_s7  ;;  %v967_v42 = vpack.c.bf16 %v881_v24, %v881_v24 }
  0x88   : > { %v1499_v21 = vrot.slane %v1497_v28, 1  ;;  %v451_v40 = vld [vmem:[%s4071_s5 + $0xd8] sm:$0xff]  ;;  %v4460_v53 = vsel %vm1313_vm2, %v1476_v13, %v1480_v63  ;;  %v1570_v59 = vshll.u32 %v965_v22, 16  ;;  %v893_v52 = vld [vmem:[#allocation2 + $0xe9] ss:$2 sm:$0x1] }
  0x89   : > { %6289 = vst [vmem:[#allocation37_spill] sm:$0xff] %v4460_v53  ;;  %v1504_v61 = vrot.slane %v1502_v1, 1  ;;  %568 = vst.msk [vmem:[#allocation3 + $0x91] sm:$0xff] %vm552_vm0, %v451_v40  ;;  %1532 = vrot.lane.b32.xlu1 %v4460_v53, %s3816_s7  ;;  %v1549_v19 = vsel %vm1313_vm2, %v4292_v57, %v1548_v30  ;;  %v1558_v20 = vshll.u32 %v963_v50, 16  ;;  %v1594_v23 = vshll.u32 %v969_v2, 16  ;;  %v457_v63 = vld [vmem:[%s4071_s5 + $0x108] sm:$0xff] }
  0x8a   : > { %v1500_v37 = vor.u32 %v1499_v21, %v1495_v27  ;;  %569 = vst.msk [vmem:[#allocation3 + $0xa1] sm:$0xff] %vm552_vm0, %v456_v56  ;;  %v1572_v28 = vrot.slane %v1570_v59, 1  ;;  %v1582_v13 = vshll.u32 %v967_v42, 16  ;;  %v973_v1 = vpack.c.bf16 %v899_v10, %v899_v10  ;;  %v911_v24 = vld [vmem:[#allocation2 + $0x161] ss:$2 sm:$0x1] }
  0x8b   : > { %v971_v22 = vpack.c.bf16 %v893_v52, %v893_v52  ;;  %v458_v40 = vld [vmem:[%s4071_s5 + $0x110] sm:$0xff]  ;;  %570 = vst.msk [vmem:[#allocation3 + $0xa9] sm:$0xff] %vm552_vm0, %v457_v63  ;;  %v1560_v53 = vrot.slane %v1558_v20, 1  ;;  %v6291_v57 = vshrl.u32 %v4150_v47, 16  ;;  %v6292_v30 = vshll.u32 %v4173_v62, 16  ;;  %v459_v2 = vld [vmem:[%s4071_s5 + $0x118] sm:$0xff]  ;;  %1730 = vrot.lane.b32.xlu0 %v1549_v19, %s3817_s8 }
  0x8c   : > { %v4473_v8 = vsel %vm1313_vm2, %v1500_v37, %v1504_v61  ;;  %v905_v50 = vld [vmem:[#allocation2 + $0x139] ss:$2 sm:$0x1]  ;;  %571 = vst.msk [vmem:[#allocation3 + $0xb1] sm:$0xff] %vm552_vm0, %v458_v40  ;;  %v6293_v10 = vshrl.u32 %v4143_v43, 16  ;;  %v6294_v59 = vshll.u32 %v4160_v54, 16  ;;  %v4495_v19 = vsel %vm1313_vm2, %v4297_v58, %v1572_v28 }
  0x8d   : > { %6290 = vst [vmem:[#allocation38_spill] sm:$0xff] %v4473_v8  ;;  %v1592_v27 = vor.u32 %v4244_v46, %v6291_v57  ;;  %v1615_v21 = vrot.slane %v6292_v30, 1  ;;  %v1637_v46 = vshll.u32 %v4203_v17, 16  ;;  %v1625_v52 = vshll.u32 %v4186_v6, 16  ;;  %572 = vst.msk [vmem:[#allocation3 + $0xb9] sm:$0xff] %vm552_vm0, %v459_v2  ;;  %1536 = vrot.lane.b32.xlu1 %v4473_v8, %s3816_s7 }
  0x8e   : > { %v1580_v61 = vor.u32 %v4246_v48, %v6293_v10  ;;  %v1603_v42 = vrot.slane %v6294_v59, 1  ;;  %v923_v56 = vld [vmem:[#allocation2 + $0x1b1] ss:$2 sm:$0x1]  ;;  %v1596_v37 = vrot.slane %v1594_v23, 1  ;;  %v1618_v48 = vshll.u32 %v973_v1, 16 }
  0x8f   : > { %v977_v20 = vpack.c.bf16 %v911_v24, %v911_v24  ;;  %v917_v63 = vld [vmem:[#allocation2 + $0x189] ss:$2 sm:$0x1]  ;;  %v4499_v40 = vsel %vm1313_vm2, %v4303_v5, %v1560_v53  ;;  %v1584_v57 = vrot.slane %v1582_v13, 1  ;;  %v1606_v30 = vshll.u32 %v971_v22, 16  ;;  %v464_v59 = vld [vmem:[%s4071_s5 + $0x140] sm:$0xff]  ;;  %1734 = vrot.lane.b32.xlu0 %v4495_v19, %s3817_s8 }
  0x90   : > { %v975_v10 = vpack.c.bf16 %v905_v50, %v905_v50  ;;  %v6295_v2 = vshrl.u32 %v4173_v62, 16  ;;  %v1635_v8 = vshrl.u32 %v4203_v17, 16  ;;  %v981_v31 = vpack.c.bf16 %v923_v56, %v923_v56  ;;  %573 = vst.msk [vmem:[#allocation3 + $0xc9] sm:$0xff] %vm552_vm0, %v464_v59  ;;  %v935_v1 = vld [vmem:[#allocation2 + $0x201] ss:$2 sm:$0x1] }
  0x91   : > { %v1661_v58 = vshll.u32 %v4238_v41, 16  ;;  %v6296_v5 = vshrl.u32 %v4160_v54, 16  ;;  %v1627_v23 = vrot.slane %v1625_v52, 1  ;;  %v979_v28 = vpack.c.bf16 %v917_v63, %v917_v63  ;;  %1732 = vrot.lane.b32.xlu1 %v4499_v40, %s3817_s8  ;;  %v929_v56 = vld [vmem:[#allocation2 + $0x1d9] ss:$2 sm:$0x1] }
  0x92   : > { %v1616_v36 = vor.u32 %v1615_v21, %v6295_v2  ;;  %v1649_v13 = vshll.u32 %v4230_v35, 16  ;;  %v4515_v22 = vsel %vm1313_vm2, %v1592_v27, %v1596_v37  ;;  %v1620_v24 = vrot.slane %v1618_v48, 1  ;;  %v465_v37 = vld [vmem:[%s4071_s5 + $0x148] sm:$0xff] }
  0x93   : > { %v1604_v53 = vor.u32 %v1603_v42, %v6296_v5  ;;  %6297 = vst [vmem:[#allocation39_spill] sm:$0xff] %v4515_v22  ;;  %v1639_v21 = vrot.slane %v1637_v46, 1  ;;  %v1642_v50 = vshll.u32 %v977_v20, 16  ;;  %v4518_v59 = vsel %vm1313_vm2, %v1580_v61, %v1584_v57  ;;  %1738 = vrot.lane.b32.xlu0 %v4515_v22, %s3817_s8  ;;  %v4532_v57 = vld [vmem:[#allocation2 + $0x251] ss:$2 sm:$0x1] }
  0x94   : > { %6298 = vst [vmem:[#allocation40_spill] sm:$0xff] %v4518_v59  ;;  %v1608_v42 = vrot.slane %v1606_v30, 1  ;;  %v4520_v52 = vshll.u32 %v975_v10, 16  ;;  %v1647_v63 = vshrl.u32 %v4230_v35, 16  ;;  %v1659_v2 = vshrl.u32 %v4238_v41, 16  ;;  %v466_v30 = vld [vmem:[%s4071_s5 + $0x150] sm:$0xff] }
  0x95   : > { %v1663_v5 = vrot.slane %v1661_v58, 1  ;;  %v4524_v17 = vshll.u32 %v981_v31, 16  ;;  %v985_v27 = vpack.c.bf16 %v935_v1, %v935_v1  ;;  %v1651_v46 = vrot.slane %v1649_v13, 1  ;;  %574 = vst.msk [vmem:[#allocation3 + $0xd1] sm:$0xff] %vm552_vm0, %v465_v37  ;;  %1736 = vrot.lane.b32.xlu1 %v4518_v59, %s3817_s8  ;;  %v467_v13 = vld [vmem:[%s4071_s5 + $0x158] sm:$0xff]  ;;  %575 = vst.msk [vmem:[#allocation3 + $0xd9] sm:$0xff] %vm552_vm0, %v466_v30 }
  0x96   : > { %v4529_v61 = vshll.u32 %v979_v28, 16  ;;  %v1685_v48 = vshll.u32 %v4264_v0, 16  ;;  %v983_v20 = vpack.c.bf16 %v929_v56, %v929_v56  ;;  %v4539_v31 = vsel %vm1313_vm2, %v1616_v36, %v1620_v24  ;;  %v4541_v28 = vld [vmem:[#allocation2 + $0x229] ss:$2 sm:$0x1]  ;;  %v472_v1 = vld [vmem:[%s4071_s5 + $0x180] sm:$0xff] }
  0x97   : > { %6299 = vst [vmem:[#allocation41_spill] sm:$0xff] %v4539_v31  ;;  %v1640_v10 = vor.u32 %v1639_v21, %v1635_v8  ;;  %v1644_v58 = vrot.slane %v1642_v50, 1  ;;  %v4547_v56 = vsel %vm1313_vm2, %v1604_v53, %v1608_v42  ;;  %v6301_v37 = vshrl.u32 %v4186_v6, 16  ;;  %576 = vst.msk [vmem:[#allocation3 + $0xe1] sm:$0xff] %vm552_vm0, %v467_v13  ;;  %v473_v8 = vld [vmem:[%s4071_s5 + $0x188] sm:$0xff]  ;;  %v474_v24 = vld [vmem:[%s4071_s5 + $0x190] sm:$0xff]  ;;  %1742 = vrot.lane.b32.xlu0 %v4539_v31, %s3817_s8 }
  0x98   : > { %6300 = vst [vmem:[#allocation42_spill] sm:$0xff] %v4547_v56  ;;  %v1632_v54 = vrot.slane %v4520_v52, 1  ;;  %v1673_v36 = vshll.u32 %v4256_v55, 16  ;;  %v475_v21 = vld [vmem:[%s4071_s5 + $0x198] sm:$0xff]  ;;  %577 = vst.msk [vmem:[#allocation3 + $0xf1] sm:$0xff] %vm552_vm0, %v472_v1  ;;  %v1664_v53 = vor.u32 %v1663_v5, %v1659_v2  ;;  %v1668_v50 = vrot.slane %v4524_v17, 1 }
  0x99   : > { %v1628_v62 = vor.u32 %v1627_v23, %v6301_v37  ;;  %v1683_v42 = vshrl.u32 %v4264_v0, 16  ;;  %v4560_v23 = vshll.u32 %v985_v27, 16  ;;  %578 = vst.msk [vmem:[#allocation3 + $0xf9] sm:$0xff] %vm552_vm0, %v473_v8  ;;  %579 = vst.msk [vmem:[#allocation3 + $0x101] sm:$0xff] %vm552_vm0, %v474_v24  ;;  %v480_v52 = vld [vmem:[%s4071_s5 + $0x1c0] sm:$0xff]  ;;  %v481_v30 = vld [vmem:[%s4071_s5 + $0x1c8] sm:$0xff]  ;;  %v1652_v13 = vor.u32 %v1651_v46, %v1647_v63  ;;  %1740 = vrot.lane.b32.xlu1 %v4547_v56, %s3817_s8 }
  0x9a   : > { %580 = vst.msk [vmem:[#allocation3 + $0x109] sm:$0xff] %vm552_vm0, %v475_v21  ;;  %v1656_v17 = vrot.slane %v4529_v61, 1  ;;  %v1687_v2 = vrot.slane %v1685_v48, 1  ;;  %v4570_v5 = vshll.u32 %v983_v20, 16  ;;  %v482_v27 = vld [vmem:[%s4071_s5 + $0x1d0] sm:$0xff]  ;;  %v483_v1 = vld [vmem:[%s4071_s5 + $0x1d8] sm:$0xff]  ;;  %v4580_v63 = vsel %vm1313_vm2, %v1640_v10, %v1644_v58 }
  0x9b   : > { %581 = vst.msk [vmem:[#allocation3 + $0x119] sm:$0xff] %vm552_vm0, %v480_v52  ;;  %582 = vst.msk [vmem:[#allocation3 + $0x121] sm:$0xff] %vm552_vm0, %v481_v30  ;;  %v488_v37 = vld [vmem:[%s4071_s5 + $0x200] sm:$0xff]  ;;  %v989_v46 = vpack.c.bf16 %v4532_v57, %v4532_v57  ;;  %v1709_v61 = vshll.u32 %v4279_v25, 16  ;;  %v987_v48 = vpack.c.bf16 %v4541_v28, %v4541_v28  ;;  %v489_v20 = vld [vmem:[%s4071_s5 + $0x208] sm:$0xff]  ;;  %v4594_v57 = vsel %vm1313_vm2, %v1628_v62, %v1632_v54 }
  0x9c   : > { %6302 = vst [vmem:[#allocation43_spill] sm:$0xff] %v4580_v63  ;;  %583 = vst.msk [vmem:[#allocation3 + $0x129] sm:$0xff] %vm552_vm0, %v482_v27  ;;  %v490_v8 = vld [vmem:[%s4071_s5 + $0x210] sm:$0xff]  ;;  %v491_v10 = vld [vmem:[%s4071_s5 + $0x218] sm:$0xff]  ;;  %v1671_v58 = vshrl.u32 %v4256_v55, 16  ;;  %v1675_v24 = vrot.slane %v1673_v36, 1  ;;  %v4605_v54 = vsel %vm1313_vm2, %v1664_v53, %v1668_v50  ;;  %1746 = vrot.lane.b32.xlu0 %v4580_v63, %s3817_s8  ;;  %v1688_v53 = vor.u32 %v1687_v2, %v1683_v42 }
  0x9d   : > { %584 = vst.msk [vmem:[#allocation3 + $0x131] sm:$0xff] %vm552_vm0, %v483_v1  ;;  %585 = vst.msk [vmem:[#allocation3 + $0x141] sm:$0xff] %vm552_vm0, %v488_v37  ;;  %v1697_v28 = vshll.u32 %v4272_v12, 16  ;;  %v496_v21 = vld [vmem:[%s4071_s5 + $0x240] sm:$0xff]  ;;  %v497_v52 = vld [vmem:[%s4071_s5 + $0x248] sm:$0xff]  ;;  %v1692_v62 = vrot.slane %v4560_v23, 1  ;;  %v4616_v37 = vsel %vm1313_vm2, %v1652_v13, %v1656_v17  ;;  %1744 = vrot.lane.b32.xlu1 %v4594_v57, %s3817_s8 }
  0x9e   : > { %6303 = vst [vmem:[#allocation44_spill] sm:$0xff] %v4594_v57  ;;  %586 = vst.msk [vmem:[#allocation3 + $0x149] sm:$0xff] %vm552_vm0, %v489_v20  ;;  %v498_v30 = vld [vmem:[%s4071_s5 + $0x250] sm:$0xff]  ;;  %v953_v36 = vld [vmem:[#allocation2 + $0x279] ss:$2 sm:$0x1] }
  0x9f   : > { %587 = vst.msk [vmem:[#allocation3 + $0x151] sm:$0xff] %vm552_vm0, %v490_v8  ;;  %588 = vst.msk [vmem:[#allocation3 + $0x159] sm:$0xff] %vm552_vm0, %v491_v10  ;;  %v499_v27 = vld [vmem:[%s4071_s5 + $0x258] sm:$0xff]  ;;  %v504_v1 = vld [vmem:[%s4071_s5 + $0x280] sm:$0xff]  ;;  %v1680_v50 = vrot.slane %v4570_v5, 1  ;;  %v1707_v23 = vshrl.u32 %v4279_v25, 16 }
  0xa0   : > { %6304 = vst [vmem:[#allocation45_spill] sm:$0xff] %v4605_v54  ;;  %589 = vst.msk [vmem:[#allocation3 + $0x169] sm:$0xff] %vm552_vm0, %v496_v21  ;;  %v505_v20 = vld [vmem:[%s4071_s5 + $0x288] sm:$0xff]  ;;  %v506_v8 = vld [vmem:[%s4071_s5 + $0x290] sm:$0xff]  ;;  %v1711_v13 = vrot.slane %v1709_v61, 1  ;;  %v1714_v42 = vshll.u32 %v989_v46, 16  ;;  %1750 = vrot.lane.b32.xlu0 %v4605_v54, %s3817_s8 }
  0xa1   : > { %590 = vst.msk [vmem:[#allocation3 + $0x171] sm:$0xff] %vm552_vm0, %v497_v52  ;;  %591 = vst.msk [vmem:[#allocation3 + $0x179] sm:$0xff] %vm552_vm0, %v498_v30  ;;  %v507_v10 = vld [vmem:[%s4071_s5 + $0x298] sm:$0xff]  ;;  %v1695_v17 = vshrl.u32 %v4272_v12, 16  ;;  %v1702_v2 = vshll.u32 %v987_v48, 16  ;;  %v512_v5 = vld [vmem:[%s4071_s5 + $0x2c0] sm:$0xff]  ;;  %v1676_v52 = vor.u32 %v1675_v24, %v1671_v58  ;;  %1748 = vrot.lane.b32.xlu1 %v4616_v37, %s3817_s8 }
  0xa2   : > { %592 = vst.msk [vmem:[#allocation3 + $0x181] sm:$0xff] %vm552_vm0, %v499_v27  ;;  %593 = vst.msk [vmem:[#allocation3 + $0x191] sm:$0xff] %vm552_vm0, %v504_v1  ;;  %v513_v21 = vld [vmem:[%s4071_s5 + $0x2c8] sm:$0xff]  ;;  %v1699_v30 = vrot.slane %v1697_v28, 1  ;;  %v991_v27 = vpack.c.bf16 %v953_v36, %v953_v36  ;;  %v1721_v61 = vshll.u32 %v4287_v51, 16  ;;  %v514_v46 = vld [vmem:[%s4071_s5 + $0x2d0] sm:$0xff]  ;;  %v1712_v28 = vor.u32 %v1711_v13, %v1707_v23 }
  0xa3   : > { %594 = vst.msk [vmem:[#allocation3 + $0x199] sm:$0xff] %vm552_vm0, %v505_v20  ;;  %595 = vst.msk [vmem:[#allocation3 + $0x1a1] sm:$0xff] %vm552_vm0, %v506_v8  ;;  %v515_v48 = vld [vmem:[%s4071_s5 + $0x2d8] sm:$0xff]  ;;  %v520_v1 = vld [vmem:[%s4071_s5 + $0x300] sm:$0xff]  ;;  %v4643_v20 = vsel %vm1313_vm2, %v1688_v53, %v1692_v62  ;;  %v1716_v36 = vrot.slane %v1714_v42, 1  ;;  %v1704_v8 = vrot.slane %v1702_v2, 1  ;;  %v4656_v53 = vsel %vm1313_vm2, %v1676_v52, %v1680_v50 }
  0xa4   : > { %596 = vst.msk [vmem:[#allocation3 + $0x1a9] sm:$0xff] %vm552_vm0, %v507_v10  ;;  %597 = vst.msk [vmem:[#allocation3 + $0x1b9] sm:$0xff] %vm552_vm0, %v512_v5  ;;  %v521_v58 = vld [vmem:[%s4071_s5 + $0x308] sm:$0xff]  ;;  %v522_v24 = vld [vmem:[%s4071_s5 + $0x310] sm:$0xff]  ;;  %v1719_v10 = vshrl.u32 %v4287_v51, 16  ;;  %v1700_v5 = vor.u32 %v1699_v30, %v1695_v17  ;;  %1754 = vrot.lane.b32.xlu0 %v4643_v20, %s3817_s8 }
  0xa5   : > { %598 = vst.msk [vmem:[#allocation3 + $0x1c1] sm:$0xff] %vm552_vm0, %v513_v21  ;;  %599 = vst.msk [vmem:[#allocation3 + $0x1c9] sm:$0xff] %vm552_vm0, %v514_v46  ;;  %v523_v62 = vld [vmem:[%s4071_s5 + $0x318] sm:$0xff]  ;;  %v1723_v21 = vrot.slane %v1721_v61, 1  ;;  %v1726_v46 = vshll.u32 %v991_v27, 16  ;;  %v528_v23 = vld [vmem:[%s4071_s5 + $0x340] sm:$0xff]  ;;  %1752 = vrot.lane.b32.xlu1 %v4656_v53, %s3817_s8  ;;  %v4673_v52 = vsel %vm1313_vm2, %v1712_v28, %v1716_v36 }
  0xa6   : > { %6305 = vst [vmem:[#allocation46_spill] sm:$0xff] %v4643_v20  ;;  %600 = vst.msk [vmem:[#allocation3 + $0x1d1] sm:$0xff] %vm552_vm0, %v515_v48  ;;  %v529_v13 = vld [vmem:[%s4071_s5 + $0x348] sm:$0xff]  ;;  %v530_v42 = vld [vmem:[%s4071_s5 + $0x350] sm:$0xff]  ;;  %v4679_v48 = vsel %vm1313_vm2, %v1700_v5, %v1704_v8 }
  0xa7   : > { %601 = vst.msk [vmem:[#allocation3 + $0x1e1] sm:$0xff] %vm552_vm0, %v520_v1  ;;  %602 = vst.msk [vmem:[#allocation3 + $0x1e9] sm:$0xff] %vm552_vm0, %v521_v58  ;;  %v531_v2 = vld [vmem:[%s4071_s5 + $0x358] sm:$0xff]  ;;  %v994_v50 = vld [vmem:[#allocation3] ss:$2 sm:$0xff]  ;;  %v1724_v1 = vor.u32 %v1723_v21, %v1719_v10  ;;  %v1728_v58 = vrot.slane %v1726_v46, 1 }
  0xa8   : > { %603 = vst.msk [vmem:[#allocation3 + $0x1f1] sm:$0xff] %vm552_vm0, %v522_v24  ;;  %6306 = vst [vmem:[#allocation47_spill] sm:$0xff] %v4656_v53  ;;  %v536_v17 = vld [vmem:[%s4071_s5 + $0x380] sm:$0xff]  ;;  %v537_v27 = vld [vmem:[%s4071_s5 + $0x388] sm:$0xff]  ;;  %1758 = vrot.lane.b32.xlu0 %v4673_v52, %s3817_s8 }
  0xa9   : > { %604 = vst.msk [vmem:[#allocation3 + $0x1f9] sm:$0xff] %vm552_vm0, %v523_v62  ;;  %605 = vst.msk [vmem:[#allocation3 + $0x209] sm:$0xff] %vm552_vm0, %v528_v23  ;;  %v996_v30 = vld [vmem:[#allocation3 + $0x10] ss:$2 sm:$0xff]  ;;  %v538_v61 = vld [vmem:[%s4071_s5 + $0x390] sm:$0xff]  ;;  %1756 = vrot.lane.b32.xlu1 %v4679_v48, %s3817_s8  ;;  %v4700_v21 = vsel %vm1313_vm2, %v1724_v1, %v1728_v58 }
  0xaa   : > { %606 = vst.msk [vmem:[#allocation3 + $0x211] sm:$0xff] %vm552_vm0, %v529_v13  ;;  %607 = vst.msk [vmem:[#allocation3 + $0x219] sm:$0xff] %vm552_vm0, %v530_v42  ;;  %v539_v24 = vld [vmem:[%s4071_s5 + $0x398] sm:$0xff]  ;;  %v544_v62 = vld [vmem:[%s4071_s5 + $0x3c0] sm:$0xff]  ;;  %v4693_v8 = vpack.c.bf16 %v996_v30, %v994_v50 }
  0xab   : > { %608 = vst.msk [vmem:[#allocation3 + $0x221] sm:$0xff] %vm552_vm0, %v531_v2  ;;  %6307 = vst [vmem:[#allocation48_spill] sm:$0xff] %v4673_v52  ;;  %v545_v23 = vld [vmem:[%s4071_s5 + $0x3c8] sm:$0xff]  ;;  %v546_v28 = vld [vmem:[%s4071_s5 + $0x3d0] sm:$0xff] }
  0xac   : > { %609 = vst.msk [vmem:[#allocation3 + $0x231] sm:$0xff] %vm552_vm0, %v536_v17  ;;  %6308 = vst [vmem:[#allocation49_spill] sm:$0xff] %v4679_v48  ;;  %v547_v36 = vld [vmem:[%s4071_s5 + $0x3d8] sm:$0xff]  ;;  %v1008_v5 = vld [vmem:[#allocation3 + $0x60] ss:$2 sm:$0xff]  ;;  %1778 = vrot.lane.b32.xlu0 %v4693_v8, %s3818_s9  ;;  %v1861_v18 = vshll.u32 %v4693_v8, 16 }
  0xad   : > { %610 = vst.msk [vmem:[#allocation3 + $0x239] sm:$0xff] %vm552_vm0, %v537_v27  ;;  %611 = vst.msk [vmem:[#allocation3 + $0x241] sm:$0xff] %vm552_vm0, %v538_v61  ;;  %v1006_v10 = vld [vmem:[#allocation3 + $0x50] ss:$2 sm:$0xff]  ;;  %1760 = vrot.lane.b32.xlu1 %v4700_v21, %s3817_s8  ;;  %v1018_v50 = vld [vmem:[#allocation3 + $0xa0] ss:$2 sm:$0xff] }
  0xae   : > { %612 = vst.msk [vmem:[#allocation3 + $0x249] sm:$0xff] %vm552_vm0, %v539_v24  ;;  %613 = vst.msk [vmem:[#allocation3 + $0x259] sm:$0xff] %vm552_vm0, %v544_v62  ;;  %v1000_v46 = vld [vmem:[#allocation3 + $0x28] ss:$2 sm:$0xff]  ;;  %v1002_v13 = vld [vmem:[#allocation3 + $0x38] ss:$2 sm:$0xff]  ;;  %v4704_v42 = vpack.c.bf16 %v1008_v5, %v1006_v10 }
  0xaf   : > { %614 = vst.msk [vmem:[#allocation3 + $0x261] sm:$0xff] %vm552_vm0, %v545_v23  ;;  %615 = vst.msk [vmem:[#allocation3 + $0x269] sm:$0xff] %vm552_vm0, %v546_v28  ;;  %v4708_v2 = vpack.c.bf16 %v1002_v13, %v1000_v46  ;;  %v1020_v17 = vld [vmem:[#allocation3 + $0xb0] ss:$2 sm:$0xff]  ;;  %v1032_v24 = vld [vmem:[#allocation3 + $0x100] ss:$2 sm:$0xff] }
  0xb0   : > { %616 = vst.msk [vmem:[#allocation3 + $0x271] sm:$0xff] %vm552_vm0, %v547_v36  ;;  %6309 = vst [vmem:[#allocation50_spill] sm:$0xff] %v4700_v21  ;;  %v1012_v30 = vld [vmem:[#allocation3 + $0x78] ss:$2 sm:$0xff]  ;;  %v1014_v27 = vld [vmem:[#allocation3 + $0x88] ss:$2 sm:$0xff]  ;;  %1782 = vrot.lane.b32.xlu0 %v4704_v42, %s3818_s9  ;;  %v4712_v61 = vpack.c.bf16 %v1020_v17, %v1018_v50 }
  0xb1   : > { %6310 = vst [vmem:[#allocation51_spill] sm:$0xff] %v4704_v42  ;;  %1780 = vrot.lane.b32.xlu1 %v4708_v2, %s3818_s9  ;;  %v4716_v1 = vpack.c.bf16 %v1014_v27, %v1012_v30  ;;  %v1030_v58 = vld [vmem:[#allocation3 + $0xf0] ss:$2 sm:$0xff]  ;;  %v1042_v10 = vld [vmem:[#allocation3 + $0x140] ss:$2 sm:$0xff]  ;;  %v1859_v14 = vshrl.u32 %v4693_v8, 16 }
  0xb2   : > { %6311 = vst [vmem:[#allocation52_spill] sm:$0xff] %v4712_v61  ;;  %v1024_v62 = vld [vmem:[#allocation3 + $0xc8] ss:$2 sm:$0xff]  ;;  %v1026_v23 = vld [vmem:[#allocation3 + $0xd8] ss:$2 sm:$0xff]  ;;  %v4720_v28 = vpack.c.bf16 %v1032_v24, %v1030_v58  ;;  %s3827_s8 = smov 104  }
  0xb3   : > { %6312 = vst [vmem:[#allocation53_spill] sm:$0xff] %v4716_v1  ;;  %v4724_v36 = vpack.c.bf16 %v1026_v23, %v1024_v62  ;;  %v1044_v5 = vld [vmem:[#allocation3 + $0x150] ss:$2 sm:$0xff]  ;;  %v1056_v27 = vld [vmem:[#allocation3 + $0x1a0] ss:$2 sm:$0xff]  ;;  %v4736_v62 = vpop.permute.xlu0 %1281  ;;  %v1897_v3 = vshll.u32 %v4716_v1, 16 }
  0xb4   : > { %1786 = vrot.lane.b32.xlu0 %v4712_v61, %s3818_s9  ;;  %6313 = vst [vmem:[#allocation54_spill] sm:$0xff] %v4720_v28  ;;  %v1036_v46 = vld [vmem:[#allocation3 + $0x118] ss:$2 sm:$0xff]  ;;  %v1038_v13 = vld [vmem:[#allocation3 + $0x128] ss:$2 sm:$0xff]  ;;  %v4728_v50 = vpack.c.bf16 %v1044_v5, %v1042_v10  ;;  %6317 = vst [vmem:[#allocation58_spill] sm:$0xff] %v4736_v62 }
  0xb5   : > { %1784 = vrot.lane.b32.xlu1 %v4716_v1, %s3818_s9  ;;  %6314 = vst [vmem:[#allocation55_spill] sm:$0xff] %v4724_v36  ;;  %v4732_v17 = vpack.c.bf16 %v1038_v13, %v1036_v46  ;;  %v1054_v30 = vld [vmem:[#allocation3 + $0x190] ss:$2 sm:$0xff]  ;;  %v1066_v5 = vld [vmem:[#allocation3 + $0x1e0] ss:$2 sm:$0xff] }
  0xb6   : > { %6315 = vst [vmem:[#allocation56_spill] sm:$0xff] %v4728_v50  ;;  %v1048_v58 = vld [vmem:[#allocation3 + $0x168] ss:$2 sm:$0xff]  ;;  %v1050_v24 = vld [vmem:[#allocation3 + $0x178] ss:$2 sm:$0xff]  ;;  %v4738_v23 = vpack.c.bf16 %v1056_v27, %v1054_v30 }
  0xb7   : > { %6316 = vst [vmem:[#allocation57_spill] sm:$0xff] %v4732_v17  ;;  %v4742_v10 = vpack.c.bf16 %v1050_v24, %v1048_v58  ;;  %v1068_v21 = vld [vmem:[#allocation3 + $0x1f0] ss:$2 sm:$0xff]  ;;  %v1080_v51 = vld [vmem:[#allocation3 + $0x240] ss:$2 sm:$0xff] }
  0xb8   : > { %1790 = vrot.lane.b32.xlu0 %v4720_v28, %s3818_s9  ;;  %v1060_v46 = vld [vmem:[#allocation3 + $0x1b8] ss:$2 sm:$0xff]  ;;  %v1062_v13 = vld [vmem:[#allocation3 + $0x1c8] ss:$2 sm:$0xff]  ;;  %v4748_v57 = vpack.c.bf16 %v1068_v21, %v1066_v5  ;;  %v1130_v5 = vld [vmem:[#allocation3 + $0x1] ss:$2 sm:$0xff] }
  0xb9   : > { %1788 = vrot.lane.b32.xlu1 %v4724_v36, %s3818_s9  ;;  %v4752_v30 = vpack.c.bf16 %v1062_v13, %v1060_v46  ;;  %v1078_v27 = vld [vmem:[#allocation3 + $0x230] ss:$2 sm:$0xff]  ;;  %v1132_v46 = vld [vmem:[#allocation3 + $0x11] ss:$2 sm:$0xff]  ;;  %v1216_v29 = vld [vmem:[#allocation3 + $0x241] ss:$2 sm:$0xff] }
  0xba   : > { %v4746_v63 = vpop.permute.xlu1 %1285  ;;  %6318 = vst [vmem:[#allocation59_spill] sm:$0xff] %v4748_v57  ;;  %v1072_v24 = vld [vmem:[#allocation3 + $0x208] ss:$2 sm:$0xff]  ;;  %v1074_v6 = vld [vmem:[#allocation3 + $0x218] ss:$2 sm:$0xff]  ;;  %v4760_v52 = vpack.c.bf16 %v1080_v51, %v1078_v27 }
  0xbb   : > { %6319 = vst [vmem:[#allocation60_spill] sm:$0xff] %v4752_v30  ;;  %v4764_v21 = vpack.c.bf16 %v1074_v6, %v1072_v24  ;;  %v1084_v48 = vld [vmem:[#allocation3 + $0x258] ss:$2 sm:$0xff]  ;;  %v1086_v28 = vld [vmem:[#allocation3 + $0x268] ss:$2 sm:$0xff] }
  0xbc   : > { %1794 = vrot.lane.b32.xlu0 %v4728_v50, %s3818_s9  ;;  %v4754_v58 = vpop.permute.xlu0 %1283  ;;  %6321 = vst [vmem:[#allocation62_spill] sm:$0xff] %v4760_v52  ;;  %v1142_v51 = vld [vmem:[#allocation3 + $0x51] ss:$2 sm:$0xff]  ;;  %v4776_v27 = vpack.c.bf16 %v1086_v28, %v1084_v48  ;;  %v1144_v6 = vld [vmem:[#allocation3 + $0x61] ss:$2 sm:$0xff] }
  0xbd   : > { %1792 = vrot.lane.b32.xlu1 %v4732_v17, %s3818_s9  ;;  %6320 = vst [vmem:[#allocation61_spill] sm:$0xff] %v4754_v58  ;;  %6322 = vst [vmem:[#allocation63_spill] sm:$0xff] %v4764_v21  ;;  %v4772_v58 = vpack.c.bf16 %v1132_v46, %v1130_v5  ;;  %v1136_v56 = vld [vmem:[#allocation3 + $0x29] ss:$2 sm:$0xff]  ;;  %v1138_v25 = vld [vmem:[#allocation3 + $0x39] ss:$2 sm:$0xff]  ;;  %v4784_v12 = vpack.c.bf16 %v1144_v6, %v1142_v51 }
  0xbe   : > { %v4758_v17 = vpop.permute.xlu1 %1287  ;;  %6324 = vst [vmem:[#allocation65_spill] sm:$0xff] %v4776_v27  ;;  %v4788_v5 = vpack.c.bf16 %v1138_v25, %v1136_v56  ;;  %v1154_v48 = vld [vmem:[#allocation3 + $0xa1] ss:$2 sm:$0xff]  ;;  %v1156_v28 = vld [vmem:[#allocation3 + $0xb1] ss:$2 sm:$0xff] }
  0xbf   : > { %6327 = vst [vmem:[#allocation68_spill] sm:$0xff] %v4784_v12  ;;  %v1148_v62 = vld [vmem:[#allocation3 + $0x79] ss:$2 sm:$0xff]  ;;  %v1174_v59 = vld [vmem:[#allocation3 + $0x129] ss:$2 sm:$0xff] }
  0xc0   : > { %1798 = vrot.lane.b32.xlu0 %v4738_v23, %s3818_s9  ;;  %v4766_v13 = vpop.permute.xlu0 %1289  ;;  %v1166_v25 = vld [vmem:[#allocation3 + $0xf1] ss:$2 sm:$0xff]  ;;  %v1168_v56 = vld [vmem:[#allocation3 + $0x101] ss:$2 sm:$0xff] }
  0xc1   : > { %1796 = vrot.lane.b32.xlu1 %v4742_v10, %s3818_s9  ;;  %v4808_v22 = vpack.c.bf16 %v1168_v56, %v1166_v25  ;;  %v1192_v56 = vld [vmem:[#allocation3 + $0x1a1] ss:$2 sm:$0xff]  ;;  %v998_v43 = vld [vmem:[#allocation3 + $0x20] ss:$2 sm:$0x1] }
  0xc2   : > { %v4770_v31 = vpop.permute.xlu1 %1291  ;;  %v1186_v47 = vld [vmem:[#allocation3 + $0x179] ss:$2 sm:$0xff]  ;;  %v1096_v7 = vpack.c.bf16 %v998_v43, %v998_v43  ;;  %v1198_v34 = vld [vmem:[#allocation3 + $0x1c9] ss:$2 sm:$0xff]  ;;  %v1883_v43 = vshrl.u32 %v4704_v42, 16 }
  0xc3   : > { %6323 = vst [vmem:[#allocation64_spill] sm:$0xff] %v4770_v31  ;;  %6334 = vst [vmem:[#allocation75_spill] sm:$0xff] %v4808_v22  ;;  %v1214_v8 = vld [vmem:[#allocation3 + $0x231] ss:$2 sm:$0xff]  ;;  %v1909_v31 = vshll.u32 %v4712_v61, 16 }
  0xc4   : > { %1802 = vrot.lane.b32.xlu0 %v4748_v57, %s3818_s9  ;;  %v4778_v24 = vpop.permute.xlu0 %1293  ;;  %v4796_v57 = vpack.c.bf16 %v1156_v28, %v1154_v48  ;;  %v1022_v4 = vld [vmem:[#allocation3 + $0xc0] ss:$2 sm:$0x1] }
  0xc5   : > { %1800 = vrot.lane.b32.xlu1 %v4752_v30, %s3818_s9  ;;  %6325 = vst [vmem:[#allocation66_spill] sm:$0xff] %v4778_v24  ;;  %v1895_v30 = vshrl.u32 %v4716_v1, 16  ;;  %v1104_v24 = vpack.c.bf16 %v1022_v4, %v1022_v4  ;;  %v1911_v4 = vrot.slane %v1909_v31, 1  ;;  %v1955_v31 = vshrl.u32 %v4728_v50, 16 }
  0xc6   : > { %6330 = vst [vmem:[#allocation71_spill] sm:$0xff] %v4796_v57 }
  0xc8   : > { %1806 = vrot.lane.b32.xlu0 %v4760_v52, %s3818_s9  ;;  %v4782_v52 = vpop.permute.xlu1 %1295 }
  0xc9   : > { %1804 = vrot.lane.b32.xlu1 %v4764_v21, %s3818_s9  ;;  %6326 = vst [vmem:[#allocation67_spill] sm:$0xff] %v4782_v52  ;;  %v4790_v46 = vpop.permute.xlu0 %1297  ;;  %v1150_v21 = vld [vmem:[#allocation3 + $0x89] ss:$2 sm:$0xff] }
  0xca   : > { %6328 = vst [vmem:[#allocation69_spill] sm:$0xff] %v4790_v46  ;;  %v4800_v51 = vpack.c.bf16 %v1150_v21, %v1148_v62  ;;  %v1162_v46 = vld [vmem:[#allocation3 + $0xd9] ss:$2 sm:$0xff] }
  0xcb   : > { %v1178_v62 = vld [vmem:[#allocation3 + $0x141] ss:$2 sm:$0xff]  ;;  %v1180_v21 = vld [vmem:[#allocation3 + $0x151] ss:$2 sm:$0xff] }
  0xcc   : > { %1826 = vrot.lane.b32.xlu0 %v4772_v58, %s3819_s10  ;;  %v4794_v20 = vpop.permute.xlu1 %1299  ;;  %6331 = vst [vmem:[#allocation72_spill] sm:$0xff] %v4800_v51 }
  0xcd   : > { %1808 = vrot.lane.b32.xlu1 %v4776_v27, %s3818_s9  ;;  %6329 = vst [vmem:[#allocation70_spill] sm:$0xff] %v4794_v20  ;;  %v1160_v27 = vld [vmem:[#allocation3 + $0xc9] ss:$2 sm:$0xff]  ;;  %v1172_v20 = vld [vmem:[#allocation3 + $0x119] ss:$2 sm:$0xff] }
  0xce   : > { %v4802_v6 = vpop.permute.xlu0 %1301  ;;  %v4812_v48 = vpack.c.bf16 %v1162_v46, %v1160_v27  ;;  %v4824_v25 = vpack.c.bf16 %v1174_v59, %v1172_v20  ;;  %v1184_v27 = vld [vmem:[#allocation3 + $0x169] ss:$2 sm:$0xff]  ;;  %v1196_v20 = vld [vmem:[#allocation3 + $0x1b9] ss:$2 sm:$0xff] }
  0xcf   : > { %6332 = vst [vmem:[#allocation73_spill] sm:$0xff] %v4802_v6  ;;  %v1190_v46 = vld [vmem:[#allocation3 + $0x191] ss:$2 sm:$0xff]  ;;  %v4838_v59 = vpack.c.bf16 %v1186_v47, %v1184_v27 }
  0xd0   : > { %1830 = vrot.lane.b32.xlu0 %v4784_v12, %s3819_s10  ;;  %6335 = vst [vmem:[#allocation76_spill] sm:$0xff] %v4812_v48  ;;  %6339 = vst [vmem:[#allocation80_spill] sm:$0xff] %v4824_v25  ;;  %v1208_v47 = vld [vmem:[#allocation3 + $0x209] ss:$2 sm:$0xff]  ;;  %v1210_v27 = vld [vmem:[#allocation3 + $0x219] ss:$2 sm:$0xff] }
  0xd1   : > { %1828 = vrot.lane.b32.xlu1 %v4788_v5, %s3819_s10  ;;  %v4806_v53 = vpop.permute.xlu1 %1303  ;;  %v1016_v12 = vld [vmem:[#allocation3 + $0x98] ss:$2 sm:$0x1] }
  0xd2   : > { %6333 = vst [vmem:[#allocation74_spill] sm:$0xff] %v4806_v53  ;;  %v1871_v53 = vshrl.u32 %v4708_v2, 16  ;;  %v1102_v44 = vpack.c.bf16 %v1016_v12, %v1016_v12 }
  0xd3   : > { %v4814_v28 = vpop.permute.xlu0 %1305 }
  0xd4   : > { %1834 = vrot.lane.b32.xlu0 %v4796_v57, %s3819_s10  ;;  %6336 = vst [vmem:[#allocation77_spill] sm:$0xff] %v4814_v28  ;;  %v4820_v57 = vpack.c.bf16 %v1180_v21, %v1178_v62  ;;  %v4833_v62 = vpack.c.bf16 %v1192_v56, %v1190_v46  ;;  %v1873_v21 = vshll.u32 %v4708_v2, 16  ;;  %v1004_v46 = vld [vmem:[#allocation3 + $0x48] ss:$2 sm:$0x1]  ;;  %v1885_v56 = vshll.u32 %v4704_v42, 16 }
  0xd5   : > { %1832 = vrot.lane.b32.xlu1 %v4800_v51, %s3819_s10  ;;  %v4818_v0 = vpop.permute.xlu1 %1307  ;;  %v1204_v51 = vld [vmem:[#allocation3 + $0x1f1] ss:$2 sm:$0xff]  ;;  %v1866_v28 = vshll.u32 %v1096_v7, 16  ;;  %v4865_v7 = vpack.c.bf16 %v1216_v29, %v1214_v8  ;;  %v1921_v29 = vshll.u32 %v4724_v36, 16  ;;  %v1907_v8 = vshrl.u32 %v4712_v61, 16 }
  0xd6   : > { %6337 = vst [vmem:[#allocation78_spill] sm:$0xff] %v4818_v0  ;;  %6338 = vst [vmem:[#allocation79_spill] sm:$0xff] %v4820_v57  ;;  %v1875_v6 = vrot.slane %v1873_v21, 1  ;;  %v1887_v52 = vrot.slane %v1885_v56, 1  ;;  %v1220_v56 = vld [vmem:[#allocation3 + $0x259] ss:$2 sm:$0xff] }
  0xd7   : > { %v4826_v55 = vpop.permute.xlu0 %1309  ;;  %6342 = vst [vmem:[#allocation83_spill] sm:$0xff] %v4833_v62  ;;  %6348 = vst [vmem:[#allocation89_spill] sm:$0xff] %v4865_v7  ;;  %v1028_v21 = vld [vmem:[#allocation3 + $0xe8] ss:$2 sm:$0x1]  ;;  %v1868_v1 = vrot.slane %v1866_v28, 1 }
  0xd8   : > { %1838 = vrot.lane.b32.xlu0 %v4808_v22, %s3819_s10  ;;  %6340 = vst [vmem:[#allocation81_spill] sm:$0xff] %v4826_v55  ;;  %v1010_v55 = vld [vmem:[#allocation3 + $0x70] ss:$2 sm:$0x1]  ;;  %v1888_v12 = vor.u32 %v1887_v52, %v1883_v43 }
  0xd9   : > { %1836 = vrot.lane.b32.xlu1 %v4812_v48, %s3819_s10  ;;  %v4831_v22 = vpop.permute.xlu1 %1311  ;;  %v1202_v48 = vld [vmem:[#allocation3 + $0x1e1] ss:$2 sm:$0xff] }
  0xda   : > { %6341 = vst [vmem:[#allocation82_spill] sm:$0xff] %v4831_v22  ;;  %v1863_v22 = vrot.slane %v1861_v18, 1  ;;  %v4854_v18 = vpack.c.bf16 %v1198_v34, %v1196_v20  ;;  %v4863_v34 = vpack.c.bf16 %v1210_v27, %v1208_v47  ;;  %v1046_v20 = vld [vmem:[#allocation3 + $0x160] ss:$2 sm:$0x1]  ;;  %v1876_v47 = vor.u32 %v1875_v6, %v1871_v53 }
  0xdb   : > { %v4840_v0 = vpop.permute.xlu0 %1506  ;;  %v1052_v53 = vld [vmem:[#allocation3 + $0x188] ss:$2 sm:$0x1]  ;;  %v1134_v61 = vld [vmem:[#allocation3 + $0x21] ss:$2 sm:$0x1] }
  0xdc   : > { %1842 = vrot.lane.b32.xlu0 %v4820_v57, %s3819_s10  ;;  %6343 = vst [vmem:[#allocation84_spill] sm:$0xff] %v4840_v0  ;;  %6346 = vst [vmem:[#allocation87_spill] sm:$0xff] %v4854_v18 }
  0xdd   : > { %1840 = vrot.lane.b32.xlu1 %v4824_v25, %s3819_s10  ;;  %v4846_v25 = vpack.c.bf16 %v1204_v51, %v1202_v48  ;;  %v4852_v0 = vpop.permute.xlu1 %1508  ;;  %v1098_v48 = vpack.c.bf16 %v1004_v46, %v1004_v46  ;;  %6347 = vst [vmem:[#allocation88_spill] sm:$0xff] %v4863_v34 }
  0xde   : > { %6345 = vst [vmem:[#allocation86_spill] sm:$0xff] %v4852_v0  ;;  %v1222_v0 = vld [vmem:[#allocation3 + $0x269] ss:$2 sm:$0xff] }
  0xdf   : > { %6344 = vst [vmem:[#allocation85_spill] sm:$0xff] %v4846_v25  ;;  %v4856_v51 = vpop.permute.xlu0 %1510  ;;  %v1878_v27 = vshll.u32 %v1098_v48, 16  ;;  %v4878_v28 = vpack.c.bf16 %v1222_v0, %v1220_v56  ;;  %v1923_v56 = vrot.slane %v1921_v29, 1 }
  0xe0   : > { %1846 = vrot.lane.b32.xlu0 %v4833_v62, %s3819_s10  ;;  %v1100_v62 = vpack.c.bf16 %v1010_v55, %v1010_v55  ;;  %v1864_v55 = vor.u32 %v1863_v22, %v1859_v14  ;;  %v1957_v14 = vshll.u32 %v4728_v50, 16  ;;  %v1899_v22 = vrot.slane %v1897_v3, 1  ;;  %v1140_v50 = vld [vmem:[#allocation3 + $0x49] ss:$2 sm:$0x1] }
  0xe1   : > { %1844 = vrot.lane.b32.xlu1 %v4838_v59, %s3819_s10  ;;  %v4869_v46 = vpop.permute.xlu1 %1512  ;;  %6350 = vst [vmem:[#allocation91_spill] sm:$0xff] %v4878_v28  ;;  %v1880_v0 = vrot.slane %v1878_v27, 1 }
  0xe2   : > { %6349 = vst [vmem:[#allocation90_spill] sm:$0xff] %v4869_v46  ;;  %v1890_v42 = vshll.u32 %v1100_v62, 16  ;;  %v1919_v62 = vshrl.u32 %v4724_v36, 16  ;;  %v1869_v3 = vsel %vm1313_vm2, %v1864_v55, %v1868_v1  ;;  %v1959_v52 = vrot.slane %v1957_v14, 1 }
  0xe3   : > { %v4871_v54 = vpop.permute.xlu0 %1514  ;;  %v1114_v36 = vpack.c.bf16 %v1052_v53, %v1052_v53  ;;  %v1912_v55 = vor.u32 %v1911_v4, %v1907_v8  ;;  %v4902_v29 = vsel %vm1313_vm2, %v1876_v47, %v1880_v0  ;;  %v1900_v14 = vor.u32 %v1899_v22, %v1895_v30 }
  0xe4   : > { %1850 = vrot.lane.b32.xlu0 %v4846_v25, %s3819_s10  ;;  %v1106_v25 = vpack.c.bf16 %v1028_v21, %v1028_v21  ;;  %v1892_v48 = vrot.slane %v1890_v42, 1  ;;  %v1902_v21 = vshll.u32 %v1102_v44, 16  ;;  %v1969_v42 = vshll.u32 %v4742_v10, 16 }
  0xe5   : > { %1848 = vrot.lane.b32.xlu1 %v4854_v18, %s3819_s10  ;;  %v1112_v18 = vpack.c.bf16 %v1046_v20, %v1046_v20  ;;  %v1914_v20 = vshll.u32 %v1104_v24, 16  ;;  %v1232_v44 = vpack.c.bf16 %v1134_v61, %v1134_v61  ;;  %v1924_v53 = vor.u32 %v1923_v56, %v1919_v62  ;;  %v1182_v61 = vld [vmem:[#allocation3 + $0x161] ss:$2 sm:$0x1] }
  0xe6   : > { %v4883_v6 = vpop.permute.xlu1 %1516  ;;  %v1926_v43 = vshll.u32 %v1106_v25, 16  ;;  %v4895_v1 = vsel %vm1313_vm2, %v1888_v12, %v1892_v48  ;;  %v1904_v24 = vrot.slane %v1902_v21, 1  ;;  %v1967_v12 = vshrl.u32 %v4742_v10, 16 }
  0xe7   : > { %6351 = vst [vmem:[#allocation92_spill] sm:$0xff] %v4883_v6  ;;  %v4886_v46 = vpop.permute.xlu0 %1518  ;;  %v1916_v27 = vrot.slane %v1914_v20, 1  ;;  %v1974_v48 = vshll.u32 %v1114_v36, 16  ;;  %v1971_v8 = vrot.slane %v1969_v42, 1  ;;  %v2083_v4 = vshrl.u32 %v4772_v58, 16 }
  0xe8   : > { %1854 = vrot.lane.b32.xlu0 %v4865_v7, %s3819_s10  ;;  %v1962_v7 = vshll.u32 %v1112_v18, 16  ;;  %v1928_v6 = vrot.slane %v1926_v43, 1  ;;  %v2090_v20 = vshll.u32 %v1232_v44, 16  ;;  %v1248_v47 = vpack.c.bf16 %v1182_v61, %v1182_v61 }
  0xe9   : > { %1852 = vrot.lane.b32.xlu1 %v4863_v34, %s3819_s10  ;;  %v2085_v34 = vshll.u32 %v4772_v58, 16  ;;  %v4911_v30 = vsel %vm1313_vm2, %v1912_v55, %v1916_v27  ;;  %v1234_v22 = vpack.c.bf16 %v1140_v50, %v1140_v50  ;;  %v4919_v0 = vsel %vm1313_vm2, %v1900_v14, %v1904_v24 }
  0xea   : > { %v2181_v58 = vshll.u32 %v4820_v57, 16  ;;  %v1972_v50 = vor.u32 %v1971_v8, %v1967_v12  ;;  %v2092_v42 = vrot.slane %v2090_v20, 1  ;;  %v2186_v44 = vshll.u32 %v1248_v47, 16 }
  0xeb   : > { %v4897_v25 = vpop.permute.xlu0 %1522  ;;  %v4899_v18 = vpop.permute.xlu1 %1520  ;;  %v2087_v21 = vrot.slane %v2085_v34, 1  ;;  %v4923_v34 = vsel %vm1313_vm2, %v1924_v53, %v1928_v6  ;;  %v2095_v24 = vshrl.u32 %v4788_v5, 16  ;;  %v2102_v6 = vshll.u32 %v1234_v22, 16 }
  0xec   : > { %2050 = vrot.lane.b32.xlu0 %v1869_v3, %s3820_s11  ;;  %v1960_v3 = vor.u32 %v1959_v52, %v1955_v31  ;;  %6352 = vst [vmem:[#allocation93_spill] sm:$0xff] %v4923_v34  ;;  %v1188_v31 = vld [vmem:[#allocation3 + $0x189] ss:$2 sm:$0x1]  ;;  %v1976_v52 = vrot.slane %v1974_v48, 1  ;;  %v2183_v14 = vrot.slane %v2181_v58, 1 }
  0xed   : > { %1856 = vrot.lane.b32.xlu1 %v4878_v28, %s3819_s10  ;;  %v1964_v28 = vrot.slane %v1962_v7, 1  ;;  %v2097_v7 = vshll.u32 %v4788_v5, 16  ;;  %v2088_v43 = vor.u32 %v2087_v21, %v2083_v4  ;;  %v1250_v53 = vpack.c.bf16 %v1188_v31, %v1188_v31 }
  0xee   : > { %v4942_v12 = vsel %vm1313_vm2, %v1972_v50, %v1976_v52  ;;  %v2188_v8 = vrot.slane %v2186_v44, 1  ;;  %v2104_v21 = vrot.slane %v2102_v6, 1  ;;  %v2191_v22 = vshrl.u32 %v4838_v59, 16 }
  0xef   : > { %v4914_v62 = vpop.permute.xlu0 %1526  ;;  %v4926_v56 = vsel %vm1313_vm2, %v1960_v3, %v1964_v28  ;;  %v2099_v55 = vrot.slane %v2097_v7, 1  ;;  %v2179_v28 = vshrl.u32 %v4820_v57, 16  ;;  %v2193_v3 = vshll.u32 %v4838_v59, 16 }
  0xf0   : > { %2054 = vrot.lane.b32.xlu0 %v4895_v1, %s3820_s11  ;;  %v4916_v36 = vpop.permute.xlu1 %1524  ;;  %6353 = vst [vmem:[#allocation94_spill] sm:$0xff] %v4926_v56  ;;  %v2093_v48 = vsel %vm1313_vm2, %v2088_v43, %v2092_v42  ;;  %v2198_v58 = vshll.u32 %v1250_v53, 16 }
  0xf1   : > { %2052 = vrot.lane.b32.xlu1 %v4902_v29, %s3820_s11  ;;  %v2100_v4 = vor.u32 %v2099_v55, %v2095_v24  ;;  %v2184_v47 = vor.u32 %v2183_v14, %v2179_v28  ;;  %v2195_v7 = vrot.slane %v2193_v3, 1 }
  0xf2   : > { %v2200_v44 = vrot.slane %v2198_v58, 1 }
  0xf3   : > { %v4933_v27 = vpop.permute.xlu0 %1530  ;;  %v4956_v50 = vsel %vm1313_vm2, %v2100_v4, %v2104_v21  ;;  %v4961_v43 = vsel %vm1313_vm2, %v2184_v47, %v2188_v8  ;;  %v2196_v42 = vor.u32 %v2195_v7, %v2191_v22 }
  0xf4   : > { %2058 = vrot.lane.b32.xlu0 %v4911_v30, %s3820_s11  ;;  %6354 = vst [vmem:[#allocation95_spill] sm:$0xff] %v4961_v43 }
  0xf5   : > { %2056 = vrot.lane.b32.xlu1 %v4919_v0, %s3820_s11  ;;  %v4970_v6 = vsel %vm1313_vm2, %v2196_v42, %v2200_v44 }
  0xf7   : > { %v4937_v61 = vpop.permute.xlu1 %1528 }
  0xf8   : > { %2066 = vrot.lane.b32.xlu0 %v4926_v56, %s3820_s11 }
  0xf9   : > { %2060 = vrot.lane.b32.xlu1 %v4923_v34, %s3820_s11  ;;  %v4947_v20 = vpop.permute.xlu0 %1534  ;;  %v6373_v34 = vld [vmem:[#allocation30_spill] sm:$0xff] }
  0xfb   : > { %v4950_v31 = vpop.permute.xlu1 %1532 }
  0xfc   : > { %2274 = vrot.lane.b32.xlu0 %v2093_v48, %s3821_s12 }
  0xfd   : > { %2068 = vrot.lane.b32.xlu1 %v4942_v12, %s3820_s11  ;;  %v4958_v52 = vpop.permute.xlu0 %1730 }
  0xff   : > { %v4963_v24 = vpop.permute.xlu1 %1536 }
 0x100   : > { %2276 = vrot.lane.b32.xlu0 %v4956_v50, %s3821_s12 }
 0x101   : > { %2290 = vrot.lane.b32.xlu1 %v4961_v43, %s3821_s12  ;;  %v1735_v55 = vpop.permute.xlu0 %1734 }
 0x103   : > { %v4972_v28 = vpop.permute.xlu1 %1732 }
 0x104   : > { %2322 = vrot.lane.b32.xlu0 %v4283_v45, %s3822_s13 }
 0x105   : > { %2292 = vrot.lane.b32.xlu1 %v4970_v6, %s3821_s12  ;;  %v1739_v14 = vpop.permute.xlu0 %1738 }
 0x107   : > { %v1737_v53 = vpop.permute.xlu1 %1736 }
 0x108   : > { %2324 = vrot.lane.b32.xlu0 %v4268_v9, %s3822_s13 }
 0x109   : > { %2338 = vrot.lane.b32.xlu1 %v4375_v60, %s3822_s13  ;;  %v4982_v3 = vpop.permute.xlu0 %1742 }
 0x10b   : > { %v4984_v48 = vpop.permute.xlu1 %1740 }
 0x10c   : > { %2355 = vrot.lane.b32.xlu0 %v4138_v39, %s3823_s14 }
 0x10d   : > { %2340 = vrot.lane.b32.xlu1 %v4370_v38, %s3822_s13 }
 0x10e   : > { %v4990_v8 = vpop.permute.xlu0 %1746 }
 0x10f   : > { %v4992_v4 = vpop.permute.xlu1 %1744 }
 0x110   : > { %2357 = vrot.lane.b32.xlu0 %v4126_v32, %s3823_s14 }
 0x111   : > { %2371 = vrot.lane.b32.xlu1 %v4230_v35, %s3823_s14 }
 0x112   : > { %v4998_v21 = vpop.permute.xlu0 %1750 }
 0x113   : > { %v5000_v47 = vpop.permute.xlu1 %1748 }
 0x114   : > { %2399 = vrot.lane.b32.xlu0 %v4330_v15, %s3824_s2  ;;  %v1058_v15 = vld [vmem:[#allocation3 + $0x1b0] ss:$2 sm:$0x1] }
 0x115   : > { %2373 = vrot.lane.b32.xlu1 %v4238_v41, %s3823_s14 }
 0x116   : > { %v5006_v39 = vpop.permute.xlu0 %1754 }
 0x117   : > { %v5008_v22 = vpop.permute.xlu1 %1752 }
 0x118   : > { %2401 = vrot.lane.b32.xlu0 %v4313_v11, %s3824_s2  ;;  %v2634_v11 = vsel %vm552_vm0, %v4268_v9, %v4746_v63  ;;  %v2636_v63 = vsel %vm552_vm0, %v4315_v33, %v4758_v17  ;;  %v6356_v17 = vld [vmem:[#allocation90_spill] sm:$0xff] }
 0x119   : > { %2415 = vrot.lane.b32.xlu1 %v4421_v49, %s3824_s2  ;;  %v2667_v49 = vsel %vm2661_vm3, %v2634_v11, %v4856_v51 }
 0x11a   : > { %v5014_v32 = vpop.permute.xlu0 %1758  ;;  %v2700_v58 = vsel %vm2694_vm4, %v2667_v49, %v1735_v55  ;;  %v6355_v55 = vld [vmem:[#allocation45_spill] sm:$0xff] }
 0x11b   : > { %v5016_v35 = vpop.permute.xlu1 %1756 }
 0x11c   : > { %2443 = vrot.lane.b32.xlu0 %v4499_v40, %s3825_s20  ;;  %v1981_v40 = vshll.u32 %v4738_v23, 16 }
 0x11d   : > { %2417 = vrot.lane.b32.xlu1 %v4415_v26, %s3824_s2  ;;  %v1116_v26 = vpack.c.bf16 %v1058_v15, %v1058_v15  ;;  %v1979_v15 = vshrl.u32 %v4738_v23, 16 }
 0x11e   : > { %v5022_v41 = vpop.permute.xlu0 %1778  ;;  %v1983_v11 = vrot.slane %v1981_v40, 1  ;;  %v3727_v40 = vld [vmem:[%s6155_s3 + $0x8] sm:$0xff]  }
 0x11f   : > { %v5024_v7 = vpop.permute.xlu1 %1760  ;;  %v1986_v49 = vshll.u32 %v1116_v26, 16  ;;  %v6357_v26 = vld [vmem:[#allocation66_spill] sm:$0xff] }
 0x120   : > { %2445 = vrot.lane.b32.xlu0 %v4495_v19, %s3825_s20  ;;  %v3726_v19 = vld [vmem:[%s6155_s3] sm:$0xff]  }
 0x121   : > { %2459 = vrot.lane.b32.xlu1 %v4616_v37, %s3825_s20  ;;  %v2638_v37 = vsel %vm552_vm0, %v4309_v16, %v4766_v13  ;;  %3590 = vmatprep.subr.bf16.mxu0 %v3726_v19 }
 0x122   : > { %v1783_v42 = vpop.permute.xlu0 %1782  ;;  %v2671_v51 = vsel %vm2661_vm3, %v2638_v37, %v4871_v54  ;;  %3591 = vmatpush3.bf16.msra.mxu0 %v3726_v19  ;;  %3638 = vmatprep.subr.bf16.mxu1 %v3726_v19  ;;  %v6358_v37 = vld [vmem:[#allocation19_spill] sm:$0xff] }
 0x123   : > { %v5037_v44 = vpop.permute.xlu1 %1780  ;;  %v5040_v9 = vsel %vm2727_vm5, %v2700_v58, %v1783_v42  ;;  %v2669_v58 = vsel %vm2661_vm3, %v2636_v63, %v6356_v17  ;;  %v2704_v13 = vsel %vm2694_vm4, %v2671_v51, %v1739_v14  ;;  %3646 = vmatpush3.bf16.msra.mxu1 %v3726_v19  ;;  %v2642_v63 = vsel %vm552_vm0, %v6358_v37, %v6357_v26  ;;  %v6359_v51 = vld [vmem:[#allocation51_spill] sm:$0xff]  ;;  %v6361_v17 = vld [vmem:[#allocation20_spill] sm:$0xff] }
 0x124   : > { %2476 = vrot.lane.b32.xlu0 %v4708_v2, %s3826_s27  ;;  %v2702_v2 = vsel %vm2694_vm4, %v2669_v58, %v1737_v53  ;;  %v1064_v53 = vld [vmem:[#allocation3 + $0x1d8] ss:$2 sm:$0x1]  ;;  %v1984_v19 = vor.u32 %v1983_v11, %v1979_v15  ;;  %v1146_v26 = vld [vmem:[#allocation3 + $0x71] ss:$2 sm:$0x1]  ;;  %3592 = vmatprep.subr.bf16.mxu0 %v3727_v40 }
 0x125   : > { %2461 = vrot.lane.b32.xlu1 %v6355_v55, %s3825_s20  ;;  %v6360_v55 = vld [vmem:[#allocation64_spill] sm:$0xff]  ;;  %3639 = vmatprep.subr.bf16.mxu1 %v3727_v40  ;;  %v3728_v15 = vld [vmem:[%s6155_s3 + $0x10] sm:$0xff]  }
 0x126   : > { %v1787_v42 = vpop.permute.xlu0 %1786  ;;  %v2640_v58 = vsel %vm552_vm0, %v6361_v17, %v6360_v55  ;;  %3593 = vmatpush3.bf16.msra.mxu0 %v3727_v40 }
 0x127   : > { %v1785_v43 = vpop.permute.xlu1 %1784  ;;  %v5063_v54 = vsel %vm2727_vm5, %v2704_v13, %v1787_v42  ;;  %v2675_v13 = vsel %vm2661_vm3, %v2642_v63, %v4886_v46  ;;  %v1988_v42 = vrot.slane %v1986_v49, 1  ;;  %3647 = vmatpush3.bf16.msra.mxu1 %v3727_v40  ;;  %v6366_v40 = vld [vmem:[#allocation68_spill] sm:$0xff]  ;;  %3594 = vmatprep.subr.bf16.mxu0 %v3728_v15 }
 0x128   : > { %v5072_v14 = vsel %vm2727_vm5, %v2702_v2, %v1785_v43  ;;  %2478 = vrot.lane.b32.xlu0 %v6359_v51, %s3826_s27  ;;  %v6362_v43 = vld [vmem:[#allocation92_spill] sm:$0xff]  ;;  %v2708_v51 = vsel %vm2694_vm4, %v2675_v13, %v4982_v3  ;;  %3640 = vmatprep.subr.bf16.mxu1 %v3728_v15 }
 0x129   : > { %2492 = vrot.lane.b32.xlu1 %v4742_v10, %s3826_s27  ;;  %v2673_v2 = vsel %vm2661_vm3, %v2640_v58, %v6362_v43  ;;  %v1118_v10 = vpack.c.bf16 %v1064_v53, %v1064_v53  ;;  %v6363_v3 = vld [vmem:[#allocation60_spill] sm:$0xff]  ;;  %v6364_v58 = vld [vmem:[#allocation67_spill] sm:$0xff]  ;;  %v5107_v53 = vsel %vm1313_vm2, %v1984_v19, %v1988_v42  ;;  %v2109_v43 = vshll.u32 %v6366_v40, 16  ;;  %v6367_v42 = vld [vmem:[#allocation73_spill] sm:$0xff] }
 0x12a   : > { %v1791_v56 = vpop.permute.xlu0 %1790  ;;  %v2706_v55 = vsel %vm2694_vm4, %v2673_v2, %v4984_v48  ;;  %v1993_v49 = vshll.u32 %v6363_v3, 16  ;;  %v1236_v48 = vpack.c.bf16 %v1146_v26, %v1146_v26  ;;  %v6365_v13 = vld [vmem:[#allocation24_spill] sm:$0xff]  ;;  %3595 = vmatpush3.bf16.msra.mxu0 %v3728_v15 }
 0x12b   : > { %v1789_v46 = vpop.permute.xlu1 %1788  ;;  %v5090_v63 = vsel %vm2727_vm5, %v2708_v51, %v1791_v56  ;;  %v2644_v56 = vsel %vm552_vm0, %v6365_v13, %v6364_v58  ;;  %v3729_v19 = vld [vmem:[%s6155_s3 + $0x18] sm:$0xff]   ;;  %3648 = vmatpush3.bf16.msra.mxu1 %v3728_v15  ;;  %v2107_v15 = vshrl.u32 %v6366_v40, 16  ;;  %v6372_v13 = vld [vmem:[#allocation74_spill] sm:$0xff] }
 0x12c   : > { %v5096_v11 = vsel %vm2727_vm5, %v2706_v55, %v1789_v46  ;;  %2509 = vrot.lane.b32.xlu0 %v4788_v5, %s3827_s8  ;;  %v2677_v2 = vsel %vm2661_vm3, %v2644_v56, %v4899_v18  ;;  %v1991_v55 = vshrl.u32 %v6363_v3, 16  ;;  %v1194_v46 = vld [vmem:[#allocation3 + $0x1b1] ss:$2 sm:$0x1]  ;;  %v2650_v18 = vsel %vm552_vm0, %v4370_v38, %v6367_v42  ;;  %3596 = vmatprep.subr.bf16.mxu0 %v3729_v19  ;;  %v6368_v42 = vld [vmem:[#allocation83_spill] sm:$0xff] }
 0x12d   : > { %2494 = vrot.lane.b32.xlu1 %v4738_v23, %s3826_s27  ;;  %v2710_v26 = vsel %vm2694_vm4, %v2677_v2, %v4992_v4  ;;  %v1998_v23 = vshll.u32 %v1118_v10, 16  ;;  %v1995_v4 = vrot.slane %v1993_v49, 1  ;;  %v2114_v56 = vshll.u32 %v1236_v48, 16  ;;  %3641 = vmatprep.subr.bf16.mxu1 %v3729_v19  ;;  %v6370_v48 = vld [vmem:[#allocation77_spill] sm:$0xff] }
 0x12e   : > { %v5112_v5 = vpop.permute.xlu0 %1794  ;;  %v2683_v10 = vsel %vm2661_vm3, %v2650_v18, %v4914_v62  ;;  %v2111_v2 = vrot.slane %v2109_v43, 1  ;;  %v2205_v57 = vshll.u32 %v6368_v42, 16  ;;  %3597 = vmatpush3.bf16.msra.mxu0 %v3729_v19  ;;  %v6371_v43 = vld [vmem:[#allocation28_spill] sm:$0xff] }
 0x12f   : > { %v1793_v51 = vpop.permute.xlu1 %1792  ;;  %v2716_v38 = vsel %vm2694_vm4, %v2683_v10, %v4998_v21  ;;  %3649 = vmatpush3.bf16.msra.mxu1 %v3729_v19  ;;  %v2654_v21 = vsel %vm552_vm0, %v6371_v43, %v6370_v48  ;;  %v2000_v18 = vrot.slane %v1998_v23, 1  ;;  %v2116_v10 = vrot.slane %v2114_v56, 1  ;;  %v1152_v48 = vld [vmem:[#allocation3 + $0x99] ss:$2 sm:$0x1] }
 0x130   : > { %v5124_v58 = vsel %vm2727_vm5, %v2710_v26, %v1793_v51  ;;  %2070 = vrot.lane.b32.xlu0 %v5107_v53, %s3820_s11  ;;  %v1252_v51 = vpack.c.bf16 %v1194_v46, %v1194_v46  ;;  %v1996_v46 = vor.u32 %v1995_v4, %v1991_v55  ;;  %v2112_v19 = vor.u32 %v2111_v2, %v2107_v15  ;;  %v3731_v2 = vld [vmem:[%s6155_s3 + $0x28] sm:$0xff]  }
 0x131   : > { %2525 = vrot.lane.b32.xlu1 %v4838_v59, %s3827_s8  ;;  %v3730_v59 = vld [vmem:[%s6155_s3 + $0x20] sm:$0xff]   ;;  %v2207_v56 = vrot.slane %v2205_v57, 1 }
 0x132   : > { %v1799_v26 = vpop.permute.xlu0 %1798  ;;  %3598 = vmatprep.subr.bf16.mxu0 %v3730_v59  ;;  %3642 = vmatprep.subr.bf16.mxu1 %v3730_v59 }
 0x133   : > { %v5136_v49 = vpop.permute.xlu1 %1796  ;;  %v5139_v62 = vsel %vm2727_vm5, %v2716_v38, %v1799_v26  ;;  %v2652_v38 = vsel %vm552_vm0, %v6373_v34, %v6372_v13  ;;  %v2687_v26 = vsel %vm2661_vm3, %v2654_v21, %v4933_v27  ;;  %v2210_v13 = vshll.u32 %v1252_v51, 16  ;;  %3599 = vmatpush3.bf16.msra.mxu0 %v3730_v59  ;;  %3650 = vmatpush3.bf16.msra.mxu1 %v3730_v59  ;;  %v6376_v21 = vld [vmem:[#allocation78_spill] sm:$0xff] }
 0x134   : > { %6369 = vst [vmem:[#allocation45_spill] sm:$0xff] %v5136_v49  ;;  %2527 = vrot.lane.b32.xlu0 %v6368_v42, %s3827_s8  ;;  %v2203_v49 = vshrl.u32 %v6368_v42, 16  ;;  %v2685_v55 = vsel %vm2661_vm3, %v2652_v38, %v4937_v61  ;;  %v2720_v23 = vsel %vm2694_vm4, %v2687_v26, %v5006_v39  ;;  %v6374_v61 = vld [vmem:[#allocation81_spill] sm:$0xff]  ;;  %v6375_v42 = vld [vmem:[#allocation31_spill] sm:$0xff]  ;;  %v1238_v51 = vpack.c.bf16 %v1152_v48, %v1152_v48  ;;  %v6377_v38 = vld [vmem:[#allocation32_spill] sm:$0xff] }
 0x135   : > { %2511 = vrot.lane.b32.xlu1 %v6366_v40, %s3827_s8  ;;  %v2718_v27 = vsel %vm2694_vm4, %v2685_v55, %v5008_v22  ;;  %v2658_v39 = vsel %vm552_vm0, %v6375_v42, %v6374_v61  ;;  %v5178_v22 = vsel %vm1313_vm2, %v1996_v46, %v2000_v18  ;;  %v2656_v26 = vsel %vm552_vm0, %v6377_v38, %v6376_v21 }
 0x136   : > { %v1803_v4 = vpop.permute.xlu0 %1802  ;;  %v2691_v59 = vsel %vm2661_vm3, %v2658_v39, %v4947_v20  ;;  %v5188_v55 = vsel %vm1313_vm2, %v2112_v19, %v2116_v10  ;;  %3600 = vmatprep.subr.bf16.mxu0 %v3731_v2  ;;  %v2208_v48 = vor.u32 %v2207_v56, %v2203_v49  ;;  %3643 = vmatprep.subr.bf16.mxu1 %v3731_v2  ;;  %v1200_v19 = vld [vmem:[#allocation3 + $0x1d9] ss:$2 sm:$0x1]  ;;  %v6379_v49 = vld [vmem:[#allocation82_spill] sm:$0xff]  ;;  %v2126_v61 = vshll.u32 %v1238_v51, 16  ;;  %v3733_v51 = vld [vmem:[%s6155_s3 + $0x38] sm:$0xff]  }
 0x137   : > { %v1801_v40 = vpop.permute.xlu1 %1800  ;;  %v5164_v15 = vsel %vm2727_vm5, %v2720_v23, %v1803_v4  ;;  %v6378_v23 = vld [vmem:[#allocation72_spill] sm:$0xff]  ;;  %v2724_v46 = vsel %vm2694_vm4, %v2691_v59, %v5014_v32  ;;  %3601 = vmatpush3.bf16.msra.mxu0 %v3731_v2  ;;  %3651 = vmatpush3.bf16.msra.mxu1 %v3731_v2  ;;  %v6380_v56 = vld [vmem:[#allocation34_spill] sm:$0xff]  ;;  %v6381_v59 = vld [vmem:[#allocation87_spill] sm:$0xff] }
 0x138   : > { %v5173_v57 = vsel %vm2727_vm5, %v2718_v27, %v1801_v40  ;;  %2569 = vrot.lane.b32.xlu0 %v4942_v12, %s3828_s30  ;;  %v2121_v4 = vshll.u32 %v6378_v23, 16  ;;  %v2689_v12 = vsel %vm2661_vm3, %v2656_v26, %v4950_v31  ;;  %v2212_v27 = vrot.slane %v2210_v13, 1  ;;  %v3732_v31 = vld [vmem:[%s6155_s3 + $0x30] sm:$0xff]  }
 0x139   : > { %2553 = vrot.lane.b32.xlu1 %v4902_v29, %s3828_s30  ;;  %v2722_v29 = vsel %vm2694_vm4, %v2689_v12, %v5016_v35  ;;  %v2660_v35 = vsel %vm552_vm0, %v6380_v56, %v6379_v49  ;;  %v2119_v13 = vshrl.u32 %v6378_v23, 16  ;;  %3602 = vmatprep.subr.bf16.mxu0 %v3732_v31  ;;  %v1254_v26 = vpack.c.bf16 %v1200_v19, %v1200_v19  ;;  %v6425_v56 = vld [vmem:[#allocation26_spill] sm:$0xff] }
 0x13a   : > { %v1807_v18 = vpop.permute.xlu0 %1806  ;;  %v2123_v40 = vrot.slane %v2121_v4, 1  ;;  %v2693_v2 = vsel %vm2661_vm3, %v2660_v35, %v4963_v24  ;;  %v2213_v21 = vsel %vm1313_vm2, %v2208_v48, %v2212_v27  ;;  %v2217_v12 = vshll.u32 %v6381_v59, 16  ;;  %3644 = vmatprep.subr.bf16.mxu1 %v3732_v31 }
 0x13b   : > { %v1805_v20 = vpop.permute.xlu1 %1804  ;;  %v5198_v10 = vsel %vm2727_vm5, %v2724_v46, %v1807_v18  ;;  %3603 = vmatpush3.bf16.msra.mxu0 %v3732_v31  ;;  %v2726_v46 = vsel %vm2694_vm4, %v2693_v2, %v5024_v7  ;;  %3652 = vmatpush3.bf16.msra.mxu1 %v3732_v31  ;;  %v2128_v48 = vrot.slane %v2126_v61, 1  ;;  %v2215_v7 = vshrl.u32 %v6381_v59, 16 }
 0x13c   : > { %v5204_v32 = vsel %vm2727_vm5, %v2722_v29, %v1805_v20  ;;  %2278 = vrot.lane.b32.xlu0 %v5188_v55, %s3821_s12  ;;  %v2124_v4 = vor.u32 %v2123_v40, %v2119_v13  ;;  %3604 = vmatprep.subr.bf16.mxu0 %v3733_v51  ;;  %v2219_v29 = vrot.slane %v2217_v12, 1  ;;  %v2222_v20 = vshll.u32 %v1254_v26, 16 }
 0x13d   : > { %2072 = vrot.lane.b32.xlu1 %v5178_v22, %s3820_s11  ;;  %3645 = vmatprep.subr.bf16.mxu1 %v3733_v51 }
 0x13e   : > { %v5216_v39 = vpop.permute.xlu0 %1826  ;;  %v2220_v35 = vor.u32 %v2219_v29, %v2215_v7  ;;  %v2224_v13 = vrot.slane %v2222_v20, 1  ;;  %v6400_v29 = vld [vmem:[#allocation21_spill] sm:$0xff]  ;;  %v6401_v20 = vld [vmem:[#allocation35_spill] sm:$0xff] }
 0x13f   : > { %v1809_v18 = vpop.permute.xlu1 %1808  ;;  %3605 = vmatpush3.bf16.msra.mxu0 %v3733_v51  ;;  %3653 = vmatpush3.bf16.msra.mxu1 %v3733_v51  ;;  %v6394_v51 = vld [vmem:[#allocation8_spill] sm:$0xff] }
 0x140   : > { %v2759_v24 = vsel %vm2727_vm5, %v2726_v46, %v1809_v18  ;;  %2555 = vrot.lane.b32.xlu0 %v4895_v1, %s3828_s30  ;;  %v5241_v1 = vsel %vm1313_vm2, %v2124_v4, %v2128_v48  ;;  %v6391_v18 = vld [vmem:[#allocation7_spill] sm:$0xff] }
 0x141   : > { %2294 = vrot.lane.b32.xlu1 %v2213_v21, %s3821_s12 }
 0x142   : > { %v1831_v27 = vpop.permute.xlu0 %1830 }
 0x143   : > { %v5230_v19 = vpop.permute.xlu1 %1828  ;;  %v5234_v31 = vsel %vm2760_vm6, %v5040_v9, %v1831_v27 }
 0x144   : > { %6382 = vst [vmem:[#allocation90_spill] sm:$0xff] %v5234_v31  ;;  %2597 = vrot.lane.b32.xlu0 %v4956_v50, %s3829_s24 }
 0x145   : > { %2571 = vrot.lane.b32.xlu1 %v5107_v53, %s3828_s30  ;;  %v5256_v53 = vsel %vm1313_vm2, %v2220_v35, %v2224_v13  ;;  %v6404_v35 = vld [vmem:[#allocation40_spill] sm:$0xff]  ;;  %v6405_v13 = vld [vmem:[#allocation33_spill] sm:$0xff] }
 0x146   : > { %v1835_v49 = vpop.permute.xlu0 %1834 }
 0x147   : > { %v1833_v40 = vpop.permute.xlu1 %1832  ;;  %v5245_v61 = vsel %vm2760_vm6, %v5063_v54, %v1835_v49 }
 0x148   : > { %6383 = vst [vmem:[#allocation66_spill] sm:$0xff] %v5245_v61  ;;  %v5249_v9 = vsel %vm2760_vm6, %v5072_v14, %v1833_v40  ;;  %2280 = vrot.lane.b32.xlu0 %v5241_v1, %s3821_s12  ;;  %v1070_v40 = vld [vmem:[#allocation3 + $0x200] ss:$2 sm:$0x1] }
 0x149   : > { %6384 = vst [vmem:[#allocation19_spill] sm:$0xff] %v5249_v9  ;;  %2613 = vrot.lane.b32.xlu1 %v4970_v6, %s3829_s24 }
 0x14a   : > { %v1839_v50 = vpop.permute.xlu0 %1838 }
 0x14b   : > { %v1837_v2 = vpop.permute.xlu1 %1836  ;;  %v5260_v26 = vsel %vm2760_vm6, %v5090_v63, %v1839_v50 }
 0x14c   : > { %6385 = vst [vmem:[#allocation51_spill] sm:$0xff] %v5260_v26  ;;  %v5264_v54 = vsel %vm2760_vm6, %v5096_v11, %v1837_v2  ;;  %2326 = vrot.lane.b32.xlu0 %v4315_v33, %s3822_s13  ;;  %v548_v2 = vld [vmem:[%s4071_s5 + $0x3e0] sm:$0xff] }
 0x14d   : > { %6386 = vst [vmem:[#allocation64_spill] sm:$0xff] %v5264_v54  ;;  %2296 = vrot.lane.b32.xlu1 %v5256_v53, %s3821_s12  ;;  %678 = vst.msk [vmem:[#allocation2 + $0x281] sm:$0xff] %vm552_vm0, %v548_v2  ;;  %v6415_v54 = vld [vmem:[#allocation85_spill] sm:$0xff] }
 0x14e   : > { %v5270_v6 = vpop.permute.xlu0 %1842 }
 0x14f   : > { %v1841_v14 = vpop.permute.xlu1 %1840 }
 0x150   : > { %v5274_v12 = vsel %vm2760_vm6, %v5124_v58, %v1841_v14  ;;  %2599 = vrot.lane.b32.xlu0 %v5188_v55, %s3829_s24  ;;  %v549_v14 = vld [vmem:[%s4071_s5 + $0x3e8] sm:$0xff] }
 0x151   : > { %6387 = vst [vmem:[#allocation20_spill] sm:$0xff] %v5274_v12  ;;  %2342 = vrot.lane.b32.xlu1 %v6373_v34, %s3822_s13  ;;  %679 = vst.msk [vmem:[#allocation2 + $0x289] sm:$0xff] %vm552_vm0, %v549_v14 }
 0x152   : > { %v1847_v63 = vpop.permute.xlu0 %1846 }
 0x153   : > { %v5280_v11 = vpop.permute.xlu1 %1844  ;;  %v5284_v33 = vsel %vm2760_vm6, %v5139_v62, %v1847_v63  ;;  %v550_v63 = vld [vmem:[%s4071_s5 + $0x3f0] sm:$0xff] }
 0x154   : > { %6388 = vst [vmem:[#allocation92_spill] sm:$0xff] %v5284_v33  ;;  %2328 = vrot.lane.b32.xlu0 %v4309_v16, %s3822_s13  ;;  %680 = vst.msk [vmem:[#allocation2 + $0x291] sm:$0xff] %vm552_vm0, %v550_v63  ;;  %v2227_v33 = vshrl.u32 %v6415_v54, 16 }
 0x155   : > { %2615 = vrot.lane.b32.xlu1 %v2213_v21, %s3829_s24 }
 0x156   : > { %v1851_v58 = vpop.permute.xlu0 %1850 }
 0x157   : > { %v1849_v46 = vpop.permute.xlu1 %1848  ;;  %v5291_v55 = vsel %vm2760_vm6, %v5164_v15, %v1851_v58 }
 0x158   : > { %6389 = vst [vmem:[#allocation60_spill] sm:$0xff] %v5291_v55  ;;  %v5295_v34 = vsel %vm2760_vm6, %v5173_v57, %v1849_v46  ;;  %2359 = vrot.lane.b32.xlu0 %v6391_v18, %s3823_s14  ;;  %v6395_v57 = vld [vmem:[#allocation13_spill] sm:$0xff]  ;;  %v551_v46 = vld [vmem:[%s4071_s5 + $0x3f8] sm:$0xff]  ;;  %v6407_v18 = vld [vmem:[#allocation39_spill] sm:$0xff]  ;;  %s305_s5 = sand.u32 1, %s3796_s16  }
 0x159   : > { %6390 = vst [vmem:[#allocation67_spill] sm:$0xff] %v5295_v34  ;;  %2344 = vrot.lane.b32.xlu1 %v6371_v43, %s3822_s13  ;;  %681 = vst.msk [vmem:[#allocation2 + $0x299] sm:$0xff] %vm552_vm0, %v551_v46 }
 0x15a   : > { %v1855_v62 = vpop.permute.xlu0 %1854 }
 0x15b   : > { %v1853_v16 = vpop.permute.xlu1 %1852  ;;  %v5303_v21 = vsel %vm2760_vm6, %v5198_v10, %v1855_v62  ;;  %v6397_v10 = vld [vmem:[#allocation22_spill] sm:$0xff]  ;;  %v6408_v62 = vld [vmem:[#allocation47_spill] sm:$0xff] }
 0x15c   : > { %6392 = vst [vmem:[#allocation68_spill] sm:$0xff] %v5303_v21  ;;  %v5307_v15 = vsel %vm2760_vm6, %v5204_v32, %v1853_v16  ;;  %2361 = vrot.lane.b32.xlu0 %v6394_v51, %s3823_s14  ;;  %v6398_v32 = vld [vmem:[#allocation15_spill] sm:$0xff]  ;;  %v1120_v16 = vpack.c.bf16 %v1070_v40, %v1070_v40  ;;  %v6412_v40 = vld [vmem:[#allocation52_spill] sm:$0xff]  ;;  %v1206_v21 = vld [vmem:[#allocation3 + $0x201] ss:$2 sm:$0x1] }
 0x15d   : > { %6393 = vst [vmem:[#allocation73_spill] sm:$0xff] %v5307_v15  ;;  %2375 = vrot.lane.b32.xlu1 %v6395_v57, %s3823_s14  ;;  %v6409_v51 = vld [vmem:[#allocation59_spill] sm:$0xff]  ;;  %v1256_v34 = vpack.c.bf16 %v1206_v21, %v1206_v21 }
 0x15e   : > { %v5313_v4 = vpop.permute.xlu0 %2050  ;;  %v2005_v57 = vshll.u32 %v6409_v51, 16  ;;  %v1164_v15 = vld [vmem:[#allocation3 + $0xe9] ss:$2 sm:$0x1] }
 0x15f   : > { %v1857_v43 = vpop.permute.xlu1 %1856  ;;  %v2234_v21 = vshll.u32 %v1256_v34, 16 }
 0x160   : > { %v5316_v48 = vsel %vm2760_vm6, %v2759_v24, %v1857_v43  ;;  %2403 = vrot.lane.b32.xlu0 %v6397_v10, %s3824_s2 }
 0x161   : > { %6396 = vst [vmem:[#allocation83_spill] sm:$0xff] %v5316_v48  ;;  %2377 = vrot.lane.b32.xlu1 %v6398_v32, %s3823_s14  ;;  %v6410_v32 = vld [vmem:[#allocation53_spill] sm:$0xff]  ;;  %v6413_v48 = vld [vmem:[#allocation71_spill] sm:$0xff]  ;;  %v2236_v34 = vrot.slane %v2234_v21, 1 }
 0x162   : > { %v5322_v27 = vpop.permute.xlu0 %2054 }
 0x163   : > { %6399 = vst [vmem:[#allocation77_spill] sm:$0xff] %v5322_v27  ;;  %v5324_v7 = vpop.permute.xlu1 %2052 }
 0x164   : > { %2405 = vrot.lane.b32.xlu0 %v6400_v29, %s3824_s2  ;;  %v6411_v29 = vld [vmem:[#allocation46_spill] sm:$0xff] }
 0x165   : > { %2419 = vrot.lane.b32.xlu1 %v6401_v20, %s3824_s2  ;;  %v2003_v20 = vshrl.u32 %v6409_v51, 16 }
 0x166   : > { %v5330_v49 = vpop.permute.xlu0 %2058 }
 0x167   : > { %6402 = vst [vmem:[#allocation28_spill] sm:$0xff] %v5330_v49  ;;  %v5332_v24 = vpop.permute.xlu1 %2056 }
 0x168   : > { %6403 = vst [vmem:[#allocation74_spill] sm:$0xff] %v5332_v24  ;;  %2447 = vrot.lane.b32.xlu0 %v6404_v35, %s3825_s20  ;;  %v2007_v35 = vrot.slane %v2005_v57, 1 }
 0x169   : > { %2421 = vrot.lane.b32.xlu1 %v6405_v13, %s3824_s2  ;;  %v2010_v13 = vshll.u32 %v1120_v16, 16 }
 0x16a   : > { %v5338_v50 = vpop.permute.xlu0 %2066  ;;  %v2008_v63 = vor.u32 %v2007_v35, %v2003_v20  ;;  %v6414_v35 = vld [vmem:[#allocation63_spill] sm:$0xff] }
 0x16b   : > { %v5343_v58 = vpop.permute.xlu1 %2060  ;;  %v2012_v46 = vrot.slane %v2010_v13, 1  ;;  %v2017_v13 = vshll.u32 %v6414_v35, 16 }
 0x16c   : > { %6406 = vst [vmem:[#allocation30_spill] sm:$0xff] %v5343_v58  ;;  %2449 = vrot.lane.b32.xlu0 %v6407_v18, %s3825_s20  ;;  %v2229_v58 = vshll.u32 %v6415_v54, 16 }
 0x16d   : > { %2463 = vrot.lane.b32.xlu1 %v6408_v62, %s3825_s20  ;;  %v1076_v62 = vld [vmem:[#allocation3 + $0x228] ss:$2 sm:$0x1]  ;;  %v2013_v16 = vsel %vm1313_vm2, %v2008_v63, %v2012_v46  ;;  %v2019_v26 = vrot.slane %v2017_v13, 1 }
 0x16e   : > { %v5355_v43 = vpop.permute.xlu0 %2274  ;;  %v1122_v57 = vpack.c.bf16 %v1076_v62, %v1076_v62  ;;  %v2231_v13 = vrot.slane %v2229_v58, 1 }
 0x16f   : > { %v5357_v10 = vpop.permute.xlu1 %2068 }
 0x170   : > { %2480 = vrot.lane.b32.xlu0 %v6410_v32, %s3826_s27  ;;  %v1158_v32 = vld [vmem:[#allocation3 + $0xc1] ss:$2 sm:$0x1] }
 0x171   : > { %2465 = vrot.lane.b32.xlu1 %v6411_v29, %s3825_s20 }
 0x172   : > { %v5364_v2 = vpop.permute.xlu0 %2276 }
 0x173   : > { %v5366_v14 = vpop.permute.xlu1 %2290 }
 0x174   : > { %2482 = vrot.lane.b32.xlu0 %v6412_v40, %s3826_s27  ;;  %v1240_v40 = vpack.c.bf16 %v1158_v32, %v1158_v32  ;;  %v2015_v32 = vshrl.u32 %v6414_v35, 16 }
 0x175   : > { %2496 = vrot.lane.b32.xlu1 %v6363_v3, %s3826_s27  ;;  %v2133_v3 = vshll.u32 %v6413_v48, 16 }
 0x176   : > { %v5372_v18 = vpop.permute.xlu0 %2322  ;;  %v2138_v46 = vshll.u32 %v1240_v40, 16  ;;  %v2020_v24 = vor.u32 %v2019_v26, %v2015_v32  ;;  %v1212_v32 = vld [vmem:[#allocation3 + $0x229] ss:$2 sm:$0x1] }
 0x177   : > { %v5374_v29 = vpop.permute.xlu1 %2292  ;;  %v2135_v63 = vrot.slane %v2133_v3, 1 }
 0x178   : > { %2513 = vrot.lane.b32.xlu0 %v6378_v23, %s3827_s8  ;;  %v2022_v23 = vshll.u32 %v1122_v57, 16  ;;  %v2140_v3 = vrot.slane %v2138_v46, 1 }
 0x179   : > { %2498 = vrot.lane.b32.xlu1 %v6409_v51, %s3826_s27  ;;  %v2131_v51 = vshrl.u32 %v6413_v48, 16 }
 0x17a   : > { %v5382_v20 = vpop.permute.xlu0 %2324 }
 0x17b   : > { %v5385_v12 = vpop.permute.xlu1 %2338  ;;  %v2136_v57 = vor.u32 %v2135_v63, %v2131_v51  ;;  %v6416_v51 = vld [vmem:[#allocation76_spill] sm:$0xff] }
 0x17c   : > { %2074 = vrot.lane.b32.xlu0 %v2013_v16, %s3820_s11  ;;  %v2145_v63 = vshll.u32 %v6416_v51, 16 }
 0x17d   : > { %2529 = vrot.lane.b32.xlu1 %v6381_v59, %s3827_s8  ;;  %v2024_v59 = vrot.slane %v2022_v23, 1  ;;  %v1242_v23 = vpack.c.bf16 %v1164_v15, %v1164_v15 }
 0x17e   : > { %v5391_v62 = vpop.permute.xlu0 %2355 }
 0x17f   : > { %v5395_v9 = vpop.permute.xlu1 %2340  ;;  %v5415_v26 = vsel %vm1313_vm2, %v2020_v24, %v2024_v59  ;;  %v2150_v15 = vshll.u32 %v1242_v23, 16  ;;  %v1258_v24 = vpack.c.bf16 %v1212_v32, %v1212_v32  ;;  %v6417_v59 = vld [vmem:[#allocation88_spill] sm:$0xff] }
 0x180   : > { %2531 = vrot.lane.b32.xlu0 %v6415_v54, %s3827_s8  ;;  %v2232_v54 = vor.u32 %v2231_v13, %v2227_v33  ;;  %v2241_v33 = vshll.u32 %v6417_v59, 16  ;;  %v2239_v23 = vshrl.u32 %v6417_v59, 16 }
 0x181   : > { %2515 = vrot.lane.b32.xlu1 %v6413_v48, %s3827_s8  ;;  %v2141_v48 = vsel %vm1313_vm2, %v2136_v57, %v2140_v3  ;;  %v2152_v49 = vrot.slane %v2150_v15, 1  ;;  %v2246_v27 = vshll.u32 %v1258_v24, 16 }
 0x182   : > { %v5401_v40 = vpop.permute.xlu0 %2357  ;;  %v2237_v3 = vsel %vm1313_vm2, %v2232_v54, %v2236_v34 }
 0x183   : > { %v5404_v61 = vpop.permute.xlu1 %2371  ;;  %v2248_v32 = vrot.slane %v2246_v27, 1 }
 0x184   : > { %2573 = vrot.lane.b32.xlu0 %v5178_v22, %s3828_s30  ;;  %v2147_v22 = vrot.slane %v2145_v63, 1  ;;  %v2243_v63 = vrot.slane %v2241_v33, 1  ;;  %v6419_v33 = vld [vmem:[#allocation9_spill] sm:$0xff] }
 0x185   : > { %2557 = vrot.lane.b32.xlu1 %v4919_v0, %s3828_s30  ;;  %v2143_v0 = vshrl.u32 %v6416_v51, 16 }
 0x186   : > { %v5412_v46 = vpop.permute.xlu0 %2399  ;;  %v2244_v34 = vor.u32 %v2243_v63, %v2239_v23  ;;  %v6422_v23 = vld [vmem:[#allocation14_spill] sm:$0xff]  ;;  %v6423_v63 = vld [vmem:[#allocation16_spill] sm:$0xff] }
 0x187   : > { %v5417_v58 = vpop.permute.xlu1 %2373  ;;  %v2148_v21 = vor.u32 %v2147_v22, %v2143_v0 }
 0x188   : > { %2282 = vrot.lane.b32.xlu0 %v2141_v48, %s3821_s12 }
 0x189   : > { %2076 = vrot.lane.b32.xlu1 %v5415_v26, %s3820_s11  ;;  %v5441_v54 = vsel %vm1313_vm2, %v2148_v21, %v2152_v49  ;;  %v6420_v21 = vld [vmem:[#allocation10_spill] sm:$0xff] }
 0x18a   : > { %v5423_v57 = vpop.permute.xlu0 %2401 }
 0x18b   : > { %v5427_v13 = vpop.permute.xlu1 %2415 }
 0x18c   : > { %2559 = vrot.lane.b32.xlu0 %v4911_v30, %s3828_s30 }
 0x18d   : > { %2298 = vrot.lane.b32.xlu1 %v2237_v3, %s3821_s12 }
 0x18e   : > { %v5432_v31 = vpop.permute.xlu0 %2443 }
 0x18f   : > { %v5435_v55 = vpop.permute.xlu1 %2417 }
 0x190   : > { %2601 = vrot.lane.b32.xlu0 %v5241_v1, %s3829_s24  ;;  %v5452_v1 = vsel %vm1313_vm2, %v2244_v34, %v2248_v32  ;;  %v6424_v34 = vld [vmem:[#allocation84_spill] sm:$0xff] }
 0x191   : > { %2575 = vrot.lane.b32.xlu1 %v2013_v16, %s3828_s30 }
 0x192   : > { %v5443_v30 = vpop.permute.xlu0 %2445 }
 0x193   : > { %v5445_v0 = vpop.permute.xlu1 %2459 }
 0x194   : > { %2284 = vrot.lane.b32.xlu0 %v5441_v54, %s3821_s12 }
 0x195   : > { %2617 = vrot.lane.b32.xlu1 %v5256_v53, %s3829_s24 }
 0x196   : > { %v2477_v22 = vpop.permute.xlu0 %2476 }
 0x197   : > { %v5454_v16 = vpop.permute.xlu1 %2461 }
 0x198   : > { %2330 = vrot.lane.b32.xlu0 %v6361_v17, %s3822_s13 }
 0x199   : > { %2300 = vrot.lane.b32.xlu1 %v5452_v1, %s3821_s12 }
 0x19a   : > { %v5460_v27 = vpop.permute.xlu0 %2478 }
 0x19b   : > { %v5462_v49 = vpop.permute.xlu1 %2492 }
 0x19c   : > { %2603 = vrot.lane.b32.xlu0 %v2141_v48, %s3829_s24 }
 0x19d   : > { %2346 = vrot.lane.b32.xlu1 %v6377_v38, %s3822_s13 }
 0x19e   : > { %v2510_v53 = vpop.permute.xlu0 %2509 }
 0x19f   : > { %v5467_v15 = vpop.permute.xlu1 %2494 }
 0x1a0   : > { %2332 = vrot.lane.b32.xlu0 %v6358_v37, %s3822_s13  ;;  %v6421_v37 = vld [vmem:[#allocation58_spill] sm:$0xff] }
 0x1a1   : > { %2619 = vrot.lane.b32.xlu1 %v2237_v3, %s3829_s24  ;;  %v2630_v3 = vsel %vm552_vm0, %v6422_v23, %v6421_v37  ;;  %v6426_v23 = vld [vmem:[#allocation17_spill] sm:$0xff] }
 0x1a2   : > { %v5472_v17 = vpop.permute.xlu0 %2070  ;;  %v2663_v32 = vsel %vm2661_vm3, %v2630_v3, %v6424_v34  ;;  %v6427_v3 = vld [vmem:[#allocation69_spill] sm:$0xff] }
 0x1a3   : > { %6418 = vst [vmem:[#allocation81_spill] sm:$0xff] %v5472_v17  ;;  %v5474_v24 = vpop.permute.xlu1 %2525 }
 0x1a4   : > { %2363 = vrot.lane.b32.xlu0 %v6419_v33, %s3823_s14 }
 0x1a5   : > { %2348 = vrot.lane.b32.xlu1 %v6375_v42, %s3822_s13  ;;  %v2696_v42 = vsel %vm2694_vm4, %v2663_v32, %v4958_v52 }
 0x1a6   : > { %v5480_v48 = vpop.permute.xlu0 %2527 }
 0x1a7   : > { %v5482_v38 = vpop.permute.xlu1 %2511 }
 0x1a8   : > { %2365 = vrot.lane.b32.xlu0 %v6420_v21, %s3823_s14  ;;  %v2729_v21 = vsel %vm2727_vm5, %v2696_v42, %v5022_v41 }
 0x1a9   : > { %2379 = vrot.lane.b32.xlu1 %v6423_v63, %s3823_s14  ;;  %v2762_v37 = vsel %vm2760_vm6, %v2729_v21, %v5216_v39  ;;  %v6428_v63 = vld [vmem:[#allocation23_spill] sm:$0xff] }
 0x1aa   : > { %v5493_v33 = vpop.permute.xlu0 %2569  ;;  %v2646_v52 = vsel %vm552_vm0, %v6428_v63, %v6427_v3  ;;  %v2795_v34 = vsel %vm2793_vm7, %v2762_v37, %v5313_v4  ;;  %v6429_v4 = vld [vmem:[#allocation25_spill] sm:$0xff] }
 0x1ab   : > { %v2554_v17 = vpop.permute.xlu1 %2553  ;;  %v2828_v39 = vsel %vm2826_vm8, %v2795_v34, %v5355_v43  ;;  %v6430_v43 = vld [vmem:[#allocation37_spill] sm:$0xff]  ;;  %v6431_v34 = vld [vmem:[#allocation42_spill] sm:$0xff] }
 0x1ac   : > { %2407 = vrot.lane.b32.xlu0 %v6425_v56, %s3824_s2  ;;  %v2679_v56 = vsel %vm2661_vm3, %v2646_v52, %v4897_v25  ;;  %v2861_v21 = vsel %vm2859_vm9, %v2828_v39, %v5372_v18  ;;  %v6433_v39 = vld [vmem:[#allocation36_spill] sm:$0xff] }
 0x1ad   : > { %2381 = vrot.lane.b32.xlu1 %v6426_v23, %s3823_s14  ;;  %v2712_v42 = vsel %vm2694_vm4, %v2679_v56, %v4990_v8  ;;  %v2894_v25 = vsel %vm2892_vm10, %v2861_v21, %v5391_v62 }
 0x1ae   : > { %v5510_v41 = vpop.permute.xlu0 %2278  ;;  %v2745_v37 = vsel %vm2727_vm5, %v2712_v42, %v5112_v5  ;;  %v2927_v18 = vsel %vm2925_vm11, %v2894_v25, %v5412_v46  ;;  %v6432_v46 = vld [vmem:[#allocation61_spill] sm:$0xff]  ;;  %v6434_v42 = vld [vmem:[#allocation86_spill] sm:$0xff] }
 0x1af   : > { %v5516_v32 = vpop.permute.xlu1 %2072  ;;  %v2778_v8 = vsel %vm2760_vm6, %v2745_v37, %v5270_v6  ;;  %v2960_v5 = vsel %vm2958_vm12, %v2927_v18, %v5432_v31  ;;  %v2632_v56 = vsel %vm552_vm0, %v4283_v45, %v6432_v46  ;;  %v1034_v37 = vld [vmem:[#allocation3 + $0x110] ss:$2 sm:$0x1] }
 0x1b0   : > { %2409 = vrot.lane.b32.xlu0 %v6429_v4, %s3824_s2  ;;  %v2811_v3 = vsel %vm2793_vm7, %v2778_v8, %v5338_v50  ;;  %v2993_v6 = vsel %vm2991_vm13, %v2960_v5, %v2477_v22  ;;  %v6436_v8 = vld [vmem:[#allocation54_spill] sm:$0xff]  ;;  %v1082_v46 = vld [vmem:[#allocation3 + $0x250] ss:$2 sm:$0x1] }
 0x1b1   : > { %2423 = vrot.lane.b32.xlu1 %v6430_v43, %s3824_s2  ;;  %v2844_v52 = vsel %vm2826_vm8, %v2811_v3, %v5366_v14  ;;  %v3026_v31 = vsel %vm3024_vm14, %v2993_v6, %v2510_v53  ;;  %v2665_v14 = vsel %vm2661_vm3, %v2632_v56, %v6434_v42  ;;  %v1933_v18 = vshll.u32 %v6436_v8, 16  ;;  %v6440_v42 = vld [vmem:[#allocation45_spill] sm:$0xff] }
 0x1b2   : > { %v5534_v23 = vpop.permute.xlu0 %2555  ;;  %v2877_v50 = vsel %vm2859_vm9, %v2844_v52, %v5385_v12  ;;  %v3059_v21 = vsel %vm3057_vm15, %v3026_v31, %v2554_v17  ;;  %v2698_v45 = vsel %vm2694_vm4, %v2665_v14, %v4972_v28  ;;  %v6435_v17 = vld [vmem:[#allocation41_spill] sm:$0xff]  ;;  %v6437_v28 = vld [vmem:[#allocation70_spill] sm:$0xff]  ;;  %v1931_v31 = vshrl.u32 %v6436_v8, 16 }
 0x1b3   : > { %v5540_v62 = vpop.permute.xlu1 %2294  ;;  %v2910_v22 = vsel %vm2892_vm10, %v2877_v50, %v5404_v61  ;;  %v2731_v43 = vsel %vm2727_vm5, %v2698_v45, %v5037_v44  ;;  %v6438_v44 = vld [vmem:[#allocation49_spill] sm:$0xff] }
 0x1b4   : > { %2451 = vrot.lane.b32.xlu0 %v6431_v34, %s3825_s20  ;;  %v2943_v12 = vsel %vm2925_vm11, %v2910_v22, %v5427_v13  ;;  %v2648_v13 = vsel %vm552_vm0, %v4375_v60, %v6437_v28  ;;  %v2764_v3 = vsel %vm2760_vm6, %v2731_v43, %v5230_v19 }
 0x1b5   : > { %2425 = vrot.lane.b32.xlu1 %v6433_v39, %s3824_s2  ;;  %v2976_v61 = vsel %vm2958_vm12, %v2943_v12, %v5445_v0  ;;  %v1108_v0 = vpack.c.bf16 %v1034_v37, %v1034_v37  ;;  %v2681_v52 = vsel %vm2661_vm3, %v2648_v13, %v4916_v36  ;;  %v2797_v6 = vsel %vm2793_vm7, %v2764_v3, %v5324_v7  ;;  %v6439_v7 = vld [vmem:[#allocation55_spill] sm:$0xff]  ;;  %v6442_v37 = vld [vmem:[#allocation62_spill] sm:$0xff] }
 0x1b6   : > { %v2598_v4 = vpop.permute.xlu0 %2597  ;;  %v3009_v5 = vsel %vm2991_vm13, %v2976_v61, %v5462_v49  ;;  %v2714_v19 = vsel %vm2694_vm4, %v2681_v52, %v5000_v47  ;;  %v2830_v49 = vsel %vm2826_vm8, %v2797_v6, %v5364_v2  ;;  %v1935_v39 = vrot.slane %v1933_v18, 1  ;;  %v1040_v18 = vld [vmem:[#allocation3 + $0x138] ss:$2 sm:$0x1] }
 0x1b7   : > { %v5564_v53 = vpop.permute.xlu1 %2571  ;;  %v3092_v25 = vsel %vm3090_vm1, %v3059_v21, %v2598_v4  ;;  %v3042_v34 = vsel %vm3024_vm14, %v3009_v5, %v5474_v24  ;;  %v2863_v36 = vsel %vm2859_vm9, %v2830_v49, %v5382_v20  ;;  %v2747_v47 = vsel %vm2727_vm5, %v2714_v19, %v6440_v42  ;;  %v1088_v6 = vld [vmem:[#allocation3 + $0x278] ss:$2 sm:$0x1] }
 0x1b8   : > { %2453 = vrot.lane.b32.xlu0 %v6435_v17, %s3825_s20  ;;  %3606 = vmatprep.mubr.bf16.mxu0 %v3092_v25  ;;  %v3075_v56 = vsel %vm3057_vm15, %v3042_v34, %v5493_v33  ;;  %v2896_v2 = vsel %vm2892_vm10, %v2863_v36, %v5401_v40  ;;  %v6441_v33 = vld [vmem:[#allocation48_spill] sm:$0xff]  ;;  %v1938_v14 = vshll.u32 %v1108_v0, 16  ;;  %v1124_v20 = vpack.c.bf16 %v1082_v46, %v1082_v46 }
 0x1b9   : > { %2467 = vrot.lane.b32.xlu1 %v6438_v44, %s3825_s20  ;;  %v2780_v22 = vsel %vm2760_vm6, %v2747_v47, %v5280_v11  ;;  %v2929_v21 = vsel %vm2925_vm11, %v2896_v2, %v5423_v57  ;;  %v2029_v45 = vshll.u32 %v6442_v37, 16  ;;  %v1936_v57 = vor.u32 %v1935_v39, %v1931_v31  ;;  %v1170_v34 = vld [vmem:[#allocation3 + $0x111] ss:$2 sm:$0x1]  ;;  %v6445_v39 = vld [vmem:[#allocation65_spill] sm:$0xff] }
 0x1ba   : > { %v5589_v60 = vpop.permute.xlu0 %2280  ;;  %v2813_v12 = vsel %vm2793_vm7, %v2780_v22, %v5357_v10  ;;  %v2962_v40 = vsel %vm2958_vm12, %v2929_v21, %v5443_v30  ;;  %v1940_v30 = vrot.slane %v1938_v14, 1  ;;  %v2034_v17 = vshll.u32 %v1124_v20, 16  ;;  %v1218_v2 = vld [vmem:[#allocation3 + $0x251] ss:$2 sm:$0x1] }
 0x1bb   : > { %v2614_v50 = vpop.permute.xlu1 %2613  ;;  %v2846_v43 = vsel %vm2826_vm8, %v2813_v12, %v5374_v29  ;;  %v2995_v11 = vsel %vm2991_vm13, %v2962_v40, %v5460_v27  ;;  %v2027_v28 = vshrl.u32 %v6442_v37, 16  ;;  %v2031_v13 = vrot.slane %v2029_v45, 1 }
 0x1bc   : > { %2484 = vrot.lane.b32.xlu0 %v6439_v7, %s3826_s27  ;;  %v3116_v24 = vsel %vm3090_vm1, %v3075_v56, %v2614_v50  ;;  %v2879_v61 = vsel %vm2859_vm9, %v2846_v43, %v5395_v9  ;;  %v3028_v10 = vsel %vm3024_vm14, %v2995_v11, %v5482_v38  ;;  %v2036_v0 = vrot.slane %v2034_v17, 1  ;;  %v6444_v7 = vld [vmem:[#allocation75_spill] sm:$0xff]  ;;  %v6446_v43 = vld [vmem:[#allocation89_spill] sm:$0xff] }
 0x1bd   : > { %2469 = vrot.lane.b32.xlu1 %v6441_v33, %s3825_s20  ;;  %3622 = vmatprep.mubr.bf16.mxu1 %v3116_v24  ;;  %v2912_v29 = vsel %vm2892_vm10, %v2879_v61, %v5417_v58  ;;  %v3061_v27 = vsel %vm3057_vm15, %v3028_v10, %v5534_v23  ;;  %v1110_v58 = vpack.c.bf16 %v1040_v18, %v1040_v18  ;;  %v6443_v23 = vld [vmem:[#allocation57_spill] sm:$0xff]  ;;  %v2157_v24 = vshll.u32 %v6444_v7, 16 }
 0x1be   : > { %v5613_v4 = vpop.permute.xlu0 %2326  ;;  %v2945_v9 = vsel %vm2925_vm11, %v2912_v29, %v5435_v55  ;;  %v1945_v5 = vshll.u32 %v6443_v23, 16  ;;  %v5654_v55 = vsel %vm1313_vm2, %v1936_v57, %v1940_v30  ;;  %v1943_v49 = vshrl.u32 %v6443_v23, 16  ;;  %v6447_v61 = vld [vmem:[#allocation93_spill] sm:$0xff] }
 0x1bf   : > { %v5620_v25 = vpop.permute.xlu1 %2296  ;;  %v2978_v3 = vsel %vm2958_vm12, %v2945_v9, %v5454_v16  ;;  %v1950_v50 = vshll.u32 %v1110_v58, 16  ;;  %v1244_v36 = vpack.c.bf16 %v1170_v34, %v1170_v34  ;;  %v2041_v42 = vshll.u32 %v6445_v39, 16  ;;  %v1176_v9 = vld [vmem:[#allocation3 + $0x139] ss:$2 sm:$0x1] }
 0x1c0   : > { %2486 = vrot.lane.b32.xlu0 %v6436_v8, %s3826_s27  ;;  %v3011_v44 = vsel %vm2991_vm13, %v2978_v3, %v5467_v15  ;;  %v1947_v56 = vrot.slane %v1945_v5, 1  ;;  %v2155_v20 = vshrl.u32 %v6444_v7, 16  ;;  %v2159_v22 = vrot.slane %v2157_v24, 1  ;;  %v6448_v5 = vld [vmem:[#allocation80_spill] sm:$0xff] }
 0x1c1   : > { %2500 = vrot.lane.b32.xlu1 %v6414_v35, %s3826_s27  ;;  %v3044_v16 = vsel %vm3024_vm14, %v3011_v44, %v5480_v48  ;;  %v1126_v48 = vpack.c.bf16 %v1088_v6, %v1088_v6  ;;  %v1952_v14 = vrot.slane %v1950_v50, 1  ;;  %v2162_v21 = vshll.u32 %v1244_v36, 16 }
 0x1c2   : > { %v2600_v8 = vpop.permute.xlu0 %2599  ;;  %v3077_v46 = vsel %vm3057_vm15, %v3044_v16, %v5564_v53  ;;  %v1948_v33 = vor.u32 %v1947_v56, %v1943_v49  ;;  %v2039_v45 = vshrl.u32 %v6445_v39, 16  ;;  %v2043_v12 = vrot.slane %v2041_v42, 1 }
 0x1c3   : > { %v5641_v38 = vpop.permute.xlu1 %2342  ;;  %v3095_v35 = vsel %vm3090_vm1, %v3061_v27, %v2600_v8  ;;  %v1260_v40 = vpack.c.bf16 %v1218_v2, %v1218_v2  ;;  %v2253_v11 = vshll.u32 %v6446_v43, 16  ;;  %v2160_v17 = vor.u32 %v2159_v22, %v2155_v20 }
 0x1c4   : > { %2517 = vrot.lane.b32.xlu0 %v6416_v51, %s3827_s8  ;;  %3607 = vmatmul.mubr.bf16.vlgmr.msra.gmra.mrb[0].mxu0 %v3095_v35  ;;  %v2032_v51 = vor.u32 %v2031_v13, %v2027_v28  ;;  %v5690_v10 = vsel %vm1313_vm2, %v1948_v33, %v1952_v14  ;;  %v2164_v18 = vrot.slane %v2162_v21, 1  ;;  %v2044_v27 = vor.u32 %v2043_v12, %v2039_v45 }
 0x1c5   : > { %2502 = vrot.lane.b32.xlu1 %v6442_v37, %s3826_s27  ;;  %v2251_v8 = vshrl.u32 %v6446_v43, 16  ;;  %v2255_v28 = vrot.slane %v2253_v11, 1  ;;  %v2258_v13 = vshll.u32 %v1260_v40, 16  ;;  %v1246_v58 = vpack.c.bf16 %v1176_v9, %v1176_v9 }
 0x1c6   : > { %v5658_v52 = vpop.permute.xlu0 %2328  ;;  %v2037_v53 = vsel %vm1313_vm2, %v2032_v51, %v2036_v0  ;;  %v2165_v3 = vsel %vm1313_vm2, %v2160_v17, %v2164_v18  ;;  %v2169_v44 = vshll.u32 %v6448_v5, 16  ;;  %v819_v17 = vld [vmem:[#allocation2 + $0x280] ss:$2 sm:$0xff]  ;;  %v821_v18 = vld [vmem:[#allocation2 + $0x290] ss:$2 sm:$0xff] }
 0x1c7   : > { %v2616_v19 = vpop.permute.xlu1 %2615  ;;  %v2256_v51 = vor.u32 %v2255_v28, %v2251_v8  ;;  %v2260_v6 = vrot.slane %v2258_v13, 1  ;;  %v6452_v8 = vld [vmem:[#allocation60_spill] sm:$0xff]  ;;  %v856_v13 = vpack.c.bf16 %v821_v18, %v819_v17 }
 0x1c8   : > { %2062 = vrot.lane.b32.xlu0 %v5654_v55, %s3820_s11  ;;  %v3119_v15 = vsel %vm3090_vm1, %v3077_v46, %v2616_v19  ;;  %v1224_v46 = vld [vmem:[#allocation3 + $0x279] ss:$2 sm:$0x1]  ;;  %v2171_v19 = vrot.slane %v2169_v44, 1  ;;  %v6453_v44 = vld [vmem:[#allocation11_spill] sm:$0xff] }
 0x1c9   : > { %2533 = vrot.lane.b32.xlu1 %v6417_v59, %s3827_s8  ;;  %3623 = vmatmul.mubr.bf16.vlgmr.msra.gmra.mrb[0].mxu1 %v3119_v15  ;;  %v2046_v59 = vshll.u32 %v1126_v48, 16  ;;  %v2174_v15 = vshll.u32 %v1246_v58, 16  ;;  %v2261_v56 = vsel %vm1313_vm2, %v2256_v51, %v2260_v6  ;;  %v1262_v50 = vpack.c.bf16 %v1224_v46, %v1224_v46  ;;  %v6449_v48 = vld [vmem:[#allocation91_spill] sm:$0xff] }
 0x1ca   : > { %v5669_v31 = vpop.permute.xlu0 %2359  ;;  %v2265_v36 = vshll.u32 %v6449_v48, 16  ;;  %v2263_v33 = vshrl.u32 %v6449_v48, 16  ;;  %v2390_v6 = vshll.u32 %v856_v13, 16 }
 0x1cb   : > { %v5673_v47 = vpop.permute.xlu1 %2344  ;;  %v2048_v30 = vrot.slane %v2046_v59, 1  ;;  %v2176_v42 = vrot.slane %v2174_v15, 1  ;;  %v2270_v59 = vshll.u32 %v1262_v50, 16 }
 0x1cc   : > { %2519 = vrot.lane.b32.xlu0 %v6444_v7, %s3827_s8  ;;  %v2267_v14 = vrot.slane %v2265_v36, 1  ;;  %v2388_v36 = vshrl.u32 %v856_v13, 16 }
 0x1cd   : > { %2078 = vrot.lane.b32.xlu1 %v2037_v53, %s3820_s11  ;;  %v5706_v16 = vsel %vm1313_vm2, %v2044_v27, %v2048_v30  ;;  %v2272_v45 = vrot.slane %v2270_v59, 1 }
 0x1ce   : > { %v5679_v37 = vpop.permute.xlu0 %2361  ;;  %v2268_v21 = vor.u32 %v2267_v14, %v2263_v33  ;;  %v6456_v33 = vld [vmem:[#allocation77_spill] sm:$0xff]  ;;  %v6457_v14 = vld [vmem:[#allocation90_spill] sm:$0xff] }
 0x1cf   : > { %v5683_v57 = vpop.permute.xlu1 %2375  ;;  %v2799_v59 = vsel %vm2793_vm7, %v6457_v14, %v6456_v33  ;;  %v6463_v14 = vld [vmem:[#allocation92_spill] sm:$0xff] }
 0x1d0   : > { %2561 = vrot.lane.b32.xlu0 %v6447_v61, %s3828_s30 }
 0x1d1   : > { %2535 = vrot.lane.b32.xlu1 %v6446_v43, %s3827_s8  ;;  %v6450_v43 = vld [vmem:[#allocation24_spill] sm:$0xff] }
 0x1d2   : > { %v5692_v29 = vpop.permute.xlu0 %2403 }
 0x1d3   : > { %v5695_v35 = vpop.permute.xlu1 %2377 }
 0x1d4   : > { %2064 = vrot.lane.b32.xlu0 %v5690_v10, %s3820_s11 }
 0x1d5   : > { %2577 = vrot.lane.b32.xlu1 %v5415_v26, %s3828_s30  ;;  %v2167_v26 = vshrl.u32 %v6448_v5, 16 }
 0x1d6   : > { %v5703_v0 = vpop.permute.xlu0 %2405 }
 0x1d7   : > { %v5708_v34 = vpop.permute.xlu1 %2419  ;;  %v2172_v24 = vor.u32 %v2171_v19, %v2167_v26  ;;  %v955_v26 = vld [vmem:[#allocation2 + $0x281] ss:$2 sm:$0xff]  ;;  %v957_v19 = vld [vmem:[#allocation2 + $0x291] ss:$2 sm:$0xff] }
 0x1d8   : > { %2286 = vrot.lane.b32.xlu0 %v2165_v3, %s3821_s12  ;;  %v992_v50 = vpack.c.bf16 %v957_v19, %v955_v26 }
 0x1d9   : > { %2080 = vrot.lane.b32.xlu1 %v5706_v16, %s3820_s11  ;;  %v5732_v22 = vsel %vm1313_vm2, %v2172_v24, %v2176_v42  ;;  %v2392_v24 = vrot.slane %v2390_v6, 1  ;;  %s3541_s11 = sshll.u32 %s305_s5, 8 }
 0x1da   : > { %v5714_v49 = vpop.permute.xlu0 %2447  ;;  %v2434_v33 = vshll.u32 %v992_v50, 16 }
 0x1db   : > { %v5718_v7 = vpop.permute.xlu1 %2421  ;;  %v2393_v26 = vor.u32 %v2392_v24, %v2388_v36 }
 0x1dc   : > { %2563 = vrot.lane.b32.xlu0 %v5654_v55, %s3828_s30 }
 0x1dd   : > { %2302 = vrot.lane.b32.xlu1 %v2261_v56, %s3821_s12 }
 0x1de   : > { %v5723_v2 = vpop.permute.xlu0 %2449 }
 0x1df   : > { %v5726_v20 = vpop.permute.xlu1 %2463 }
 0x1e0   : > { %2605 = vrot.lane.b32.xlu0 %v5441_v54, %s3829_s24  ;;  %v5745_v54 = vsel %vm1313_vm2, %v2268_v21, %v2272_v45  ;;  %v6458_v21 = vld [vmem:[#allocation28_spill] sm:$0xff]  ;;  %v6459_v45 = vld [vmem:[#allocation66_spill] sm:$0xff] }
 0x1e1   : > { %2579 = vrot.lane.b32.xlu1 %v2037_v53, %s3828_s30 }
 0x1e2   : > { %v5734_v55 = vpop.permute.xlu0 %2480 }
 0x1e3   : > { %v5736_v12 = vpop.permute.xlu1 %2465 }
 0x1e4   : > { %2288 = vrot.lane.b32.xlu0 %v5732_v22, %s3821_s12 }
 0x1e5   : > { %2621 = vrot.lane.b32.xlu1 %v5452_v1, %s3829_s24  ;;  %v6451_v1 = vld [vmem:[#allocation34_spill] sm:$0xff] }
 0x1e6   : > { %v5742_v40 = vpop.permute.xlu0 %2482 }
 0x1e7   : > { %v5747_v53 = vpop.permute.xlu1 %2496 }
 0x1e8   : > { %2334 = vrot.lane.b32.xlu0 %v6450_v43, %s3822_s13  ;;  %v2803_v43 = vsel %vm2793_vm7, %v6459_v45, %v6458_v21 }
 0x1e9   : > { %2304 = vrot.lane.b32.xlu1 %v5745_v54, %s3821_s12  ;;  %s6013_s12 = scalar_lea.vmem [#allocation4], %s3541_s11 }
 0x1ea   : > { %v2514_v11 = vpop.permute.xlu0 %2513 }
 0x1eb   : > { %v5753_v61 = vpop.permute.xlu1 %2498 }
 0x1ec   : > { %2607 = vrot.lane.b32.xlu0 %v2165_v3, %s3829_s24  ;;  %v823_v3 = vld [vmem:[#allocation2 + $0x2a0] ss:$2 sm:$0x1] }
 0x1ed   : > { %2350 = vrot.lane.b32.xlu1 %v6451_v1, %s3822_s13  ;;  %v857_v51 = vpack.c.bf16 %v823_v3, %v823_v3  ;;  %v6460_v3 = vld [vmem:[#allocation73_spill] sm:$0xff] }
 0x1ee   : > { %v2075_v30 = vpop.permute.xlu0 %2074 }
 0x1ef   : > { %v5758_v27 = vpop.permute.xlu1 %2529  ;;  %v2819_v28 = vsel %vm2793_vm7, %v6452_v8, %v2075_v30  ;;  %v2395_v42 = vshll.u32 %v857_v51, 16  ;;  %v2832_v30 = vsel %vm2826_vm8, %v2799_v59, %v5510_v41  ;;  %v959_v8 = vld [vmem:[#allocation2 + $0x2a1] ss:$2 sm:$0x1] }
 0x1f0   : > { %2336 = vrot.lane.b32.xlu0 %v6428_v63, %s3822_s13  ;;  %v6454_v63 = vld [vmem:[#allocation12_spill] sm:$0xff]  ;;  %v6461_v51 = vld [vmem:[#allocation29_spill] sm:$0xff] }
 0x1f1   : > { %2623 = vrot.lane.b32.xlu1 %v2261_v56, %s3829_s24  ;;  %v6455_v56 = vld [vmem:[#allocation18_spill] sm:$0xff]  ;;  %v2397_v41 = vrot.slane %v2395_v42, 1 }
 0x1f2   : > { %v5765_v9 = vpop.permute.xlu0 %2531 }
 0x1f3   : > { %v5767_v58 = vpop.permute.xlu1 %2515 }
 0x1f4   : > { %2367 = vrot.lane.b32.xlu0 %v6453_v44, %s3823_s14 }
 0x1f5   : > { %2352 = vrot.lane.b32.xlu1 %v856_v13, %s3822_s13  ;;  %v2865_v13 = vsel %vm2859_vm9, %v2832_v30, %v5613_v4  ;;  %v6462_v4 = vld [vmem:[#allocation81_spill] sm:$0xff]  ;;  %v2432_v30 = vshrl.u32 %v992_v50, 16  ;;  %s3565_s13 = sshll.u32 %s3804_s0, 12  ;;  %s6105_s0 = scalar_lea.sflag [#allocation5], %s305_s5 }
 0x1f6   : > { %v2574_v46 = vpop.permute.xlu0 %2573  ;;  %v2898_v6 = vsel %vm2892_vm10, %v2865_v13, %v5669_v31  ;;  %v2815_v59 = vsel %vm2793_vm7, %v6463_v14, %v6462_v4 }
 0x1f7   : > { %v2558_v15 = vpop.permute.xlu1 %2557  ;;  %v2931_v19 = vsel %vm2925_vm11, %v2898_v6, %v5692_v29  ;;  %v2848_v31 = vsel %vm2826_vm8, %v2815_v59, %v5540_v62  ;;  %v6464_v29 = vld [vmem:[#allocation27_spill] sm:$0xff] }
 0x1f8   : > { %2369 = vrot.lane.b32.xlu0 %v6454_v63, %s3823_s14  ;;  %v2964_v21 = vsel %vm2958_vm12, %v2931_v19, %v5714_v49  ;;  %v2881_v42 = vsel %vm2859_vm9, %v2848_v31, %v5641_v38  ;;  %v2398_v49 = vsel %vm1313_vm2, %v2393_v26, %v2397_v41  ;;  %v6470_v26 = vld [vmem:[#allocation64_spill] sm:$0xff] }
 0x1f9   : > { %2383 = vrot.lane.b32.xlu1 %v6455_v56, %s3823_s14  ;;  %v993_v56 = vpack.c.bf16 %v959_v8, %v959_v8  ;;  %v2997_v36 = vsel %vm2991_vm13, %v2964_v21, %v5734_v55  ;;  %v2914_v62 = vsel %vm2892_vm10, %v2881_v42, %v5683_v57  ;;  %v6468_v57 = vld [vmem:[#allocation19_spill] sm:$0xff] }
 0x1fa   : > { %v2283_v1 = vpop.permute.xlu0 %2282  ;;  %v2947_v13 = vsel %vm2925_vm11, %v2914_v62, %v5708_v34  ;;  %v6469_v34 = vld [vmem:[#allocation30_spill] sm:$0xff] }
 0x1fb   : > { %v2077_v17 = vpop.permute.xlu1 %2076  ;;  %v2836_v18 = vsel %vm2826_vm8, %v2803_v43, %v2283_v1  ;;  %v3030_v43 = vsel %vm3024_vm14, %v2997_v36, %v2514_v11  ;;  %v6465_v1 = vld [vmem:[#allocation38_spill] sm:$0xff]  ;;  %v2439_v8 = vshll.u32 %v993_v56, 16  ;;  %v2805_v41 = vsel %vm2793_vm7, %v6470_v26, %v6469_v34 }
 0x1fc   : > { %v2821_v44 = vsel %vm2793_vm7, %v6460_v3, %v2077_v17  ;;  %2411 = vrot.lane.b32.xlu0 %v6461_v51, %s3824_s2  ;;  %v3063_v55 = vsel %vm3057_vm15, %v3030_v43, %v2558_v15  ;;  %v2436_v17 = vrot.slane %v2434_v33, 1  ;;  %v2980_v3 = vsel %vm2958_vm12, %v2947_v13, %v5726_v20  ;;  %v6466_v51 = vld [vmem:[#allocation44_spill] sm:$0xff]  ;;  %v6472_v36 = vld [vmem:[#allocation50_spill] sm:$0xff] }
 0x1fd   : > { %2385 = vrot.lane.b32.xlu1 %v992_v50, %s3823_s14  ;;  %v6467_v50 = vld [vmem:[#allocation74_spill] sm:$0xff]  ;;  %v3013_v6 = vsel %vm2991_vm13, %v2980_v3, %v5747_v53  ;;  %v2441_v33 = vrot.slane %v2439_v8, 1  ;;  %s3412_s14 = sshll.u32 %s6013_s12, 4  ;;  %s6097_s14 = int_to_ptr.vmem [resolvable:$true] %s3412_s14 }
 0x1fe   : > { %v2560_v63 = vpop.permute.xlu0 %2559  ;;  %v2801_v15 = vsel %vm2793_vm7, %v6468_v57, %v6467_v50  ;;  %v3046_v20 = vsel %vm3024_vm14, %v3013_v6, %v5758_v27  ;;  %v2437_v56 = vor.u32 %v2436_v17, %v2432_v30  ;;  %v6474_v17 = vld [vmem:[#allocation56_spill] sm:$0xff]  ;;  %v1226_v3 = vld [vmem:[#allocation3 + $0x281] ss:$2 sm:$0xff]  ;;  %p3741_p1 = scmp.lt.s32.totalorder %s6097_s14, %s3739_s29 }
 0x1ff   : > { %v2299_v45 = vpop.permute.xlu1 %2298  ;;  %v2834_v4 = vsel %vm2826_vm8, %v2801_v15, %v5589_v60  ;;  %v3079_v14 = vsel %vm3057_vm15, %v3046_v20, %v2574_v46  ;;  %v6475_v15 = vld [vmem:[#allocation79_spill] sm:$0xff] }
 0x200   : > { %v2852_v24 = vsel %vm2826_vm8, %v2819_v28, %v2299_v45  ;;  %2413 = vrot.lane.b32.xlu0 %v6464_v29, %s3824_s2  ;;  %v2867_v21 = vsel %vm2859_vm9, %v2834_v4, %v5658_v52  ;;  %v6471_v45 = vld [vmem:[#allocation43_spill] sm:$0xff]  ;;  %v2442_v29 = vsel %vm1313_vm2, %v2437_v56, %v2441_v33 }
 0x201   : > { %2427 = vrot.lane.b32.xlu1 %v6465_v1, %s3824_s2  ;;  %v2900_v27 = vsel %vm2892_vm10, %v2867_v21, %v5679_v37  ;;  %v6473_v52 = vld [vmem:[#allocation67_spill] sm:$0xff] }
 0x202   : > { %v2602_v28 = vpop.permute.xlu0 %2601  ;;  %v2933_v60 = vsel %vm2925_vm11, %v2900_v27, %v5703_v0  ;;  %v2817_v42 = vsel %vm2793_vm7, %v6473_v52, %v5516_v32 }
 0x203   : > { %v2576_v38 = vpop.permute.xlu1 %2575  ;;  %v3098_v11 = vsel %vm3090_vm1, %v3063_v55, %v2602_v28  ;;  %v2966_v43 = vsel %vm2958_vm12, %v2933_v60, %v5723_v2  ;;  %v1092_v55 = vld [vmem:[#allocation3 + $0x290] ss:$2 sm:$0xff] }
 0x204   : > { %2455 = vrot.lane.b32.xlu0 %v6466_v51, %s3825_s20  ;;  %3610 = vmatprep.mubr.bf16.mxu0 %v3098_v11  ;;  %v2999_v0 = vsel %vm2991_vm13, %v2966_v43, %v5742_v40  ;;  %v1090_v40 = vld [vmem:[#allocation3 + $0x280] ss:$2 sm:$0xff] }
 0x205   : > { %2429 = vrot.lane.b32.xlu1 %v2398_v49, %s3824_s2  ;;  %v2850_v49 = vsel %vm2826_vm8, %v2817_v42, %v5620_v25  ;;  %v3032_v2 = vsel %vm3024_vm14, %v2999_v0, %v5767_v58  ;;  %v1094_v11 = vld [vmem:[#allocation3 + $0x2a0] ss:$2 sm:$0x1]  ;;  %v6477_v42 = vld [vmem:[#allocation95_spill] sm:$0xff] }
 0x206   : > { %v2285_v19 = vpop.permute.xlu0 %2284  ;;  %v2883_v32 = vsel %vm2859_vm9, %v2850_v49, %v5673_v47  ;;  %v3065_v25 = vsel %vm3057_vm15, %v3032_v2, %v2560_v63  ;;  %v1128_v51 = vpack.c.bf16 %v1094_v11, %v1094_v11  ;;  %v6481_v11 = vld [vmem:[#allocation83_spill] sm:$0xff] }
 0x207   : > { %v2618_v59 = vpop.permute.xlu1 %2617  ;;  %v2838_v53 = vsel %vm2826_vm8, %v2805_v41, %v2285_v19  ;;  %v1230_v19 = vld [vmem:[#allocation3 + $0x2a1] ss:$2 sm:$0x1] }
 0x208   : > { %2457 = vrot.lane.b32.xlu0 %v6471_v45, %s3825_s20  ;;  %v3122_v31 = vsel %vm3090_vm1, %v3079_v14, %v2618_v59  ;;  %v2549_v41 = vshll.u32 %v1128_v51, 16  ;;  %v1264_v14 = vpack.c.bf16 %v1230_v19, %v1230_v19 }
 0x209   : > { %2471 = vrot.lane.b32.xlu1 %v6472_v36, %s3825_s20  ;;  %3626 = vmatprep.mubr.bf16.mxu1 %v3122_v31 }
 0x20a   : > { %v2331_v46 = vpop.permute.xlu0 %2330  ;;  %v2551_v4 = vrot.slane %v2549_v41, 1  ;;  %v2593_v27 = vshll.u32 %v1264_v14, 16 }
 0x20b   : > { %v2301_v1 = vpop.permute.xlu1 %2300  ;;  %v5857_v37 = vsel %vm2859_vm9, %v2836_v18, %v2331_v46  ;;  %v2916_v18 = vsel %vm2892_vm10, %v2883_v32, %v5695_v35 }
 0x20c   : > { %v2854_v30 = vsel %vm2826_vm8, %v2821_v44, %v2301_v1  ;;  %2488 = vrot.lane.b32.xlu0 %v6443_v23, %s3826_s27  ;;  %v2949_v44 = vsel %vm2925_vm11, %v2916_v18, %v5718_v7  ;;  %v1127_v7 = vpack.c.bf16 %v1092_v55, %v1090_v40 }
 0x20d   : > { %2473 = vrot.lane.b32.xlu1 %v2442_v29, %s3825_s20  ;;  %v2982_v47 = vsel %vm2958_vm12, %v2949_v44, %v5736_v12  ;;  %v2595_v29 = vrot.slane %v2593_v27, 1 }
 0x20e   : > { %v2604_v62 = vpop.permute.xlu0 %2603  ;;  %v3015_v35 = vsel %vm2991_vm13, %v2982_v47, %v5753_v61  ;;  %v2544_v50 = vshll.u32 %v1127_v7, 16  ;;  %v2542_v34 = vshrl.u32 %v1127_v7, 16 }
 0x20f   : > { %v2347_v23 = vpop.permute.xlu1 %2346  ;;  %v3101_v28 = vsel %vm3090_vm1, %v3065_v25, %v2604_v62  ;;  %v3048_v63 = vsel %vm3024_vm14, %v3015_v35, %v5765_v9  ;;  %v1228_v9 = vld [vmem:[#allocation3 + $0x291] ss:$2 sm:$0xff]  ;;  %v6478_v62 = vld [vmem:[#allocation51_spill] sm:$0xff] }
 0x210   : > { %v5880_v58 = vsel %vm2859_vm9, %v2852_v24, %v2347_v23  ;;  %2490 = vrot.lane.b32.xlu0 %v6474_v17, %s3826_s27  ;;  %3611 = vmatmul.mubr.bf16.gmra.mrb[4].mxu0 %v3101_v28  ;;  %v3081_v12 = vsel %vm3057_vm15, %v3048_v63, %v2576_v38  ;;  %v2546_v26 = vrot.slane %v2544_v50, 1 }
 0x211   : > { %2504 = vrot.lane.b32.xlu1 %v6445_v39, %s3826_s27 }
 0x212   : > { %v2333_v8 = vpop.permute.xlu0 %2332  ;;  %v2547_v33 = vor.u32 %v2546_v26, %v2542_v34 }
 0x213   : > { %v2620_v13 = vpop.permute.xlu1 %2619  ;;  %v5892_v24 = vsel %vm2859_vm9, %v2838_v53, %v2333_v8 }
 0x214   : > { %2521 = vrot.lane.b32.xlu0 %v6448_v5, %s3827_s8  ;;  %v3125_v61 = vsel %vm3090_vm1, %v3081_v12, %v2620_v13  ;;  %v1263_v5 = vpack.c.bf16 %v1228_v9, %v1226_v3  ;;  %v2552_v45 = vsel %vm1313_vm2, %v2547_v33, %v2551_v4 }
 0x215   : > { %2506 = vrot.lane.b32.xlu1 %v1127_v7, %s3826_s27  ;;  %3627 = vmatmul.mubr.bf16.gmra.mrb[4].mxu1 %v3125_v61  ;;  %v6480_v7 = vld [vmem:[#allocation20_spill] sm:$0xff]  ;;  %s6093_s27 = scalar_lea.hbm %s6156_s4, %s3565_s13 }
 0x216   : > { %v5898_v39 = vpop.permute.xlu0 %2363  ;;  %v2588_v59 = vshll.u32 %v1263_v5, 16 }
 0x217   : > { %v2349_v38 = vpop.permute.xlu1 %2348  ;;  %v2902_v3 = vsel %vm2892_vm10, %v5857_v37, %v5898_v39 }
 0x218   : > { %v5901_v57 = vsel %vm2859_vm9, %v2854_v30, %v2349_v38  ;;  %2523 = vrot.lane.b32.xlu0 %v6475_v15, %s3827_s8  ;;  %v2590_v31 = vrot.slane %v2588_v59, 1 }
 0x219   : > { %2537 = vrot.lane.b32.xlu1 %v6449_v48, %s3827_s8  ;;  %v6476_v48 = vld [vmem:[#allocation94_spill] sm:$0xff] }
 0x21a   : > { %v5907_v6 = vpop.permute.xlu0 %2365 }
 0x21b   : > { %v2380_v20 = vpop.permute.xlu1 %2379 }
 0x21c   : > { %2565 = vrot.lane.b32.xlu0 %v5690_v10, %s3828_s30  ;;  %v2586_v10 = vshrl.u32 %v1263_v5, 16  ;;  %v2918_v26 = vsel %vm2892_vm10, %v5880_v58, %v2380_v20  ;;  %v2904_v20 = vsel %vm2892_vm10, %v5892_v24, %v5907_v6 }
 0x21d   : > { %2539 = vrot.lane.b32.xlu1 %v1263_v5, %s3827_s8  ;;  %s3734_s8 = scalar_lea.vmem %s6097_s14, 4096 }
 0x21e   : > { %v2408_v56 = vpop.permute.xlu0 %2407  ;;  %v2591_v46 = vor.u32 %v2590_v31, %v2586_v10  ;;  %p3735_p12 = scmp.ne.s32.totalorder %s6097_s14, %s3734_s8 }
 0x21f   : > { %v5912_v53 = vpop.permute.xlu1 %2381  ;;  %v2935_v9 = vsel %vm2925_vm11, %v2902_v3, %v2408_v56 }
 0x220   : > { %2567 = vrot.lane.b32.xlu0 %v6476_v48, %s3828_s30  ;;  %v2596_v43 = vsel %vm1313_vm2, %v2591_v46, %v2595_v29  ;;  %v2920_v29 = vsel %vm2892_vm10, %v5901_v57, %v5912_v53  ;;  %p3736_p13 = pnand %p3735_p12, %p3897_p4 }
 0x221   : > { %2581 = vrot.lane.b32.xlu1 %v5706_v16, %s3828_s30 }
 0x222   : > { %v5918_v21 = vpop.permute.xlu0 %2409  ;;  %p3737_p0 = pneg %p3736_p13 }
 0x223   : > { %v2424_v36 = vpop.permute.xlu1 %2423  ;;  %v2937_v10 = vsel %vm2925_vm11, %v2904_v20, %v5918_v21 }
 0x224   : > { %2609 = vrot.lane.b32.xlu0 %v5732_v22, %s3829_s24  ;;  %v2951_v37 = vsel %vm2925_vm11, %v2918_v26, %v2424_v36 }
 0x225   : > { %2583 = vrot.lane.b32.xlu1 %v2552_v45, %s3828_s30  ;;  %s3740_s30 = scalar_lea.vmem %s3739_s29, 8192 }
 0x226   : > { %v2452_v60 = vpop.permute.xlu0 %2451  ;;  %p3742_p2 = scmp.lt.s32.totalorder %s3740_s30, %s3734_s8 }
 0x227   : > { %v2426_v52 = vpop.permute.xlu1 %2425  ;;  %v2968_v50 = vsel %vm2958_vm12, %v2935_v9, %v2452_v60 }
 0x228   : > { %2611 = vrot.lane.b32.xlu0 %v6477_v42, %s3829_s24  ;;  %v2953_v6 = vsel %vm2925_vm11, %v2920_v29, %v2426_v52  ;;  %p3743_p3 = por %p3742_p2, %p3741_p1 }
 0x229   : > { %2625 = vrot.lane.b32.xlu1 %v5745_v54, %s3829_s24  ;;  %v6479_v54 = vld [vmem:[#allocation68_spill] sm:$0xff] }
 0x22a   : > { %v2454_v16 = vpop.permute.xlu0 %2453  ;;  %p3744_p5 = pnand %p3743_p3, %p3737_p0 }
 0x22b   : > { %v2468_v1 = vpop.permute.xlu1 %2467  ;;  %v2970_v27 = vsel %vm2958_vm12, %v2937_v10, %v2454_v16 }
 0x22c   : > { %v2984_v33 = vsel %vm2958_vm12, %v2951_v37, %v2468_v1 }
 0x22d   : > { %2627 = vrot.lane.b32.xlu1 %v2596_v43, %s3829_s24 }
 0x22e   : > { %v2485_v49 = vpop.permute.xlu0 %2484 }
 0x22f   : > { %v2470_v22 = vpop.permute.xlu1 %2469  ;;  %v3001_v15 = vsel %vm2991_vm13, %v2968_v50, %v2485_v49 }
 0x230   : > { %v2986_v16 = vsel %vm2958_vm12, %v2953_v6, %v2470_v22 }
 0x232   : > { %v2487_v0 = vpop.permute.xlu0 %2486 }
 0x233   : > { %v2501_v30 = vpop.permute.xlu1 %2500  ;;  %v3003_v60 = vsel %vm2991_vm13, %v2970_v27, %v2487_v0 }
 0x234   : > { %v3017_v4 = vsel %vm2991_vm13, %v2984_v33, %v2501_v30 }
 0x236   : > { %v2518_v32 = vpop.permute.xlu0 %2517 }
 0x237   : > { %v2503_v2 = vpop.permute.xlu1 %2502  ;;  %v3034_v34 = vsel %vm3024_vm14, %v3001_v15, %v2518_v32 }
 0x238   : > { %v3019_v1 = vsel %vm2991_vm13, %v2986_v16, %v2503_v2 }
 0x23a   : > { %v2063_v18 = vpop.permute.xlu0 %2062 }
 0x23b   : > { %v2534_v25 = vpop.permute.xlu1 %2533  ;;  %v2807_v40 = vsel %vm2793_vm7, %v6478_v62, %v2063_v18 }
 0x23c   : > { %v3050_v14 = vsel %vm3024_vm14, %v3017_v4, %v2534_v25 }
 0x23e   : > { %v2520_v55 = vpop.permute.xlu0 %2519 }
 0x23f   : > { %v2079_v44 = vpop.permute.xlu1 %2078  ;;  %v3036_v46 = vsel %vm3024_vm14, %v3003_v60, %v2520_v55 }
 0x240   : > { %v2823_v23 = vsel %vm2793_vm7, %v6479_v54, %v2079_v44 }
 0x242   : > { %v2562_v28 = vpop.permute.xlu0 %2561 }
 0x243   : > { %v2536_v47 = vpop.permute.xlu1 %2535  ;;  %v3067_v41 = vsel %vm3057_vm15, %v3034_v34, %v2562_v28 }
 0x244   : > { %v3052_v49 = vsel %vm3024_vm14, %v3019_v1, %v2536_v47 }
 0x246   : > { %v2065_v17 = vpop.permute.xlu0 %2064 }
 0x247   : > { %v2578_v35 = vpop.permute.xlu1 %2577  ;;  %v5936_v63 = vsel %vm2793_vm7, %v6480_v7, %v2065_v17 }
 0x248   : > { %v3083_v48 = vsel %vm3057_vm15, %v3050_v14, %v2578_v35 }
 0x24a   : > { %v2287_v8 = vpop.permute.xlu0 %2286 }
 0x24b   : > { %v2081_v12 = vpop.permute.xlu1 %2080  ;;  %v5939_v13 = vsel %vm2826_vm8, %v2807_v40, %v2287_v8 }
 0x24c   : > { %v5943_v61 = vsel %vm2793_vm7, %v6481_v11, %v2081_v12 }
 0x24e   : > { %v2564_v51 = vpop.permute.xlu0 %2563 }
 0x24f   : > { %v2303_v38 = vpop.permute.xlu1 %2302  ;;  %v3069_v42 = vsel %vm3057_vm15, %v3036_v46, %v2564_v51 }
 0x250   : > { %v5952_v5 = vsel %vm2826_vm8, %v2823_v23, %v2303_v38 }
 0x252   : > { %v2606_v19 = vpop.permute.xlu0 %2605 }
 0x253   : > { %v2580_v39 = vpop.permute.xlu1 %2579  ;;  %v3104_v56 = vsel %vm3090_vm1, %v3067_v41, %v2606_v19 }
 0x254   : > { %3614 = vmatprep.mubr.bf16.mxu0 %v3104_v56  ;;  %v3085_v30 = vsel %vm3057_vm15, %v3052_v49, %v2580_v39 }
 0x256   : > { %v2289_v59 = vpop.permute.xlu0 %2288 }
 0x257   : > { %v2622_v45 = vpop.permute.xlu1 %2621  ;;  %v2842_v34 = vsel %vm2826_vm8, %v5936_v63, %v2289_v59 }
 0x258   : > { %v3128_v58 = vsel %vm3090_vm1, %v3083_v48, %v2622_v45 }
 0x259   : > { %3630 = vmatprep.mubr.bf16.mxu1 %v3128_v58 }
 0x25a   : > { %v2335_v31 = vpop.permute.xlu0 %2334 }
 0x25b   : > { %v5971_v36 = vpop.permute.xlu1 %2304  ;;  %v2873_v51 = vsel %vm2859_vm9, %v5939_v13, %v2335_v31 }
 0x25e   : > { %v2608_v24 = vpop.permute.xlu0 %2607 }
 0x25f   : > { %v2351_v43 = vpop.permute.xlu1 %2350  ;;  %v3107_v21 = vsel %vm3090_vm1, %v3069_v42, %v2608_v24 }
 0x260   : > { %3615 = vmatmul.mubr.bf16.gmra.mrb[8].mxu0 %v3107_v21  ;;  %v2889_v13 = vsel %vm2859_vm9, %v5952_v5, %v2351_v43  ;;  %v2858_v5 = vsel %vm2826_vm8, %v5943_v61, %v5971_v36 }
 0x262   : > { %v2337_v0 = vpop.permute.xlu0 %2336 }
 0x263   : > { %v2624_v32 = vpop.permute.xlu1 %2623  ;;  %v2875_v19 = vsel %vm2859_vm9, %v2842_v34, %v2337_v0 }
 0x264   : > { %v3131_v57 = vsel %vm3090_vm1, %v3085_v30, %v2624_v32 }
 0x265   : > { %3631 = vmatmul.mubr.bf16.gmra.mrb[8].mxu1 %v3131_v57 }
 0x266   : > { %v2368_v53 = vpop.permute.xlu0 %2367 }
 0x267   : > { %v2353_v18 = vpop.permute.xlu1 %2352  ;;  %v2906_v50 = vsel %vm2892_vm10, %v2873_v51, %v2368_v53 }
 0x268   : > { %v2891_v60 = vsel %vm2859_vm9, %v2858_v5, %v2353_v18 }
 0x26a   : > { %v2370_v52 = vpop.permute.xlu0 %2369 }
 0x26b   : > { %v2384_v25 = vpop.permute.xlu1 %2383  ;;  %v2908_v39 = vsel %vm2892_vm10, %v2875_v19, %v2370_v52 }
 0x26c   : > { %v2922_v33 = vsel %vm2892_vm10, %v2889_v13, %v2384_v25 }
 0x26e   : > { %v2412_v62 = vpop.permute.xlu0 %2411 }
 0x26f   : > { %v2386_v40 = vpop.permute.xlu1 %2385  ;;  %v2939_v38 = vsel %vm2925_vm11, %v2906_v50, %v2412_v62 }
 0x270   : > { %v2924_v29 = vsel %vm2892_vm10, %v2891_v60, %v2386_v40 }
 0x272   : > { %v2414_v55 = vpop.permute.xlu0 %2413 }
 0x273   : > { %v2428_v22 = vpop.permute.xlu1 %2427  ;;  %v2941_v4 = vsel %vm2925_vm11, %v2908_v39, %v2414_v55 }
 0x274   : > { %v2955_v59 = vsel %vm2925_vm11, %v2922_v33, %v2428_v22 }
 0x276   : > { %v2456_v44 = vpop.permute.xlu0 %2455 }
 0x277   : > { %v2430_v2 = vpop.permute.xlu1 %2429  ;;  %v2972_v26 = vsel %vm2958_vm12, %v2939_v38, %v2456_v44 }
 0x278   : > { %v2957_v21 = vsel %vm2925_vm11, %v2924_v29, %v2430_v2 }
 0x27a   : > { %v2458_v54 = vpop.permute.xlu0 %2457 }
 0x27b   : > { %v2472_v23 = vpop.permute.xlu1 %2471  ;;  %v2974_v48 = vsel %vm2958_vm12, %v2941_v4, %v2458_v54 }
 0x27c   : > { %v2988_v10 = vsel %vm2958_vm12, %v2955_v59, %v2472_v23 }
 0x27e   : > { %v2489_v28 = vpop.permute.xlu0 %2488 }
 0x27f   : > { %v2474_v47 = vpop.permute.xlu1 %2473  ;;  %v3005_v37 = vsel %vm2991_vm13, %v2972_v26, %v2489_v28 }
 0x280   : > { %v2990_v0 = vsel %vm2958_vm12, %v2957_v21, %v2474_v47 }
 0x282   : > { %v2491_v17 = vpop.permute.xlu0 %2490 }
 0x283   : > { %v2505_v35 = vpop.permute.xlu1 %2504  ;;  %v3007_v31 = vsel %vm2991_vm13, %v2974_v48, %v2491_v17 }
 0x284   : > { %v3021_v46 = vsel %vm2991_vm13, %v2988_v10, %v2505_v35 }
 0x286   : > { %v2522_v7 = vpop.permute.xlu0 %2521 }
 0x287   : > { %v2507_v8 = vpop.permute.xlu1 %2506  ;;  %v3038_v56 = vsel %vm3024_vm14, %v3005_v37, %v2522_v7 }
 0x288   : > { %v3023_v57 = vsel %vm2991_vm13, %v2990_v0, %v2507_v8 }
 0x28a   : > { %v2524_v12 = vpop.permute.xlu0 %2523 }
 0x28b   : > { %v2538_v11 = vpop.permute.xlu1 %2537  ;;  %v3040_v61 = vsel %vm3024_vm14, %v3007_v31, %v2524_v12 }
 0x28c   : > { %v3054_v42 = vsel %vm3024_vm14, %v3021_v46, %v2538_v11 }
 0x28e   : > { %v2566_v3 = vpop.permute.xlu0 %2565 }
 0x28f   : > { %v2540_v9 = vpop.permute.xlu1 %2539  ;;  %v3071_v63 = vsel %vm3057_vm15, %v3038_v56, %v2566_v3 }
 0x290   : > { %v3056_v18 = vsel %vm3024_vm14, %v3023_v57, %v2540_v9 }
 0x292   : > { %v2568_v15 = vpop.permute.xlu0 %2567 }
 0x293   : > { %v2582_v41 = vpop.permute.xlu1 %2581  ;;  %v3073_v24 = vsel %vm3057_vm15, %v3040_v61, %v2568_v15 }
 0x294   : > { %v3087_v16 = vsel %vm3057_vm15, %v3054_v42, %v2582_v41 }
 0x296   : > { %v2610_v14 = vpop.permute.xlu0 %2609 }
 0x297   : > { %v2584_v45 = vpop.permute.xlu1 %2583  ;;  %v3608_v58 = vpop.f32.mrb[0].mxu0  ;;  %v3110_v20 = vsel %vm3090_vm1, %v3071_v63, %v2610_v14 }
 0x298   : > { %3366 = vst.msk [vmem:[%s6013_s12 + $0x10] sm:$0xff] %vm2661_vm3, %v3608_v58  ;;  %v3237_v27 = vpop.f32.mrb[1].mxu0  ;;  %3618 = vmatprep.mubr.bf16.mxu0 %v3110_v20  ;;  %v3089_v25 = vsel %vm3057_vm15, %v3056_v18, %v2584_v45 }
 0x299   : > { %3364 = vst.msk [vmem:[%s6013_s12] sm:$0xff] %vm2661_vm3, %v3237_v27  ;;  %v3609_v36 = vpop.f32.mrb[2].mxu0 }
 0x29a   : > { %3367 = vst.msk [vmem:[%s6013_s12 + $0x18] sm:$0xff] %vm2661_vm3, %v3609_v36  ;;  %v3240_v6 = vpop.f32.mrb[3].mxu0  ;;  %v2612_v43 = vpop.permute.xlu0 %2611 }
 0x29b   : > { %v2626_v1 = vpop.permute.xlu1 %2625  ;;  %3365 = vst.msk [vmem:[%s6013_s12 + $0x8] sm:$0xff] %vm2661_vm3, %v3240_v6  ;;  %v3113_v49 = vsel %vm3090_vm1, %v3073_v24, %v2612_v43 }
 0x29c   : > { %v3624_v30 = vpop.f32.mrb[0].mxu1  ;;  %3619 = vmatmul.mubr.bf16.gmra.mrb[12].mxu0 %v3113_v49  ;;  %v3134_v32 = vsel %vm3090_vm1, %v3087_v16, %v2626_v1 }
 0x29d   : > { %3382 = vst.msk [vmem:[%s6013_s12 + $0x90] sm:$0xff] %vm2661_vm3, %v3624_v30  ;;  %v3301_v53 = vpop.f32.mrb[1].mxu1  ;;  %3634 = vmatprep.mubr.bf16.mxu1 %v3134_v32 }
 0x29e   : > { %3380 = vst.msk [vmem:[%s6013_s12 + $0x80] sm:$0xff] %vm2661_vm3, %v3301_v53  ;;  %v3625_v52 = vpop.f32.mrb[2].mxu1 }
 0x29f   : > { %3383 = vst.msk [vmem:[%s6013_s12 + $0x98] sm:$0xff] %vm2661_vm3, %v3625_v52  ;;  %v2628_v62 = vpop.permute.xlu1 %2627  ;;  %v3304_v40 = vpop.f32.mrb[3].mxu1 }
 0x2a0   : > { %3381 = vst.msk [vmem:[%s6013_s12 + $0x88] sm:$0xff] %vm2661_vm3, %v3304_v40  ;;  %v3137_v55 = vsel %vm3090_vm1, %v3089_v25, %v2628_v62 }
 0x2a1   : > { %3635 = vmatmul.mubr.bf16.gmra.mrb[12].mxu1 %v3137_v55 }
 0x2e3   : > { %v3612_v22 = vpop.f32.mrb[4].mxu0 }
 0x2e4   : > { %3370 = vst.msk [vmem:[%s6013_s12 + $0x30] sm:$0xff] %vm2661_vm3, %v3612_v22  ;;  %v3253_v44 = vpop.f32.mrb[5].mxu0 }
 0x2e5   : > { %3368 = vst.msk [vmem:[%s6013_s12 + $0x20] sm:$0xff] %vm2661_vm3, %v3253_v44  ;;  %v3613_v2 = vpop.f32.mrb[6].mxu0 }
 0x2e6   : > { %3371 = vst.msk [vmem:[%s6013_s12 + $0x38] sm:$0xff] %vm2661_vm3, %v3613_v2  ;;  %v3256_v54 = vpop.f32.mrb[7].mxu0 }
 0x2e7   : > { %3369 = vst.msk [vmem:[%s6013_s12 + $0x28] sm:$0xff] %vm2661_vm3, %v3256_v54 }
 0x2e8   : > { %v3628_v23 = vpop.f32.mrb[4].mxu1 }
 0x2e9   : > { %3386 = vst.msk [vmem:[%s6013_s12 + $0xb0] sm:$0xff] %vm2661_vm3, %v3628_v23  ;;  %v3317_v28 = vpop.f32.mrb[5].mxu1 }
 0x2ea   : > { %3384 = vst.msk [vmem:[%s6013_s12 + $0xa0] sm:$0xff] %vm2661_vm3, %v3317_v28  ;;  %v3629_v47 = vpop.f32.mrb[6].mxu1 }
 0x2eb   : > { %3387 = vst.msk [vmem:[%s6013_s12 + $0xb8] sm:$0xff] %vm2661_vm3, %v3629_v47  ;;  %v3320_v17 = vpop.f32.mrb[7].mxu1 }
 0x2ec   : > { %3385 = vst.msk [vmem:[%s6013_s12 + $0xa8] sm:$0xff] %vm2661_vm3, %v3320_v17 }
 0x333   : > { %v3616_v35 = vpop.f32.mrb[8].mxu0 }
 0x334   : > { %3374 = vst.msk [vmem:[%s6013_s12 + $0x50] sm:$0xff] %vm2661_vm3, %v3616_v35  ;;  %v3269_v7 = vpop.f32.mrb[9].mxu0 }
 0x335   : > { %3372 = vst.msk [vmem:[%s6013_s12 + $0x40] sm:$0xff] %vm2661_vm3, %v3269_v7  ;;  %v3617_v8 = vpop.f32.mrb[10].mxu0 }
 0x336   : > { %3375 = vst.msk [vmem:[%s6013_s12 + $0x58] sm:$0xff] %vm2661_vm3, %v3617_v8  ;;  %v3272_v12 = vpop.f32.mrb[11].mxu0 }
 0x337   : > { %3373 = vst.msk [vmem:[%s6013_s12 + $0x48] sm:$0xff] %vm2661_vm3, %v3272_v12 }
 0x338   : > { %v3632_v11 = vpop.f32.mrb[8].mxu1 }
 0x339   : > { %3390 = vst.msk [vmem:[%s6013_s12 + $0xd0] sm:$0xff] %vm2661_vm3, %v3632_v11  ;;  %v3333_v3 = vpop.f32.mrb[9].mxu1 }
 0x33a   : > { %3388 = vst.msk [vmem:[%s6013_s12 + $0xc0] sm:$0xff] %vm2661_vm3, %v3333_v3  ;;  %v3633_v9 = vpop.f32.mrb[10].mxu1 }
 0x33b   : > { %3391 = vst.msk [vmem:[%s6013_s12 + $0xd8] sm:$0xff] %vm2661_vm3, %v3633_v9  ;;  %v3336_v51 = vpop.f32.mrb[11].mxu1 }
 0x33c   : > { %3389 = vst.msk [vmem:[%s6013_s12 + $0xc8] sm:$0xff] %vm2661_vm3, %v3336_v51 }
 0x36f   : > { %v3620_v50 = vpop.f32.mrb[12].mxu0 }
 0x370   : > { %3378 = vst.msk [vmem:[%s6013_s12 + $0x70] sm:$0xff] %vm2661_vm3, %v3620_v50  ;;  %v3285_v38 = vpop.f32.mrb[13].mxu0 }
 0x371   : > { %3376 = vst.msk [vmem:[%s6013_s12 + $0x60] sm:$0xff] %vm2661_vm3, %v3285_v38  ;;  %v3621_v15 = vpop.f32.mrb[14].mxu0 }
 0x372   : > { %3379 = vst.msk [vmem:[%s6013_s12 + $0x78] sm:$0xff] %vm2661_vm3, %v3621_v15  ;;  %v3288_v34 = vpop.f32.mrb[15].mxu0 }
 0x373   : > { %3377 = vst.msk [vmem:[%s6013_s12 + $0x68] sm:$0xff] %vm2661_vm3, %v3288_v34 }
 0x374   : > { %v3636_v26 = vpop.f32.mrb[12].mxu1 }
 0x375   : > { %3394 = vst.msk [vmem:[%s6013_s12 + $0xf0] sm:$0xff] %vm2661_vm3, %v3636_v26  ;;  %v3349_v41 = vpop.f32.mrb[13].mxu1 }
 0x376   : > { %3392 = vst.msk [vmem:[%s6013_s12 + $0xe0] sm:$0xff] %vm2661_vm3, %v3349_v41  ;;  %v3637_v19 = vpop.f32.mrb[14].mxu1 }
 0x377   : > { %3395 = vst.msk [vmem:[%s6013_s12 + $0xf8] sm:$0xff] %vm2661_vm3, %v3637_v19  ;;  %v3352_v37 = vpop.f32.mrb[15].mxu1 }
 0x378   : > { %3393 = vst.msk [vmem:[%s6013_s12 + $0xe8] sm:$0xff] %vm2661_vm3, %v3352_v37 }
 0x379   : > { %3747 = shalt.err (!%p3744_p5)
}
 0x37a   : > { %s3748_s7 = scalar_lea.hbm %s6093_s27, 4096  ;;  %s3752_s22 = scalar_lea.hbm %s6156_s4, 8192 }
 0x37b   : > { %p3749_p6 = scmp.ne.s32.totalorder %s6093_s27, %s3748_s7  ;;  %p3753_p10 = scmp.lt.u32.totalorder %s6093_s27, %s6156_s4 }
 0x37c   : > { %p3754_p11 = scmp.lt.u32.totalorder %s3752_s22, %s3748_s7  ;;  %p3756_p13 = scmp.lt.u32.totalorder %s3748_s7, %s6093_s27 }
 0x37d   : > { %p3750_p7 = pnand %p3749_p6, %p3897_p4 }
 0x37e   : > { %p3755_p12 = por %p3754_p11, %p3753_p10 }
 0x37f   : > { %p3751_p9 = pneg %p3750_p7 }
 0x380   : > { %p3757_p0 = por %p3756_p13, %p3755_p12 }
 0x382   : > { %p3758_p1 = pnand %p3757_p0, %p3751_p9 }
 0x384   : > { %3761 = shalt.err (!%p3758_p1)
}
 0x385   : > { %s3831_s11 = smov 128  }
 0x386   : > { %3654 = dma.vmem_to_hbm [thread:$0]  (%p3897_p4), %s6097_s14, 4096, %s6093_s27, %s6105_s0, %s3831_s11, %s3831_s11, %s3815_s6  }
 0x387 PF: > { %p3660_p2 = scmp.ge.s32.totalorder %s3812_s19, 2  ;;  %s3427_s12 = sand.u32 1, %s3792_s15  }
 0x388   : > { %s3428_s13 = scalar_lea.sflag [#allocation5], %s3427_s12 }
 0x389   : > { %p3657_p3 = pnand %p3660_p2, %p3904_p8 }
 0x38b   : > { %3787 = dma.done.wait (!%p3657_p3), %s3428_s13, 4096  }
 0x38c   : > { %3789 = vsyncadd (!%p3657_p3), %s3428_s13, 4294963200  ;;  %s17_s19 = sadd.s32 1, %s3812_s19   ;;  %s6482_s15 = smov %s3796_s16 }
 0x38d   : > { %p14_p5 = scmp.ge.s32.totalorder %s17_s19, 4   ;;  %s6483_s16 = smov %s3800_s17 }
 0x38e   : > { %s6484_s17 = smov %s3910_s26  ;;  %s6485_s0 = smov %s3808_s18 }
 0x38f   : > { %s6486_s18 = smov %s6488_s21  ;;  %16 = sbr.rel (!%p14_p5) target bundleno = 4 (0x4), region = 298 }
 0x396   :  { %3433 = vsyncpa [#allocation5], 1 }
 0x397   :  { %3435 = vsyncpa [#allocation5 + $0x1], 1 }

</bundles_post_ra>
